<compile_context>
chip_gen: v5e
topology: v5e:2x2
jax: 0.10.0
libtpu: 0.0.40
codegen_flags: <defaults>
</compile_context>

<pallas_src>
from string import ascii_lowercase, digits

import jax
import jax.numpy as jnp
from jax.experimental import pallas as pl
from jax.experimental.pallas import tpu as pltpu

VOCAB = ascii_lowercase + digits + "-." + "_"   # vocabulary + start_char '_'
VOCAB_SIZE = len(VOCAB) + 1                     # +1 for index 0 (pad / <END>) -> 40
V_PAD = 128                                     # lane-dense padded vocab width
CLS_COL = VOCAB_SIZE                            # padded decoder column carrying cls logit


def _round_up(x, m):
    return ((x + m - 1) // m) * m


def make_dga_kernel(T, B_pad, size_pad, nlayers, v_pad):
    """Build a Pallas kernel closure for fixed static shapes."""
    TB = T * B_pad
    G = 3 * size_pad

    def kernel(*refs):
        i = 0
        tok_ref = refs[i]; i += 1               # (T, B_pad) int32
        layer_refs = []
        for _ in range(nlayers):
            # (w_in, b_ih, w_hh, b_hh), all gate-padded to 128-lane blocks:
            #   layer 0 : w_in = pad(emb_table @ W_ih0^T) -> (v_pad, 3*size_pad)
            #   layer>0 : w_in = pad(W_ih_l^T)            -> (size_pad, 3*size_pad)
            #   w_hh    = pad(W_hh_l^T)                   -> (size_pad, 3*size_pad)
            layer_refs.append((refs[i], refs[i + 1], refs[i + 2], refs[i + 3]))
            i += 4
        wd_ref = refs[i]; bd_ref = refs[i + 1]     # decoder(+cls col): (size_pad, v_pad), (1, v_pad)
        h0_ref = refs[i + 2]                       # (nlayers, B_pad, size_pad)
        i += 3
        cls_ref = refs[i]                          # (B_pad, v_pad)   full-tile, col CLS_COL used
        dec_ref = refs[i + 1]                      # (T*B_pad, v_pad) lane-dense 2-D
        hid_ref = refs[i + 2]                      # (nlayers, B_pad, size_pad)
        i += 3
        x_scr = refs[i]                            # VMEM (T*B_pad, size_pad)   layer output seq
        gx_scr = refs[i + 1]                       # VMEM (T*B_pad, 3*size_pad) hoisted input proj

        # ---- one-hot over the padded (128-lane) vocab; padded columns are zero ----
        tok = tok_ref[...]                                             # (T, B_pad) int32
        iota = jax.lax.broadcasted_iota(jnp.int32, (T, B_pad, v_pad), 2)
        onehot = (tok[:, :, None] == iota).astype(jnp.float32)         # (T, B_pad, V_PAD)
        x0 = onehot.reshape(TB, v_pad)                                 # (T*B_pad, V_PAD)

        # ---- multi-layer GRU ----
        for l in range(nlayers):
            w_in_ref, b_ih_ref, w_hh_ref, b_hh_ref = layer_refs[l]

            # Batched input projection for the whole sequence (hoisted out of the
            # recurrence), stored to VMEM scratch; bias folded into the epilogue.
            x_in = x0 if l == 0 else x_scr[...]
            gx_scr[...] = jnp.dot(x_in, w_in_ref[...],
                                  preferred_element_type=jnp.float32) + b_ih_ref[...]

            w_hh = w_hh_ref[...]                                        # (size_pad, 3*size_pad)
            b_hh_b = jnp.broadcast_to(b_hh_ref[...], (B_pad, G))        # hoisted once
            h = h0_ref[l]                                               # (B_pad, size_pad)

            for t in range(T):                     # fully unrolled: static, tile-aligned slices
                gx = gx_scr[pl.ds(t * B_pad, B_pad), :]                 # (B_pad, 3*size_pad)
                gh = jnp.dot(h, w_hh, preferred_element_type=jnp.float32) + b_hh_b
                # each gate is its own 128-lane-aligned block -> slices are no-ops
                r = jax.nn.sigmoid(gx[:, :size_pad] + gh[:, :size_pad])
                z = jax.nn.sigmoid(gx[:, size_pad:2 * size_pad] + gh[:, size_pad:2 * size_pad])
                n = jnp.tanh(gx[:, 2 * size_pad:] + r * gh[:, 2 * size_pad:])
                h = (1.0 - z) * n + z * h                               # padded lanes stay 0
                x_scr[pl.ds(t * B_pad, B_pad), :] = h                   # full-tile store

            hid_ref[l] = h                                              # full-tile store

        # ---- decoder Linear over the full last-layer sequence (lane-dense output) ----
        # classifier head is folded in: column CLS_COL of wd/bd holds wo/bo.
        dec = jnp.dot(x_scr[...], wd_ref[...],
                      preferred_element_type=jnp.float32) + bd_ref[...]
        dec_ref[...] = dec                                              # (T*B_pad, V_PAD)

        # ---- classifier head: hidden[-1] == last-timestep rows of last-layer output ----
        # TODO(synk): nn.Dropout(0.3) is identity in eval mode; training-mode dropout not implemented.
        cls_ref[...] = jax.nn.sigmoid(dec[(T - 1) * B_pad:, :])         # full (B_pad, 128) tile

    return kernel


def dga_forward(tokens, params, h0, *, emb, size, nlayers, vocab_size, v_pad=V_PAD):
    T, B = tokens.shape
    B_pad = _round_up(max(B, 8), 8)
    size_pad = _round_up(max(size, 128), 128)
    f32 = jnp.float32
    kernel = make_dga_kernel(T, B_pad, size_pad, nlayers, v_pad)

    # ---- host/wrapper-side weight prep (pre-transpose, gate-pad, fuse) ----
    def pad_gate_cols(w_t):
        # (rows, 3*size) -> (rows, 3*size_pad): each gate in its own 128-lane block
        out = jnp.zeros((w_t.shape[0], 3 * size_pad), f32)
        for g in range(3):
            out = out.at[:, g * size_pad:g * size_pad + size].set(
                w_t[:, g * size:(g + 1) * size])
        return out

    def pad_rows(w, rows_pad):
        out = jnp.zeros((rows_pad,) + w.shape[1:], f32)
        return out.at[:w.shape[0]].set(w)

    # layer 0: embedding fused into the input projection
    emb_pad = jnp.zeros((v_pad, emb), f32).at[:vocab_size].set(params["emb"])
    fused0 = pad_gate_cols(emb_pad @ params["wih0"].T)            # (v_pad, 3*size_pad)

    tok_pad = jnp.zeros((T, B_pad), jnp.int32).at[:, :B].set(tokens.astype(jnp.int32))

    inputs = [tok_pad]
    for l in range(nlayers):
        if l == 0:
            w_in = fused0
        else:
            w_in = pad_rows(pad_gate_cols(params[f"wih{l}"].T), size_pad)
        inputs += [
            w_in,
            pad_gate_cols(params[f"bih{l}"].reshape(1, -1)),
            pad_rows(pad_gate_cols(params[f"whh{l}"].T), size_pad),
            pad_gate_cols(params[f"bhh{l}"].reshape(1, -1)),
        ]

    # decoder weights with classifier head folded into padded column CLS_COL (>= vocab_size)
    assert vocab_size <= CLS_COL < v_pad
    wd_full = jnp.zeros((size_pad, v_pad), f32)
    wd_full = wd_full.at[:size, :vocab_size].set(params["wd"].T)
    wd_full = wd_full.at[:size, CLS_COL].set(params["wo"][0, :])
    bd_full = jnp.zeros((1, v_pad), f32)
    bd_full = bd_full.at[0, :vocab_size].set(params["bd"])
    bd_full = bd_full.at[0, CLS_COL].set(params["bo"][0])

    h0_pad = jnp.zeros((nlayers, B_pad, size_pad), f32).at[:, :B, :size].set(h0)
    inputs += [wd_full, bd_full, h0_pad]

    vmem = lambda: pl.BlockSpec(memory_space=pltpu.MemorySpace.VMEM)
    out_shape = (
        jax.ShapeDtypeStruct((B_pad, v_pad), f32),               # cls (padded tile)
        jax.ShapeDtypeStruct((T * B_pad, v_pad), f32),           # decoded (padded, 2-D)
        jax.ShapeDtypeStruct((nlayers, B_pad, size_pad), f32),   # hidden_state (padded)
    )
    cls_pad, dec2d, hid_pad = pl.pallas_call(
        kernel,
        out_shape=out_shape,
        in_specs=[vmem() for _ in inputs],
        out_specs=(vmem(), vmem(), vmem()),
        scratch_shapes=[
            pltpu.VMEM((T * B_pad, size_pad), f32),        # per-layer output sequence
            pltpu.VMEM((T * B_pad, 3 * size_pad), f32),    # hoisted input projections
        ],
    )(*inputs)

    cls = cls_pad[:B, CLS_COL:CLS_COL + 1]                        # (B, 1)
    decoded = dec2d.reshape(T, B_pad, v_pad)[:, :B, :vocab_size]  # strip padding
    hidden = hid_pad[:, :B, :size]
    return cls, decoded, hidden


def init_params(key, emb, size, nlayers, vocab_size):
    """Deterministic synthetic init (PyTorch-style uniform(-1/sqrt(size), 1/sqrt(size)))."""
    keys = jax.random.split(key, 4 + 4 * nlayers + 4)
    ki = iter(keys)
    s = 1.0 / jnp.sqrt(jnp.float32(size))
    u = lambda k, shape: jax.random.uniform(k, shape, jnp.float32, -s, s)
    params = {"emb": jax.random.normal(next(ki), (vocab_size, emb), jnp.float32)}
    for l in range(nlayers):
        in_dim = emb if l == 0 else size
        params[f"wih{l}"] = u(next(ki), (3 * size, in_dim))
        params[f"whh{l}"] = u(next(ki), (3 * size, size))
        params[f"bih{l}"] = u(next(ki), (3 * size,))
        params[f"bhh{l}"] = u(next(ki), (3 * size,))
    params["wd"] = u(next(ki), (vocab_size, size))
    params["bd"] = u(next(ki), (vocab_size,))
    params["wo"] = u(next(ki), (1, size))
    params["bo"] = u(next(ki), (1,))
    return params


def reference_forward(tokens, params, h0, *, emb, size, nlayers, vocab_size):
    """Pure-JAX reference mirroring the PyTorch forward (eval mode)."""
    T, B = tokens.shape
    inp = params["emb"][tokens]                      # (T, B, emb)
    h_lasts = []
    for l in range(nlayers):
        wih, whh = params[f"wih{l}"], params[f"whh{l}"]
        bih, bhh = params[f"bih{l}"], params[f"bhh{l}"]
        h = h0[l]
        outs = []
        for t in range(T):
            gx = inp[t] @ wih.T + bih
            gh = h @ whh.T + bhh
            r = jax.nn.sigmoid(gx[:, :size] + gh[:, :size])
            z = jax.nn.sigmoid(gx[:, size:2 * size] + gh[:, size:2 * size])
            n = jnp.tanh(gx[:, 2 * size:] + r * gh[:, 2 * size:])
            h = (1.0 - z) * n + z * h
            outs.append(h)
        inp = jnp.stack(outs, 0)
        h_lasts.append(h)
    hidden = jnp.stack(h_lasts, 0)
    dec = inp @ params["wd"].T + params["bd"]
    cls = jax.nn.sigmoid(h_lasts[-1] @ params["wo"].T + params["bo"])
    return cls, dec, hidden


if __name__ == "__main__":
    # Small shapes: seq=8, batch=2, emb=32, hidden=32, 2 GRU layers, vocab=40
    T, B, EMB, SIZE, NLAYERS = 8, 2, 32, 32, 2

    key = jax.random.PRNGKey(0)
    k_tok, k_par = jax.random.split(key)
    tokens = jax.random.randint(k_tok, (T, B), 0, VOCAB_SIZE, dtype=jnp.int32)
    params = init_params(k_par, EMB, SIZE, NLAYERS, VOCAB_SIZE)
    h0 = jnp.zeros((NLAYERS, B, SIZE), jnp.float32)   # hidden_state=None -> zeros

    cls, decoded, hidden = dga_forward(
        tokens, params, h0, emb=EMB, size=SIZE, nlayers=NLAYERS, vocab_size=VOCAB_SIZE)
    jax.block_until_ready((cls, decoded, hidden))

    cls_r, dec_r, hid_r = reference_forward(
        tokens, params, h0, emb=EMB, size=SIZE, nlayers=NLAYERS, vocab_size=VOCAB_SIZE)

    assert cls.shape == (B, 1) and decoded.shape == (T, B, VOCAB_SIZE)
    assert hidden.shape == (NLAYERS, B, SIZE)
    assert jnp.allclose(cls, cls_r, atol=1e-3, rtol=1e-3)
    assert jnp.allclose(decoded, dec_r, atol=1e-3, rtol=1e-3)
    assert jnp.allclose(hidden, hid_r, atol=1e-3, rtol=1e-3)

    print("KERNEL_OK")
</pallas_src>

<mosaic_0001>
module attributes {stable_mosaic.version = 11 : i64} {
  func.func @kernel(%arg0: memref<8x8xi32, #tpu.memory_space<vmem>>, %arg1: memref<128x384xf32, #tpu.memory_space<vmem>>, %arg2: memref<1x384xf32, #tpu.memory_space<vmem>>, %arg3: memref<128x384xf32, #tpu.memory_space<vmem>>, %arg4: memref<1x384xf32, #tpu.memory_space<vmem>>, %arg5: memref<128x384xf32, #tpu.memory_space<vmem>>, %arg6: memref<1x384xf32, #tpu.memory_space<vmem>>, %arg7: memref<128x384xf32, #tpu.memory_space<vmem>>, %arg8: memref<1x384xf32, #tpu.memory_space<vmem>>, %arg9: memref<128x128xf32, #tpu.memory_space<vmem>>, %arg10: memref<1x128xf32, #tpu.memory_space<vmem>>, %arg11: memref<2x8x128xf32, #tpu.memory_space<vmem>>, %arg12: memref<8x128xf32, #tpu.memory_space<vmem>>, %arg13: memref<64x128xf32, #tpu.memory_space<vmem>>, %arg14: memref<2x8x128xf32, #tpu.memory_space<vmem>>, %arg15: memref<64x128xf32, #tpu.memory_space<vmem>>, %arg16: memref<64x384xf32, #tpu.memory_space<vmem>>) attributes {dimension_semantics = [], scalar_prefetch = 0 : i64, scratch_operands = 2 : i64, tpu.core_type = #tpu.core_type<tc>} {
    %c0 = arith.constant 0 : index
    %c0_0 = arith.constant 0 : index
    %0 = vector.load %arg0[%c0, %c0_0] : memref<8x8xi32, #tpu.memory_space<vmem>>, vector<8x8xi32>
    %1 = tpu.iota {dimensions = array<i32: 2>} : vector<8x8x128xi32>
    %2 = vector.shape_cast %0 : vector<8x8xi32> to vector<8x8x1xi32>
    %3 = vector.broadcast %2 : vector<8x8x1xi32> to vector<8x8x128xi32>
    %4 = arith.cmpi eq, %3, %1 : vector<8x8x128xi32>
    %5 = arith.extui %4 : vector<8x8x128xi1> to vector<8x8x128xi32>
    %6 = arith.sitofp %5 : vector<8x8x128xi32> to vector<8x8x128xf32>
    %7 = vector.shape_cast %6 : vector<8x8x128xf32> to vector<64x128xf32>
    %c0_1 = arith.constant 0 : index
    %c0_2 = arith.constant 0 : index
    %8 = vector.load %arg1[%c0_1, %c0_2] : memref<128x384xf32, #tpu.memory_space<vmem>>, vector<128x384xf32>
    %cst = arith.constant dense<0.000000e+00> : vector<64x384xf32>
    %9 = tpu.matmul %7, %8, %cst {dimension_numbers = #tpu.dot_dimension_numbers<[1], [0], [0], [1], [0, 0, 1, 1], [], []>} : vector<64x128xf32>, vector<128x384xf32>, vector<64x384xf32> -> vector<64x384xf32>
    %c0_3 = arith.constant 0 : index
    %c0_4 = arith.constant 0 : index
    %10 = vector.load %arg2[%c0_3, %c0_4] : memref<1x384xf32, #tpu.memory_space<vmem>>, vector<1x384xf32>
    %11 = vector.broadcast %10 : vector<1x384xf32> to vector<64x384xf32>
    %12 = arith.addf %9, %11 : vector<64x384xf32>
    %c0_5 = arith.constant 0 : index
    %c0_6 = arith.constant 0 : index
    %13 = vector.load %arg16[%c0_5, %c0_6] : memref<64x384xf32, #tpu.memory_space<vmem>>, vector<64x384xf32>
    tpu.vector_store %arg16[%c0_5, %c0_6], %12 {strides = array<i32>} : memref<64x384xf32, #tpu.memory_space<vmem>>, vector<64x384xf32>,
    %c0_7 = arith.constant 0 : index
    %c0_8 = arith.constant 0 : index
    %14 = vector.load %arg3[%c0_7, %c0_8] : memref<128x384xf32, #tpu.memory_space<vmem>>, vector<128x384xf32>
    %c0_9 = arith.constant 0 : index
    %c0_10 = arith.constant 0 : index
    %15 = vector.load %arg4[%c0_9, %c0_10] : memref<1x384xf32, #tpu.memory_space<vmem>>, vector<1x384xf32>
    %16 = vector.shape_cast %15 : vector<1x384xf32> to vector<1x384xf32>
    %17 = vector.broadcast %16 : vector<1x384xf32> to vector<8x384xf32>
    %c0_11 = arith.constant 0 : index
    %c0_12 = arith.constant 0 : index
    %c0_13 = arith.constant 0 : index
    %18 = vector.load %arg11[%c0_11, %c0_12, %c0_13] : memref<2x8x128xf32, #tpu.memory_space<vmem>>, vector<1x8x128xf32>
    %19 = vector.shape_cast %18 : vector<1x8x128xf32> to vector<8x128xf32>
    %c0_14 = arith.constant 0 : index
    %c0_15 = arith.constant 0 : index
    %20 = vector.load %arg16[%c0_14, %c0_15] : memref<64x384xf32, #tpu.memory_space<vmem>>, vector<8x384xf32>
    %cst_16 = arith.constant dense<0.000000e+00> : vector<8x384xf32>
    %21 = tpu.matmul %19, %14, %cst_16 {dimension_numbers = #tpu.dot_dimension_numbers<[1], [0], [0], [1], [0, 0, 1, 1], [], []>} : vector<8x128xf32>, vector<128x384xf32>, vector<8x384xf32> -> vector<8x384xf32>
    %22 = arith.addf %21, %17 : vector<8x384xf32>
    %23 = vector.extract_strided_slice %20 {offsets = [0, 0], sizes = [8, 128], strides = [1, 1]} : vector<8x384xf32> to vector<8x128xf32>
    %24 = vector.extract_strided_slice %22 {offsets = [0, 0], sizes = [8, 128], strides = [1, 1]} : vector<8x384xf32> to vector<8x128xf32>
    %25 = arith.addf %23, %24 : vector<8x128xf32>
    %26 = arith.negf %25 : vector<8x128xf32>
    %27 = math.exp %26 : vector<8x128xf32>
    %cst_17 = arith.constant 1.000000e+00 : f32
    %28 = vector.broadcast %cst_17 : f32 to vector<8x128xf32>
    %29 = arith.addf %28, %27 : vector<8x128xf32>
    %30 = arith.divf %28, %29 : vector<8x128xf32>
    %31 = vector.extract_strided_slice %20 {offsets = [0, 128], sizes = [8, 128], strides = [1, 1]} : vector<8x384xf32> to vector<8x128xf32>
    %32 = vector.extract_strided_slice %22 {offsets = [0, 128], sizes = [8, 128], strides = [1, 1]} : vector<8x384xf32> to vector<8x128xf32>
    %33 = arith.addf %31, %32 : vector<8x128xf32>
    %34 = arith.negf %33 : vector<8x128xf32>
    %35 = math.exp %34 : vector<8x128xf32>
    %cst_18 = arith.constant 1.000000e+00 : f32
    %36 = vector.broadcast %cst_18 : f32 to vector<8x128xf32>
    %37 = arith.addf %36, %35 : vector<8x128xf32>
    %38 = arith.divf %36, %37 : vector<8x128xf32>
    %39 = vector.extract_strided_slice %20 {offsets = [0, 256], sizes = [8, 128], strides = [1, 1]} : vector<8x384xf32> to vector<8x128xf32>
    %40 = vector.extract_strided_slice %22 {offsets = [0, 256], sizes = [8, 128], strides = [1, 1]} : vector<8x384xf32> to vector<8x128xf32>
    %41 = arith.mulf %30, %40 : vector<8x128xf32>
    %42 = arith.addf %39, %41 : vector<8x128xf32>
    %43 = math.tanh %42 : vector<8x128xf32>
    %cst_19 = arith.constant 1.000000e+00 : f32
    %44 = vector.broadcast %cst_19 : f32 to vector<8x128xf32>
    %45 = arith.subf %44, %38 : vector<8x128xf32>
    %46 = arith.mulf %45, %43 : vector<8x128xf32>
    %47 = arith.mulf %38, %19 : vector<8x128xf32>
    %48 = arith.addf %46, %47 : vector<8x128xf32>
    %c0_20 = arith.constant 0 : index
    %c0_21 = arith.constant 0 : index
    %49 = vector.load %arg15[%c0_20, %c0_21] : memref<64x128xf32, #tpu.memory_space<vmem>>, vector<8x128xf32>
    tpu.vector_store %arg15[%c0_20, %c0_21], %48 {strides = array<i32>} : memref<64x128xf32, #tpu.memory_space<vmem>>, vector<8x128xf32>,
    %c8 = arith.constant 8 : index
    %c0_22 = arith.constant 0 : index
    %50 = vector.load %arg16[%c8, %c0_22] : memref<64x384xf32, #tpu.memory_space<vmem>>, vector<8x384xf32>
    %cst_23 = arith.constant dense<0.000000e+00> : vector<8x384xf32>
    %51 = tpu.matmul %48, %14, %cst_23 {dimension_numbers = #tpu.dot_dimension_numbers<[1], [0], [0], [1], [0, 0, 1, 1], [], []>} : vector<8x128xf32>, vector<128x384xf32>, vector<8x384xf32> -> vector<8x384xf32>
    %52 = arith.addf %51, %17 : vector<8x384xf32>
    %53 = vector.extract_strided_slice %50 {offsets = [0, 0], sizes = [8, 128], strides = [1, 1]} : vector<8x384xf32> to vector<8x128xf32>
    %54 = vector.extract_strided_slice %52 {offsets = [0, 0], sizes = [8, 128], strides = [1, 1]} : vector<8x384xf32> to vector<8x128xf32>
    %55 = arith.addf %53, %54 : vector<8x128xf32>
    %56 = arith.negf %55 : vector<8x128xf32>
    %57 = math.exp %56 : vector<8x128xf32>
    %cst_24 = arith.constant 1.000000e+00 : f32
    %58 = vector.broadcast %cst_24 : f32 to vector<8x128xf32>
    %59 = arith.addf %58, %57 : vector<8x128xf32>
    %60 = arith.divf %58, %59 : vector<8x128xf32>
    %61 = vector.extract_strided_slice %50 {offsets = [0, 128], sizes = [8, 128], strides = [1, 1]} : vector<8x384xf32> to vector<8x128xf32>
    %62 = vector.extract_strided_slice %52 {offsets = [0, 128], sizes = [8, 128], strides = [1, 1]} : vector<8x384xf32> to vector<8x128xf32>
    %63 = arith.addf %61, %62 : vector<8x128xf32>
    %64 = arith.negf %63 : vector<8x128xf32>
    %65 = math.exp %64 : vector<8x128xf32>
    %cst_25 = arith.constant 1.000000e+00 : f32
    %66 = vector.broadcast %cst_25 : f32 to vector<8x128xf32>
    %67 = arith.addf %66, %65 : vector<8x128xf32>
    %68 = arith.divf %66, %67 : vector<8x128xf32>
    %69 = vector.extract_strided_slice %50 {offsets = [0, 256], sizes = [8, 128], strides = [1, 1]} : vector<8x384xf32> to vector<8x128xf32>
    %70 = vector.extract_strided_slice %52 {offsets = [0, 256], sizes = [8, 128], strides = [1, 1]} : vector<8x384xf32> to vector<8x128xf32>
    %71 = arith.mulf %60, %70 : vector<8x128xf32>
    %72 = arith.addf %69, %71 : vector<8x128xf32>
    %73 = math.tanh %72 : vector<8x128xf32>
    %cst_26 = arith.constant 1.000000e+00 : f32
    %74 = vector.broadcast %cst_26 : f32 to vector<8x128xf32>
    %75 = arith.subf %74, %68 : vector<8x128xf32>
    %76 = arith.mulf %75, %73 : vector<8x128xf32>
    %77 = arith.mulf %68, %48 : vector<8x128xf32>
    %78 = arith.addf %76, %77 : vector<8x128xf32>
    %c8_27 = arith.constant 8 : index
    %c0_28 = arith.constant 0 : index
    %79 = vector.load %arg15[%c8_27, %c0_28] : memref<64x128xf32, #tpu.memory_space<vmem>>, vector<8x128xf32>
    tpu.vector_store %arg15[%c8_27, %c0_28], %78 {strides = array<i32>} : memref<64x128xf32, #tpu.memory_space<vmem>>, vector<8x128xf32>,
    %c16 = arith.constant 16 : index
    %c0_29 = arith.constant 0 : index
    %80 = vector.load %arg16[%c16, %c0_29] : memref<64x384xf32, #tpu.memory_space<vmem>>, vector<8x384xf32>
    %cst_30 = arith.constant dense<0.000000e+00> : vector<8x384xf32>
    %81 = tpu.matmul %78, %14, %cst_30 {dimension_numbers = #tpu.dot_dimension_numbers<[1], [0], [0], [1], [0, 0, 1, 1], [], []>} : vector<8x128xf32>, vector<128x384xf32>, vector<8x384xf32> -> vector<8x384xf32>
    %82 = arith.addf %81, %17 : vector<8x384xf32>
    %83 = vector.extract_strided_slice %80 {offsets = [0, 0], sizes = [8, 128], strides = [1, 1]} : vector<8x384xf32> to vector<8x128xf32>
    %84 = vector.extract_strided_slice %82 {offsets = [0, 0], sizes = [8, 128], strides = [1, 1]} : vector<8x384xf32> to vector<8x128xf32>
    %85 = arith.addf %83, %84 : vector<8x128xf32>
    %86 = arith.negf %85 : vector<8x128xf32>
    %87 = math.exp %86 : vector<8x128xf32>
    %cst_31 = arith.constant 1.000000e+00 : f32
    %88 = vector.broadcast %cst_31 : f32 to vector<8x128xf32>
    %89 = arith.addf %88, %87 : vector<8x128xf32>
    %90 = arith.divf %88, %89 : vector<8x128xf32>
    %91 = vector.extract_strided_slice %80 {offsets = [0, 128], sizes = [8, 128], strides = [1, 1]} : vector<8x384xf32> to vector<8x128xf32>
    %92 = vector.extract_strided_slice %82 {offsets = [0, 128], sizes = [8, 128], strides = [1, 1]} : vector<8x384xf32> to vector<8x128xf32>
    %93 = arith.addf %91, %92 : vector<8x128xf32>
    %94 = arith.negf %93 : vector<8x128xf32>
    %95 = math.exp %94 : vector<8x128xf32>
    %cst_32 = arith.constant 1.000000e+00 : f32
    %96 = vector.broadcast %cst_32 : f32 to vector<8x128xf32>
    %97 = arith.addf %96, %95 : vector<8x128xf32>
    %98 = arith.divf %96, %97 : vector<8x128xf32>
    %99 = vector.extract_strided_slice %80 {offsets = [0, 256], sizes = [8, 128], strides = [1, 1]} : vector<8x384xf32> to vector<8x128xf32>
    %100 = vector.extract_strided_slice %82 {offsets = [0, 256], sizes = [8, 128], strides = [1, 1]} : vector<8x384xf32> to vector<8x128xf32>
    %101 = arith.mulf %90, %100 : vector<8x128xf32>
    %102 = arith.addf %99, %101 : vector<8x128xf32>
    %103 = math.tanh %102 : vector<8x128xf32>
    %cst_33 = arith.constant 1.000000e+00 : f32
    %104 = vector.broadcast %cst_33 : f32 to vector<8x128xf32>
    %105 = arith.subf %104, %98 : vector<8x128xf32>
    %106 = arith.mulf %105, %103 : vector<8x128xf32>
    %107 = arith.mulf %98, %78 : vector<8x128xf32>
    %108 = arith.addf %106, %107 : vector<8x128xf32>
    %c16_34 = arith.constant 16 : index
    %c0_35 = arith.constant 0 : index
    %109 = vector.load %arg15[%c16_34, %c0_35] : memref<64x128xf32, #tpu.memory_space<vmem>>, vector<8x128xf32>
    tpu.vector_store %arg15[%c16_34, %c0_35], %108 {strides = array<i32>} : memref<64x128xf32, #tpu.memory_space<vmem>>, vector<8x128xf32>,
    %c24 = arith.constant 24 : index
    %c0_36 = arith.constant 0 : index
    %110 = vector.load %arg16[%c24, %c0_36] : memref<64x384xf32, #tpu.memory_space<vmem>>, vector<8x384xf32>
    %cst_37 = arith.constant dense<0.000000e+00> : vector<8x384xf32>
    %111 = tpu.matmul %108, %14, %cst_37 {dimension_numbers = #tpu.dot_dimension_numbers<[1], [0], [0], [1], [0, 0, 1, 1], [], []>} : vector<8x128xf32>, vector<128x384xf32>, vector<8x384xf32> -> vector<8x384xf32>
    %112 = arith.addf %111, %17 : vector<8x384xf32>
    %113 = vector.extract_strided_slice %110 {offsets = [0, 0], sizes = [8, 128], strides = [1, 1]} : vector<8x384xf32> to vector<8x128xf32>
    %114 = vector.extract_strided_slice %112 {offsets = [0, 0], sizes = [8, 128], strides = [1, 1]} : vector<8x384xf32> to vector<8x128xf32>
    %115 = arith.addf %113, %114 : vector<8x128xf32>
    %116 = arith.negf %115 : vector<8x128xf32>
    %117 = math.exp %116 : vector<8x128xf32>
    %cst_38 = arith.constant 1.000000e+00 : f32
    %118 = vector.broadcast %cst_38 : f32 to vector<8x128xf32>
    %119 = arith.addf %118, %117 : vector<8x128xf32>
    %120 = arith.divf %118, %119 : vector<8x128xf32>
    %121 = vector.extract_strided_slice %110 {offsets = [0, 128], sizes = [8, 128], strides = [1, 1]} : vector<8x384xf32> to vector<8x128xf32>
    %122 = vector.extract_strided_slice %112 {offsets = [0, 128], sizes = [8, 128], strides = [1, 1]} : vector<8x384xf32> to vector<8x128xf32>
    %123 = arith.addf %121, %122 : vector<8x128xf32>
    %124 = arith.negf %123 : vector<8x128xf32>
    %125 = math.exp %124 : vector<8x128xf32>
    %cst_39 = arith.constant 1.000000e+00 : f32
    %126 = vector.broadcast %cst_39 : f32 to vector<8x128xf32>
    %127 = arith.addf %126, %125 : vector<8x128xf32>
    %128 = arith.divf %126, %127 : vector<8x128xf32>
    %129 = vector.extract_strided_slice %110 {offsets = [0, 256], sizes = [8, 128], strides = [1, 1]} : vector<8x384xf32> to vector<8x128xf32>
    %130 = vector.extract_strided_slice %112 {offsets = [0, 256], sizes = [8, 128], strides = [1, 1]} : vector<8x384xf32> to vector<8x128xf32>
    %131 = arith.mulf %120, %130 : vector<8x128xf32>
    %132 = arith.addf %129, %131 : vector<8x128xf32>
    %133 = math.tanh %132 : vector<8x128xf32>
    %cst_40 = arith.constant 1.000000e+00 : f32
    %134 = vector.broadcast %cst_40 : f32 to vector<8x128xf32>
    %135 = arith.subf %134, %128 : vector<8x128xf32>
    %136 = arith.mulf %135, %133 : vector<8x128xf32>
    %137 = arith.mulf %128, %108 : vector<8x128xf32>
    %138 = arith.addf %136, %137 : vector<8x128xf32>
    %c24_41 = arith.constant 24 : index
    %c0_42 = arith.constant 0 : index
    %139 = vector.load %arg15[%c24_41, %c0_42] : memref<64x128xf32, #tpu.memory_space<vmem>>, vector<8x128xf32>
    tpu.vector_store %arg15[%c24_41, %c0_42], %138 {strides = array<i32>} : memref<64x128xf32, #tpu.memory_space<vmem>>, vector<8x128xf32>,
    %c32 = arith.constant 32 : index
    %c0_43 = arith.constant 0 : index
    %140 = vector.load %arg16[%c32, %c0_43] : memref<64x384xf32, #tpu.memory_space<vmem>>, vector<8x384xf32>
    %cst_44 = arith.constant dense<0.000000e+00> : vector<8x384xf32>
    %141 = tpu.matmul %138, %14, %cst_44 {dimension_numbers = #tpu.dot_dimension_numbers<[1], [0], [0], [1], [0, 0, 1, 1], [], []>} : vector<8x128xf32>, vector<128x384xf32>, vector<8x384xf32> -> vector<8x384xf32>
    %142 = arith.addf %141, %17 : vector<8x384xf32>
    %143 = vector.extract_strided_slice %140 {offsets = [0, 0], sizes = [8, 128], strides = [1, 1]} : vector<8x384xf32> to vector<8x128xf32>
    %144 = vector.extract_strided_slice %142 {offsets = [0, 0], sizes = [8, 128], strides = [1, 1]} : vector<8x384xf32> to vector<8x128xf32>
    %145 = arith.addf %143, %144 : vector<8x128xf32>
    %146 = arith.negf %145 : vector<8x128xf32>
    %147 = math.exp %146 : vector<8x128xf32>
    %cst_45 = arith.constant 1.000000e+00 : f32
    %148 = vector.broadcast %cst_45 : f32 to vector<8x128xf32>
    %149 = arith.addf %148, %147 : vector<8x128xf32>
    %150 = arith.divf %148, %149 : vector<8x128xf32>
    %151 = vector.extract_strided_slice %140 {offsets = [0, 128], sizes = [8, 128], strides = [1, 1]} : vector<8x384xf32> to vector<8x128xf32>
    %152 = vector.extract_strided_slice %142 {offsets = [0, 128], sizes = [8, 128], strides = [1, 1]} : vector<8x384xf32> to vector<8x128xf32>
    %153 = arith.addf %151, %152 : vector<8x128xf32>
    %154 = arith.negf %153 : vector<8x128xf32>
    %155 = math.exp %154 : vector<8x128xf32>
    %cst_46 = arith.constant 1.000000e+00 : f32
    %156 = vector.broadcast %cst_46 : f32 to vector<8x128xf32>
    %157 = arith.addf %156, %155 : vector<8x128xf32>
    %158 = arith.divf %156, %157 : vector<8x128xf32>
    %159 = vector.extract_strided_slice %140 {offsets = [0, 256], sizes = [8, 128], strides = [1, 1]} : vector<8x384xf32> to vector<8x128xf32>
    %160 = vector.extract_strided_slice %142 {offsets = [0, 256], sizes = [8, 128], strides = [1, 1]} : vector<8x384xf32> to vector<8x128xf32>
    %161 = arith.mulf %150, %160 : vector<8x128xf32>
    %162 = arith.addf %159, %161 : vector<8x128xf32>
    %163 = math.tanh %162 : vector<8x128xf32>
    %cst_47 = arith.constant 1.000000e+00 : f32
    %164 = vector.broadcast %cst_47 : f32 to vector<8x128xf32>
    %165 = arith.subf %164, %158 : vector<8x128xf32>
    %166 = arith.mulf %165, %163 : vector<8x128xf32>
    %167 = arith.mulf %158, %138 : vector<8x128xf32>
    %168 = arith.addf %166, %167 : vector<8x128xf32>
    %c32_48 = arith.constant 32 : index
    %c0_49 = arith.constant 0 : index
    %169 = vector.load %arg15[%c32_48, %c0_49] : memref<64x128xf32, #tpu.memory_space<vmem>>, vector<8x128xf32>
    tpu.vector_store %arg15[%c32_48, %c0_49], %168 {strides = array<i32>} : memref<64x128xf32, #tpu.memory_space<vmem>>, vector<8x128xf32>,
    %c40 = arith.constant 40 : index
    %c0_50 = arith.constant 0 : index
    %170 = vector.load %arg16[%c40, %c0_50] : memref<64x384xf32, #tpu.memory_space<vmem>>, vector<8x384xf32>
    %cst_51 = arith.constant dense<0.000000e+00> : vector<8x384xf32>
    %171 = tpu.matmul %168, %14, %cst_51 {dimension_numbers = #tpu.dot_dimension_numbers<[1], [0], [0], [1], [0, 0, 1, 1], [], []>} : vector<8x128xf32>, vector<128x384xf32>, vector<8x384xf32> -> vector<8x384xf32>
    %172 = arith.addf %171, %17 : vector<8x384xf32>
    %173 = vector.extract_strided_slice %170 {offsets = [0, 0], sizes = [8, 128], strides = [1, 1]} : vector<8x384xf32> to vector<8x128xf32>
    %174 = vector.extract_strided_slice %172 {offsets = [0, 0], sizes = [8, 128], strides = [1, 1]} : vector<8x384xf32> to vector<8x128xf32>
    %175 = arith.addf %173, %174 : vector<8x128xf32>
    %176 = arith.negf %175 : vector<8x128xf32>
    %177 = math.exp %176 : vector<8x128xf32>
    %cst_52 = arith.constant 1.000000e+00 : f32
    %178 = vector.broadcast %cst_52 : f32 to vector<8x128xf32>
    %179 = arith.addf %178, %177 : vector<8x128xf32>
    %180 = arith.divf %178, %179 : vector<8x128xf32>
    %181 = vector.extract_strided_slice %170 {offsets = [0, 128], sizes = [8, 128], strides = [1, 1]} : vector<8x384xf32> to vector<8x128xf32>
    %182 = vector.extract_strided_slice %172 {offsets = [0, 128], sizes = [8, 128], strides = [1, 1]} : vector<8x384xf32> to vector<8x128xf32>
    %183 = arith.addf %181, %182 : vector<8x128xf32>
    %184 = arith.negf %183 : vector<8x128xf32>
    %185 = math.exp %184 : vector<8x128xf32>
    %cst_53 = arith.constant 1.000000e+00 : f32
    %186 = vector.broadcast %cst_53 : f32 to vector<8x128xf32>
    %187 = arith.addf %186, %185 : vector<8x128xf32>
    %188 = arith.divf %186, %187 : vector<8x128xf32>
    %189 = vector.extract_strided_slice %170 {offsets = [0, 256], sizes = [8, 128], strides = [1, 1]} : vector<8x384xf32> to vector<8x128xf32>
    %190 = vector.extract_strided_slice %172 {offsets = [0, 256], sizes = [8, 128], strides = [1, 1]} : vector<8x384xf32> to vector<8x128xf32>
    %191 = arith.mulf %180, %190 : vector<8x128xf32>
    %192 = arith.addf %189, %191 : vector<8x128xf32>
    %193 = math.tanh %192 : vector<8x128xf32>
    %cst_54 = arith.constant 1.000000e+00 : f32
    %194 = vector.broadcast %cst_54 : f32 to vector<8x128xf32>
    %195 = arith.subf %194, %188 : vector<8x128xf32>
    %196 = arith.mulf %195, %193 : vector<8x128xf32>
    %197 = arith.mulf %188, %168 : vector<8x128xf32>
    %198 = arith.addf %196, %197 : vector<8x128xf32>
    %c40_55 = arith.constant 40 : index
    %c0_56 = arith.constant 0 : index
    %199 = vector.load %arg15[%c40_55, %c0_56] : memref<64x128xf32, #tpu.memory_space<vmem>>, vector<8x128xf32>
    tpu.vector_store %arg15[%c40_55, %c0_56], %198 {strides = array<i32>} : memref<64x128xf32, #tpu.memory_space<vmem>>, vector<8x128xf32>,
    %c48 = arith.constant 48 : index
    %c0_57 = arith.constant 0 : index
    %200 = vector.load %arg16[%c48, %c0_57] : memref<64x384xf32, #tpu.memory_space<vmem>>, vector<8x384xf32>
    %cst_58 = arith.constant dense<0.000000e+00> : vector<8x384xf32>
    %201 = tpu.matmul %198, %14, %cst_58 {dimension_numbers = #tpu.dot_dimension_numbers<[1], [0], [0], [1], [0, 0, 1, 1], [], []>} : vector<8x128xf32>, vector<128x384xf32>, vector<8x384xf32> -> vector<8x384xf32>
    %202 = arith.addf %201, %17 : vector<8x384xf32>
    %203 = vector.extract_strided_slice %200 {offsets = [0, 0], sizes = [8, 128], strides = [1, 1]} : vector<8x384xf32> to vector<8x128xf32>
    %204 = vector.extract_strided_slice %202 {offsets = [0, 0], sizes = [8, 128], strides = [1, 1]} : vector<8x384xf32> to vector<8x128xf32>
    %205 = arith.addf %203, %204 : vector<8x128xf32>
    %206 = arith.negf %205 : vector<8x128xf32>
    %207 = math.exp %206 : vector<8x128xf32>
    %cst_59 = arith.constant 1.000000e+00 : f32
    %208 = vector.broadcast %cst_59 : f32 to vector<8x128xf32>
    %209 = arith.addf %208, %207 : vector<8x128xf32>
    %210 = arith.divf %208, %209 : vector<8x128xf32>
    %211 = vector.extract_strided_slice %200 {offsets = [0, 128], sizes = [8, 128], strides = [1, 1]} : vector<8x384xf32> to vector<8x128xf32>
    %212 = vector.extract_strided_slice %202 {offsets = [0, 128], sizes = [8, 128], strides = [1, 1]} : vector<8x384xf32> to vector<8x128xf32>
    %213 = arith.addf %211, %212 : vector<8x128xf32>
    %214 = arith.negf %213 : vector<8x128xf32>
    %215 = math.exp %214 : vector<8x128xf32>
    %cst_60 = arith.constant 1.000000e+00 : f32
    %216 = vector.broadcast %cst_60 : f32 to vector<8x128xf32>
    %217 = arith.addf %216, %215 : vector<8x128xf32>
    %218 = arith.divf %216, %217 : vector<8x128xf32>
    %219 = vector.extract_strided_slice %200 {offsets = [0, 256], sizes = [8, 128], strides = [1, 1]} : vector<8x384xf32> to vector<8x128xf32>
    %220 = vector.extract_strided_slice %202 {offsets = [0, 256], sizes = [8, 128], strides = [1, 1]} : vector<8x384xf32> to vector<8x128xf32>
    %221 = arith.mulf %210, %220 : vector<8x128xf32>
    %222 = arith.addf %219, %221 : vector<8x128xf32>
    %223 = math.tanh %222 : vector<8x128xf32>
    %cst_61 = arith.constant 1.000000e+00 : f32
    %224 = vector.broadcast %cst_61 : f32 to vector<8x128xf32>
    %225 = arith.subf %224, %218 : vector<8x128xf32>
    %226 = arith.mulf %225, %223 : vector<8x128xf32>
    %227 = arith.mulf %218, %198 : vector<8x128xf32>
    %228 = arith.addf %226, %227 : vector<8x128xf32>
    %c48_62 = arith.constant 48 : index
    %c0_63 = arith.constant 0 : index
    %229 = vector.load %arg15[%c48_62, %c0_63] : memref<64x128xf32, #tpu.memory_space<vmem>>, vector<8x128xf32>
    tpu.vector_store %arg15[%c48_62, %c0_63], %228 {strides = array<i32>} : memref<64x128xf32, #tpu.memory_space<vmem>>, vector<8x128xf32>,
    %c56 = arith.constant 56 : index
    %c0_64 = arith.constant 0 : index
    %230 = vector.load %arg16[%c56, %c0_64] : memref<64x384xf32, #tpu.memory_space<vmem>>, vector<8x384xf32>
    %cst_65 = arith.constant dense<0.000000e+00> : vector<8x384xf32>
    %231 = tpu.matmul %228, %14, %cst_65 {dimension_numbers = #tpu.dot_dimension_numbers<[1], [0], [0], [1], [0, 0, 1, 1], [], []>} : vector<8x128xf32>, vector<128x384xf32>, vector<8x384xf32> -> vector<8x384xf32>
    %232 = arith.addf %231, %17 : vector<8x384xf32>
    %233 = vector.extract_strided_slice %230 {offsets = [0, 0], sizes = [8, 128], strides = [1, 1]} : vector<8x384xf32> to vector<8x128xf32>
    %234 = vector.extract_strided_slice %232 {offsets = [0, 0], sizes = [8, 128], strides = [1, 1]} : vector<8x384xf32> to vector<8x128xf32>
    %235 = arith.addf %233, %234 : vector<8x128xf32>
    %236 = arith.negf %235 : vector<8x128xf32>
    %237 = math.exp %236 : vector<8x128xf32>
    %cst_66 = arith.constant 1.000000e+00 : f32
    %238 = vector.broadcast %cst_66 : f32 to vector<8x128xf32>
    %239 = arith.addf %238, %237 : vector<8x128xf32>
    %240 = arith.divf %238, %239 : vector<8x128xf32>
    %241 = vector.extract_strided_slice %230 {offsets = [0, 128], sizes = [8, 128], strides = [1, 1]} : vector<8x384xf32> to vector<8x128xf32>
    %242 = vector.extract_strided_slice %232 {offsets = [0, 128], sizes = [8, 128], strides = [1, 1]} : vector<8x384xf32> to vector<8x128xf32>
    %243 = arith.addf %241, %242 : vector<8x128xf32>
    %244 = arith.negf %243 : vector<8x128xf32>
    %245 = math.exp %244 : vector<8x128xf32>
    %cst_67 = arith.constant 1.000000e+00 : f32
    %246 = vector.broadcast %cst_67 : f32 to vector<8x128xf32>
    %247 = arith.addf %246, %245 : vector<8x128xf32>
    %248 = arith.divf %246, %247 : vector<8x128xf32>
    %249 = vector.extract_strided_slice %230 {offsets = [0, 256], sizes = [8, 128], strides = [1, 1]} : vector<8x384xf32> to vector<8x128xf32>
    %250 = vector.extract_strided_slice %232 {offsets = [0, 256], sizes = [8, 128], strides = [1, 1]} : vector<8x384xf32> to vector<8x128xf32>
    %251 = arith.mulf %240, %250 : vector<8x128xf32>
    %252 = arith.addf %249, %251 : vector<8x128xf32>
    %253 = math.tanh %252 : vector<8x128xf32>
    %cst_68 = arith.constant 1.000000e+00 : f32
    %254 = vector.broadcast %cst_68 : f32 to vector<8x128xf32>
    %255 = arith.subf %254, %248 : vector<8x128xf32>
    %256 = arith.mulf %255, %253 : vector<8x128xf32>
    %257 = arith.mulf %248, %228 : vector<8x128xf32>
    %258 = arith.addf %256, %257 : vector<8x128xf32>
    %c56_69 = arith.constant 56 : index
    %c0_70 = arith.constant 0 : index
    %259 = vector.load %arg15[%c56_69, %c0_70] : memref<64x128xf32, #tpu.memory_space<vmem>>, vector<8x128xf32>
    tpu.vector_store %arg15[%c56_69, %c0_70], %258 {strides = array<i32>} : memref<64x128xf32, #tpu.memory_space<vmem>>, vector<8x128xf32>,
    %c0_71 = arith.constant 0 : index
    %c0_72 = arith.constant 0 : index
    %c0_73 = arith.constant 0 : index
    %260 = vector.load %arg14[%c0_71, %c0_72, %c0_73] : memref<2x8x128xf32, #tpu.memory_space<vmem>>, vector<1x8x128xf32>
    %261 = vector.shape_cast %260 : vector<1x8x128xf32> to vector<8x128xf32>
    %262 = vector.shape_cast %258 : vector<8x128xf32> to vector<1x8x128xf32>
    tpu.vector_store %arg14[%c0_71, %c0_72, %c0_73], %262 {strides = array<i32>} : memref<2x8x128xf32, #tpu.memory_space<vmem>>, vector<1x8x128xf32>,
    %c0_74 = arith.constant 0 : index
    %c0_75 = arith.constant 0 : index
    %263 = vector.load %arg15[%c0_74, %c0_75] : memref<64x128xf32, #tpu.memory_space<vmem>>, vector<64x128xf32>
    %c0_76 = arith.constant 0 : index
    %c0_77 = arith.constant 0 : index
    %264 = vector.load %arg5[%c0_76, %c0_77] : memref<128x384xf32, #tpu.memory_space<vmem>>, vector<128x384xf32>
    %cst_78 = arith.constant dense<0.000000e+00> : vector<64x384xf32>
    %265 = tpu.matmul %263, %264, %cst_78 {dimension_numbers = #tpu.dot_dimension_numbers<[1], [0], [0], [1], [0, 0, 1, 1], [], []>} : vector<64x128xf32>, vector<128x384xf32>, vector<64x384xf32> -> vector<64x384xf32>
    %c0_79 = arith.constant 0 : index
    %c0_80 = arith.constant 0 : index
    %266 = vector.load %arg6[%c0_79, %c0_80] : memref<1x384xf32, #tpu.memory_space<vmem>>, vector<1x384xf32>
    %267 = vector.broadcast %266 : vector<1x384xf32> to vector<64x384xf32>
    %268 = arith.addf %265, %267 : vector<64x384xf32>
    %c0_81 = arith.constant 0 : index
    %c0_82 = arith.constant 0 : index
    %269 = vector.load %arg16[%c0_81, %c0_82] : memref<64x384xf32, #tpu.memory_space<vmem>>, vector<64x384xf32>
    tpu.vector_store %arg16[%c0_81, %c0_82], %268 {strides = array<i32>} : memref<64x384xf32, #tpu.memory_space<vmem>>, vector<64x384xf32>,
    %c0_83 = arith.constant 0 : index
    %c0_84 = arith.constant 0 : index
    %270 = vector.load %arg7[%c0_83, %c0_84] : memref<128x384xf32, #tpu.memory_space<vmem>>, vector<128x384xf32>
    %c0_85 = arith.constant 0 : index
    %c0_86 = arith.constant 0 : index
    %271 = vector.load %arg8[%c0_85, %c0_86] : memref<1x384xf32, #tpu.memory_space<vmem>>, vector<1x384xf32>
    %272 = vector.shape_cast %271 : vector<1x384xf32> to vector<1x384xf32>
    %273 = vector.broadcast %272 : vector<1x384xf32> to vector<8x384xf32>
    %c1 = arith.constant 1 : index
    %c0_87 = arith.constant 0 : index
    %c0_88 = arith.constant 0 : index
    %274 = vector.load %arg11[%c1, %c0_87, %c0_88] : memref<2x8x128xf32, #tpu.memory_space<vmem>>, vector<1x8x128xf32>
    %275 = vector.shape_cast %274 : vector<1x8x128xf32> to vector<8x128xf32>
    %c0_89 = arith.constant 0 : index
    %c0_90 = arith.constant 0 : index
    %276 = vector.load %arg16[%c0_89, %c0_90] : memref<64x384xf32, #tpu.memory_space<vmem>>, vector<8x384xf32>
    %cst_91 = arith.constant dense<0.000000e+00> : vector<8x384xf32>
    %277 = tpu.matmul %275, %270, %cst_91 {dimension_numbers = #tpu.dot_dimension_numbers<[1], [0], [0], [1], [0, 0, 1, 1], [], []>} : vector<8x128xf32>, vector<128x384xf32>, vector<8x384xf32> -> vector<8x384xf32>
    %278 = arith.addf %277, %273 : vector<8x384xf32>
    %279 = vector.extract_strided_slice %276 {offsets = [0, 0], sizes = [8, 128], strides = [1, 1]} : vector<8x384xf32> to vector<8x128xf32>
    %280 = vector.extract_strided_slice %278 {offsets = [0, 0], sizes = [8, 128], strides = [1, 1]} : vector<8x384xf32> to vector<8x128xf32>
    %281 = arith.addf %279, %280 : vector<8x128xf32>
    %282 = arith.negf %281 : vector<8x128xf32>
    %283 = math.exp %282 : vector<8x128xf32>
    %cst_92 = arith.constant 1.000000e+00 : f32
    %284 = vector.broadcast %cst_92 : f32 to vector<8x128xf32>
    %285 = arith.addf %284, %283 : vector<8x128xf32>
    %286 = arith.divf %284, %285 : vector<8x128xf32>
    %287 = vector.extract_strided_slice %276 {offsets = [0, 128], sizes = [8, 128], strides = [1, 1]} : vector<8x384xf32> to vector<8x128xf32>
    %288 = vector.extract_strided_slice %278 {offsets = [0, 128], sizes = [8, 128], strides = [1, 1]} : vector<8x384xf32> to vector<8x128xf32>
    %289 = arith.addf %287, %288 : vector<8x128xf32>
    %290 = arith.negf %289 : vector<8x128xf32>
    %291 = math.exp %290 : vector<8x128xf32>
    %cst_93 = arith.constant 1.000000e+00 : f32
    %292 = vector.broadcast %cst_93 : f32 to vector<8x128xf32>
    %293 = arith.addf %292, %291 : vector<8x128xf32>
    %294 = arith.divf %292, %293 : vector<8x128xf32>
    %295 = vector.extract_strided_slice %276 {offsets = [0, 256], sizes = [8, 128], strides = [1, 1]} : vector<8x384xf32> to vector<8x128xf32>
    %296 = vector.extract_strided_slice %278 {offsets = [0, 256], sizes = [8, 128], strides = [1, 1]} : vector<8x384xf32> to vector<8x128xf32>
    %297 = arith.mulf %286, %296 : vector<8x128xf32>
    %298 = arith.addf %295, %297 : vector<8x128xf32>
    %299 = math.tanh %298 : vector<8x128xf32>
    %cst_94 = arith.constant 1.000000e+00 : f32
    %300 = vector.broadcast %cst_94 : f32 to vector<8x128xf32>
    %301 = arith.subf %300, %294 : vector<8x128xf32>
    %302 = arith.mulf %301, %299 : vector<8x128xf32>
    %303 = arith.mulf %294, %275 : vector<8x128xf32>
    %304 = arith.addf %302, %303 : vector<8x128xf32>
    %c0_95 = arith.constant 0 : index
    %c0_96 = arith.constant 0 : index
    %305 = vector.load %arg15[%c0_95, %c0_96] : memref<64x128xf32, #tpu.memory_space<vmem>>, vector<8x128xf32>
    tpu.vector_store %arg15[%c0_95, %c0_96], %304 {strides = array<i32>} : memref<64x128xf32, #tpu.memory_space<vmem>>, vector<8x128xf32>,
    %c8_97 = arith.constant 8 : index
    %c0_98 = arith.constant 0 : index
    %306 = vector.load %arg16[%c8_97, %c0_98] : memref<64x384xf32, #tpu.memory_space<vmem>>, vector<8x384xf32>
    %cst_99 = arith.constant dense<0.000000e+00> : vector<8x384xf32>
    %307 = tpu.matmul %304, %270, %cst_99 {dimension_numbers = #tpu.dot_dimension_numbers<[1], [0], [0], [1], [0, 0, 1, 1], [], []>} : vector<8x128xf32>, vector<128x384xf32>, vector<8x384xf32> -> vector<8x384xf32>
    %308 = arith.addf %307, %273 : vector<8x384xf32>
    %309 = vector.extract_strided_slice %306 {offsets = [0, 0], sizes = [8, 128], strides = [1, 1]} : vector<8x384xf32> to vector<8x128xf32>
    %310 = vector.extract_strided_slice %308 {offsets = [0, 0], sizes = [8, 128], strides = [1, 1]} : vector<8x384xf32> to vector<8x128xf32>
    %311 = arith.addf %309, %310 : vector<8x128xf32>
    %312 = arith.negf %311 : vector<8x128xf32>
    %313 = math.exp %312 : vector<8x128xf32>
    %cst_100 = arith.constant 1.000000e+00 : f32
    %314 = vector.broadcast %cst_100 : f32 to vector<8x128xf32>
    %315 = arith.addf %314, %313 : vector<8x128xf32>
    %316 = arith.divf %314, %315 : vector<8x128xf32>
    %317 = vector.extract_strided_slice %306 {offsets = [0, 128], sizes = [8, 128], strides = [1, 1]} : vector<8x384xf32> to vector<8x128xf32>
    %318 = vector.extract_strided_slice %308 {offsets = [0, 128], sizes = [8, 128], strides = [1, 1]} : vector<8x384xf32> to vector<8x128xf32>
    %319 = arith.addf %317, %318 : vector<8x128xf32>
    %320 = arith.negf %319 : vector<8x128xf32>
    %321 = math.exp %320 : vector<8x128xf32>
    %cst_101 = arith.constant 1.000000e+00 : f32
    %322 = vector.broadcast %cst_101 : f32 to vector<8x128xf32>
    %323 = arith.addf %322, %321 : vector<8x128xf32>
    %324 = arith.divf %322, %323 : vector<8x128xf32>
    %325 = vector.extract_strided_slice %306 {offsets = [0, 256], sizes = [8, 128], strides = [1, 1]} : vector<8x384xf32> to vector<8x128xf32>
    %326 = vector.extract_strided_slice %308 {offsets = [0, 256], sizes = [8, 128], strides = [1, 1]} : vector<8x384xf32> to vector<8x128xf32>
    %327 = arith.mulf %316, %326 : vector<8x128xf32>
    %328 = arith.addf %325, %327 : vector<8x128xf32>
    %329 = math.tanh %328 : vector<8x128xf32>
    %cst_102 = arith.constant 1.000000e+00 : f32
    %330 = vector.broadcast %cst_102 : f32 to vector<8x128xf32>
    %331 = arith.subf %330, %324 : vector<8x128xf32>
    %332 = arith.mulf %331, %329 : vector<8x128xf32>
    %333 = arith.mulf %324, %304 : vector<8x128xf32>
    %334 = arith.addf %332, %333 : vector<8x128xf32>
    %c8_103 = arith.constant 8 : index
    %c0_104 = arith.constant 0 : index
    %335 = vector.load %arg15[%c8_103, %c0_104] : memref<64x128xf32, #tpu.memory_space<vmem>>, vector<8x128xf32>
    tpu.vector_store %arg15[%c8_103, %c0_104], %334 {strides = array<i32>} : memref<64x128xf32, #tpu.memory_space<vmem>>, vector<8x128xf32>,
    %c16_105 = arith.constant 16 : index
    %c0_106 = arith.constant 0 : index
    %336 = vector.load %arg16[%c16_105, %c0_106] : memref<64x384xf32, #tpu.memory_space<vmem>>, vector<8x384xf32>
    %cst_107 = arith.constant dense<0.000000e+00> : vector<8x384xf32>
    %337 = tpu.matmul %334, %270, %cst_107 {dimension_numbers = #tpu.dot_dimension_numbers<[1], [0], [0], [1], [0, 0, 1, 1], [], []>} : vector<8x128xf32>, vector<128x384xf32>, vector<8x384xf32> -> vector<8x384xf32>
    %338 = arith.addf %337, %273 : vector<8x384xf32>
    %339 = vector.extract_strided_slice %336 {offsets = [0, 0], sizes = [8, 128], strides = [1, 1]} : vector<8x384xf32> to vector<8x128xf32>
    %340 = vector.extract_strided_slice %338 {offsets = [0, 0], sizes = [8, 128], strides = [1, 1]} : vector<8x384xf32> to vector<8x128xf32>
    %341 = arith.addf %339, %340 : vector<8x128xf32>
    %342 = arith.negf %341 : vector<8x128xf32>
    %343 = math.exp %342 : vector<8x128xf32>
    %cst_108 = arith.constant 1.000000e+00 : f32
    %344 = vector.broadcast %cst_108 : f32 to vector<8x128xf32>
    %345 = arith.addf %344, %343 : vector<8x128xf32>
    %346 = arith.divf %344, %345 : vector<8x128xf32>
    %347 = vector.extract_strided_slice %336 {offsets = [0, 128], sizes = [8, 128], strides = [1, 1]} : vector<8x384xf32> to vector<8x128xf32>
    %348 = vector.extract_strided_slice %338 {offsets = [0, 128], sizes = [8, 128], strides = [1, 1]} : vector<8x384xf32> to vector<8x128xf32>
    %349 = arith.addf %347, %348 : vector<8x128xf32>
    %350 = arith.negf %349 : vector<8x128xf32>
    %351 = math.exp %350 : vector<8x128xf32>
    %cst_109 = arith.constant 1.000000e+00 : f32
    %352 = vector.broadcast %cst_109 : f32 to vector<8x128xf32>
    %353 = arith.addf %352, %351 : vector<8x128xf32>
    %354 = arith.divf %352, %353 : vector<8x128xf32>
    %355 = vector.extract_strided_slice %336 {offsets = [0, 256], sizes = [8, 128], strides = [1, 1]} : vector<8x384xf32> to vector<8x128xf32>
    %356 = vector.extract_strided_slice %338 {offsets = [0, 256], sizes = [8, 128], strides = [1, 1]} : vector<8x384xf32> to vector<8x128xf32>
    %357 = arith.mulf %346, %356 : vector<8x128xf32>
    %358 = arith.addf %355, %357 : vector<8x128xf32>
    %359 = math.tanh %358 : vector<8x128xf32>
    %cst_110 = arith.constant 1.000000e+00 : f32
    %360 = vector.broadcast %cst_110 : f32 to vector<8x128xf32>
    %361 = arith.subf %360, %354 : vector<8x128xf32>
    %362 = arith.mulf %361, %359 : vector<8x128xf32>
    %363 = arith.mulf %354, %334 : vector<8x128xf32>
    %364 = arith.addf %362, %363 : vector<8x128xf32>
    %c16_111 = arith.constant 16 : index
    %c0_112 = arith.constant 0 : index
    %365 = vector.load %arg15[%c16_111, %c0_112] : memref<64x128xf32, #tpu.memory_space<vmem>>, vector<8x128xf32>
    tpu.vector_store %arg15[%c16_111, %c0_112], %364 {strides = array<i32>} : memref<64x128xf32, #tpu.memory_space<vmem>>, vector<8x128xf32>,
    %c24_113 = arith.constant 24 : index
    %c0_114 = arith.constant 0 : index
    %366 = vector.load %arg16[%c24_113, %c0_114] : memref<64x384xf32, #tpu.memory_space<vmem>>, vector<8x384xf32>
    %cst_115 = arith.constant dense<0.000000e+00> : vector<8x384xf32>
    %367 = tpu.matmul %364, %270, %cst_115 {dimension_numbers = #tpu.dot_dimension_numbers<[1], [0], [0], [1], [0, 0, 1, 1], [], []>} : vector<8x128xf32>, vector<128x384xf32>, vector<8x384xf32> -> vector<8x384xf32>
    %368 = arith.addf %367, %273 : vector<8x384xf32>
    %369 = vector.extract_strided_slice %366 {offsets = [0, 0], sizes = [8, 128], strides = [1, 1]} : vector<8x384xf32> to vector<8x128xf32>
    %370 = vector.extract_strided_slice %368 {offsets = [0, 0], sizes = [8, 128], strides = [1, 1]} : vector<8x384xf32> to vector<8x128xf32>
    %371 = arith.addf %369, %370 : vector<8x128xf32>
    %372 = arith.negf %371 : vector<8x128xf32>
    %373 = math.exp %372 : vector<8x128xf32>
    %cst_116 = arith.constant 1.000000e+00 : f32
    %374 = vector.broadcast %cst_116 : f32 to vector<8x128xf32>
    %375 = arith.addf %374, %373 : vector<8x128xf32>
    %376 = arith.divf %374, %375 : vector<8x128xf32>
    %377 = vector.extract_strided_slice %366 {offsets = [0, 128], sizes = [8, 128], strides = [1, 1]} : vector<8x384xf32> to vector<8x128xf32>
    %378 = vector.extract_strided_slice %368 {offsets = [0, 128], sizes = [8, 128], strides = [1, 1]} : vector<8x384xf32> to vector<8x128xf32>
    %379 = arith.addf %377, %378 : vector<8x128xf32>
    %380 = arith.negf %379 : vector<8x128xf32>
    %381 = math.exp %380 : vector<8x128xf32>
    %cst_117 = arith.constant 1.000000e+00 : f32
    %382 = vector.broadcast %cst_117 : f32 to vector<8x128xf32>
    %383 = arith.addf %382, %381 : vector<8x128xf32>
    %384 = arith.divf %382, %383 : vector<8x128xf32>
    %385 = vector.extract_strided_slice %366 {offsets = [0, 256], sizes = [8, 128], strides = [1, 1]} : vector<8x384xf32> to vector<8x128xf32>
    %386 = vector.extract_strided_slice %368 {offsets = [0, 256], sizes = [8, 128], strides = [1, 1]} : vector<8x384xf32> to vector<8x128xf32>
    %387 = arith.mulf %376, %386 : vector<8x128xf32>
    %388 = arith.addf %385, %387 : vector<8x128xf32>
    %389 = math.tanh %388 : vector<8x128xf32>
    %cst_118 = arith.constant 1.000000e+00 : f32
    %390 = vector.broadcast %cst_118 : f32 to vector<8x128xf32>
    %391 = arith.subf %390, %384 : vector<8x128xf32>
    %392 = arith.mulf %391, %389 : vector<8x128xf32>
    %393 = arith.mulf %384, %364 : vector<8x128xf32>
    %394 = arith.addf %392, %393 : vector<8x128xf32>
    %c24_119 = arith.constant 24 : index
    %c0_120 = arith.constant 0 : index
    %395 = vector.load %arg15[%c24_119, %c0_120] : memref<64x128xf32, #tpu.memory_space<vmem>>, vector<8x128xf32>
    tpu.vector_store %arg15[%c24_119, %c0_120], %394 {strides = array<i32>} : memref<64x128xf32, #tpu.memory_space<vmem>>, vector<8x128xf32>,
    %c32_121 = arith.constant 32 : index
    %c0_122 = arith.constant 0 : index
    %396 = vector.load %arg16[%c32_121, %c0_122] : memref<64x384xf32, #tpu.memory_space<vmem>>, vector<8x384xf32>
    %cst_123 = arith.constant dense<0.000000e+00> : vector<8x384xf32>
    %397 = tpu.matmul %394, %270, %cst_123 {dimension_numbers = #tpu.dot_dimension_numbers<[1], [0], [0], [1], [0, 0, 1, 1], [], []>} : vector<8x128xf32>, vector<128x384xf32>, vector<8x384xf32> -> vector<8x384xf32>
    %398 = arith.addf %397, %273 : vector<8x384xf32>
    %399 = vector.extract_strided_slice %396 {offsets = [0, 0], sizes = [8, 128], strides = [1, 1]} : vector<8x384xf32> to vector<8x128xf32>
    %400 = vector.extract_strided_slice %398 {offsets = [0, 0], sizes = [8, 128], strides = [1, 1]} : vector<8x384xf32> to vector<8x128xf32>
    %401 = arith.addf %399, %400 : vector<8x128xf32>
    %402 = arith.negf %401 : vector<8x128xf32>
    %403 = math.exp %402 : vector<8x128xf32>
    %cst_124 = arith.constant 1.000000e+00 : f32
    %404 = vector.broadcast %cst_124 : f32 to vector<8x128xf32>
    %405 = arith.addf %404, %403 : vector<8x128xf32>
    %406 = arith.divf %404, %405 : vector<8x128xf32>
    %407 = vector.extract_strided_slice %396 {offsets = [0, 128], sizes = [8, 128], strides = [1, 1]} : vector<8x384xf32> to vector<8x128xf32>
    %408 = vector.extract_strided_slice %398 {offsets = [0, 128], sizes = [8, 128], strides = [1, 1]} : vector<8x384xf32> to vector<8x128xf32>
    %409 = arith.addf %407, %408 : vector<8x128xf32>
    %410 = arith.negf %409 : vector<8x128xf32>
    %411 = math.exp %410 : vector<8x128xf32>
    %cst_125 = arith.constant 1.000000e+00 : f32
    %412 = vector.broadcast %cst_125 : f32 to vector<8x128xf32>
    %413 = arith.addf %412, %411 : vector<8x128xf32>
    %414 = arith.divf %412, %413 : vector<8x128xf32>
    %415 = vector.extract_strided_slice %396 {offsets = [0, 256], sizes = [8, 128], strides = [1, 1]} : vector<8x384xf32> to vector<8x128xf32>
    %416 = vector.extract_strided_slice %398 {offsets = [0, 256], sizes = [8, 128], strides = [1, 1]} : vector<8x384xf32> to vector<8x128xf32>
    %417 = arith.mulf %406, %416 : vector<8x128xf32>
    %418 = arith.addf %415, %417 : vector<8x128xf32>
    %419 = math.tanh %418 : vector<8x128xf32>
    %cst_126 = arith.constant 1.000000e+00 : f32
    %420 = vector.broadcast %cst_126 : f32 to vector<8x128xf32>
    %421 = arith.subf %420, %414 : vector<8x128xf32>
    %422 = arith.mulf %421, %419 : vector<8x128xf32>
    %423 = arith.mulf %414, %394 : vector<8x128xf32>
    %424 = arith.addf %422, %423 : vector<8x128xf32>
    %c32_127 = arith.constant 32 : index
    %c0_128 = arith.constant 0 : index
    %425 = vector.load %arg15[%c32_127, %c0_128] : memref<64x128xf32, #tpu.memory_space<vmem>>, vector<8x128xf32>
    tpu.vector_store %arg15[%c32_127, %c0_128], %424 {strides = array<i32>} : memref<64x128xf32, #tpu.memory_space<vmem>>, vector<8x128xf32>,
    %c40_129 = arith.constant 40 : index
    %c0_130 = arith.constant 0 : index
    %426 = vector.load %arg16[%c40_129, %c0_130] : memref<64x384xf32, #tpu.memory_space<vmem>>, vector<8x384xf32>
    %cst_131 = arith.constant dense<0.000000e+00> : vector<8x384xf32>
    %427 = tpu.matmul %424, %270, %cst_131 {dimension_numbers = #tpu.dot_dimension_numbers<[1], [0], [0], [1], [0, 0, 1, 1], [], []>} : vector<8x128xf32>, vector<128x384xf32>, vector<8x384xf32> -> vector<8x384xf32>
    %428 = arith.addf %427, %273 : vector<8x384xf32>
    %429 = vector.extract_strided_slice %426 {offsets = [0, 0], sizes = [8, 128], strides = [1, 1]} : vector<8x384xf32> to vector<8x128xf32>
    %430 = vector.extract_strided_slice %428 {offsets = [0, 0], sizes = [8, 128], strides = [1, 1]} : vector<8x384xf32> to vector<8x128xf32>
    %431 = arith.addf %429, %430 : vector<8x128xf32>
    %432 = arith.negf %431 : vector<8x128xf32>
    %433 = math.exp %432 : vector<8x128xf32>
    %cst_132 = arith.constant 1.000000e+00 : f32
    %434 = vector.broadcast %cst_132 : f32 to vector<8x128xf32>
    %435 = arith.addf %434, %433 : vector<8x128xf32>
    %436 = arith.divf %434, %435 : vector<8x128xf32>
    %437 = vector.extract_strided_slice %426 {offsets = [0, 128], sizes = [8, 128], strides = [1, 1]} : vector<8x384xf32> to vector<8x128xf32>
    %438 = vector.extract_strided_slice %428 {offsets = [0, 128], sizes = [8, 128], strides = [1, 1]} : vector<8x384xf32> to vector<8x128xf32>
    %439 = arith.addf %437, %438 : vector<8x128xf32>
    %440 = arith.negf %439 : vector<8x128xf32>
    %441 = math.exp %440 : vector<8x128xf32>
    %cst_133 = arith.constant 1.000000e+00 : f32
    %442 = vector.broadcast %cst_133 : f32 to vector<8x128xf32>
    %443 = arith.addf %442, %441 : vector<8x128xf32>
    %444 = arith.divf %442, %443 : vector<8x128xf32>
    %445 = vector.extract_strided_slice %426 {offsets = [0, 256], sizes = [8, 128], strides = [1, 1]} : vector<8x384xf32> to vector<8x128xf32>
    %446 = vector.extract_strided_slice %428 {offsets = [0, 256], sizes = [8, 128], strides = [1, 1]} : vector<8x384xf32> to vector<8x128xf32>
    %447 = arith.mulf %436, %446 : vector<8x128xf32>
    %448 = arith.addf %445, %447 : vector<8x128xf32>
    %449 = math.tanh %448 : vector<8x128xf32>
    %cst_134 = arith.constant 1.000000e+00 : f32
    %450 = vector.broadcast %cst_134 : f32 to vector<8x128xf32>
    %451 = arith.subf %450, %444 : vector<8x128xf32>
    %452 = arith.mulf %451, %449 : vector<8x128xf32>
    %453 = arith.mulf %444, %424 : vector<8x128xf32>
    %454 = arith.addf %452, %453 : vector<8x128xf32>
    %c40_135 = arith.constant 40 : index
    %c0_136 = arith.constant 0 : index
    %455 = vector.load %arg15[%c40_135, %c0_136] : memref<64x128xf32, #tpu.memory_space<vmem>>, vector<8x128xf32>
    tpu.vector_store %arg15[%c40_135, %c0_136], %454 {strides = array<i32>} : memref<64x128xf32, #tpu.memory_space<vmem>>, vector<8x128xf32>,
    %c48_137 = arith.constant 48 : index
    %c0_138 = arith.constant 0 : index
    %456 = vector.load %arg16[%c48_137, %c0_138] : memref<64x384xf32, #tpu.memory_space<vmem>>, vector<8x384xf32>
    %cst_139 = arith.constant dense<0.000000e+00> : vector<8x384xf32>
    %457 = tpu.matmul %454, %270, %cst_139 {dimension_numbers = #tpu.dot_dimension_numbers<[1], [0], [0], [1], [0, 0, 1, 1], [], []>} : vector<8x128xf32>, vector<128x384xf32>, vector<8x384xf32> -> vector<8x384xf32>
    %458 = arith.addf %457, %273 : vector<8x384xf32>
    %459 = vector.extract_strided_slice %456 {offsets = [0, 0], sizes = [8, 128], strides = [1, 1]} : vector<8x384xf32> to vector<8x128xf32>
    %460 = vector.extract_strided_slice %458 {offsets = [0, 0], sizes = [8, 128], strides = [1, 1]} : vector<8x384xf32> to vector<8x128xf32>
    %461 = arith.addf %459, %460 : vector<8x128xf32>
    %462 = arith.negf %461 : vector<8x128xf32>
    %463 = math.exp %462 : vector<8x128xf32>
    %cst_140 = arith.constant 1.000000e+00 : f32
    %464 = vector.broadcast %cst_140 : f32 to vector<8x128xf32>
    %465 = arith.addf %464, %463 : vector<8x128xf32>
    %466 = arith.divf %464, %465 : vector<8x128xf32>
    %467 = vector.extract_strided_slice %456 {offsets = [0, 128], sizes = [8, 128], strides = [1, 1]} : vector<8x384xf32> to vector<8x128xf32>
    %468 = vector.extract_strided_slice %458 {offsets = [0, 128], sizes = [8, 128], strides = [1, 1]} : vector<8x384xf32> to vector<8x128xf32>
    %469 = arith.addf %467, %468 : vector<8x128xf32>
    %470 = arith.negf %469 : vector<8x128xf32>
    %471 = math.exp %470 : vector<8x128xf32>
    %cst_141 = arith.constant 1.000000e+00 : f32
    %472 = vector.broadcast %cst_141 : f32 to vector<8x128xf32>
    %473 = arith.addf %472, %471 : vector<8x128xf32>
    %474 = arith.divf %472, %473 : vector<8x128xf32>
    %475 = vector.extract_strided_slice %456 {offsets = [0, 256], sizes = [8, 128], strides = [1, 1]} : vector<8x384xf32> to vector<8x128xf32>
    %476 = vector.extract_strided_slice %458 {offsets = [0, 256], sizes = [8, 128], strides = [1, 1]} : vector<8x384xf32> to vector<8x128xf32>
    %477 = arith.mulf %466, %476 : vector<8x128xf32>
    %478 = arith.addf %475, %477 : vector<8x128xf32>
    %479 = math.tanh %478 : vector<8x128xf32>
    %cst_142 = arith.constant 1.000000e+00 : f32
    %480 = vector.broadcast %cst_142 : f32 to vector<8x128xf32>
    %481 = arith.subf %480, %474 : vector<8x128xf32>
    %482 = arith.mulf %481, %479 : vector<8x128xf32>
    %483 = arith.mulf %474, %454 : vector<8x128xf32>
    %484 = arith.addf %482, %483 : vector<8x128xf32>
    %c48_143 = arith.constant 48 : index
    %c0_144 = arith.constant 0 : index
    %485 = vector.load %arg15[%c48_143, %c0_144] : memref<64x128xf32, #tpu.memory_space<vmem>>, vector<8x128xf32>
    tpu.vector_store %arg15[%c48_143, %c0_144], %484 {strides = array<i32>} : memref<64x128xf32, #tpu.memory_space<vmem>>, vector<8x128xf32>,
    %c56_145 = arith.constant 56 : index
    %c0_146 = arith.constant 0 : index
    %486 = vector.load %arg16[%c56_145, %c0_146] : memref<64x384xf32, #tpu.memory_space<vmem>>, vector<8x384xf32>
    %cst_147 = arith.constant dense<0.000000e+00> : vector<8x384xf32>
    %487 = tpu.matmul %484, %270, %cst_147 {dimension_numbers = #tpu.dot_dimension_numbers<[1], [0], [0], [1], [0, 0, 1, 1], [], []>} : vector<8x128xf32>, vector<128x384xf32>, vector<8x384xf32> -> vector<8x384xf32>
    %488 = arith.addf %487, %273 : vector<8x384xf32>
    %489 = vector.extract_strided_slice %486 {offsets = [0, 0], sizes = [8, 128], strides = [1, 1]} : vector<8x384xf32> to vector<8x128xf32>
    %490 = vector.extract_strided_slice %488 {offsets = [0, 0], sizes = [8, 128], strides = [1, 1]} : vector<8x384xf32> to vector<8x128xf32>
    %491 = arith.addf %489, %490 : vector<8x128xf32>
    %492 = arith.negf %491 : vector<8x128xf32>
    %493 = math.exp %492 : vector<8x128xf32>
    %cst_148 = arith.constant 1.000000e+00 : f32
    %494 = vector.broadcast %cst_148 : f32 to vector<8x128xf32>
    %495 = arith.addf %494, %493 : vector<8x128xf32>
    %496 = arith.divf %494, %495 : vector<8x128xf32>
    %497 = vector.extract_strided_slice %486 {offsets = [0, 128], sizes = [8, 128], strides = [1, 1]} : vector<8x384xf32> to vector<8x128xf32>
    %498 = vector.extract_strided_slice %488 {offsets = [0, 128], sizes = [8, 128], strides = [1, 1]} : vector<8x384xf32> to vector<8x128xf32>
    %499 = arith.addf %497, %498 : vector<8x128xf32>
    %500 = arith.negf %499 : vector<8x128xf32>
    %501 = math.exp %500 : vector<8x128xf32>
    %cst_149 = arith.constant 1.000000e+00 : f32
    %502 = vector.broadcast %cst_149 : f32 to vector<8x128xf32>
    %503 = arith.addf %502, %501 : vector<8x128xf32>
    %504 = arith.divf %502, %503 : vector<8x128xf32>
    %505 = vector.extract_strided_slice %486 {offsets = [0, 256], sizes = [8, 128], strides = [1, 1]} : vector<8x384xf32> to vector<8x128xf32>
    %506 = vector.extract_strided_slice %488 {offsets = [0, 256], sizes = [8, 128], strides = [1, 1]} : vector<8x384xf32> to vector<8x128xf32>
    %507 = arith.mulf %496, %506 : vector<8x128xf32>
    %508 = arith.addf %505, %507 : vector<8x128xf32>
    %509 = math.tanh %508 : vector<8x128xf32>
    %cst_150 = arith.constant 1.000000e+00 : f32
    %510 = vector.broadcast %cst_150 : f32 to vector<8x128xf32>
    %511 = arith.subf %510, %504 : vector<8x128xf32>
    %512 = arith.mulf %511, %509 : vector<8x128xf32>
    %513 = arith.mulf %504, %484 : vector<8x128xf32>
    %514 = arith.addf %512, %513 : vector<8x128xf32>
    %c56_151 = arith.constant 56 : index
    %c0_152 = arith.constant 0 : index
    %515 = vector.load %arg15[%c56_151, %c0_152] : memref<64x128xf32, #tpu.memory_space<vmem>>, vector<8x128xf32>
    tpu.vector_store %arg15[%c56_151, %c0_152], %514 {strides = array<i32>} : memref<64x128xf32, #tpu.memory_space<vmem>>, vector<8x128xf32>,
    %c1_153 = arith.constant 1 : index
    %c0_154 = arith.constant 0 : index
    %c0_155 = arith.constant 0 : index
    %516 = vector.load %arg14[%c1_153, %c0_154, %c0_155] : memref<2x8x128xf32, #tpu.memory_space<vmem>>, vector<1x8x128xf32>
    %517 = vector.shape_cast %516 : vector<1x8x128xf32> to vector<8x128xf32>
    %518 = vector.shape_cast %514 : vector<8x128xf32> to vector<1x8x128xf32>
    tpu.vector_store %arg14[%c1_153, %c0_154, %c0_155], %518 {strides = array<i32>} : memref<2x8x128xf32, #tpu.memory_space<vmem>>, vector<1x8x128xf32>,
    %c0_156 = arith.constant 0 : index
    %c0_157 = arith.constant 0 : index
    %519 = vector.load %arg15[%c0_156, %c0_157] : memref<64x128xf32, #tpu.memory_space<vmem>>, vector<64x128xf32>
    %c0_158 = arith.constant 0 : index
    %c0_159 = arith.constant 0 : index
    %520 = vector.load %arg9[%c0_158, %c0_159] : memref<128x128xf32, #tpu.memory_space<vmem>>, vector<128x128xf32>
    %cst_160 = arith.constant dense<0.000000e+00> : vector<64x128xf32>
    %521 = tpu.matmul %519, %520, %cst_160 {dimension_numbers = #tpu.dot_dimension_numbers<[1], [0], [0], [1], [0, 0, 1, 1], [], []>} : vector<64x128xf32>, vector<128x128xf32>, vector<64x128xf32> -> vector<64x128xf32>
    %c0_161 = arith.constant 0 : index
    %c0_162 = arith.constant 0 : index
    %522 = vector.load %arg10[%c0_161, %c0_162] : memref<1x128xf32, #tpu.memory_space<vmem>>, vector<1x128xf32>
    %523 = vector.broadcast %522 : vector<1x128xf32> to vector<64x128xf32>
    %524 = arith.addf %521, %523 : vector<64x128xf32>
    %c0_163 = arith.constant 0 : index
    %c0_164 = arith.constant 0 : index
    %525 = vector.load %arg13[%c0_163, %c0_164] : memref<64x128xf32, #tpu.memory_space<vmem>>, vector<64x128xf32>
    tpu.vector_store %arg13[%c0_163, %c0_164], %524 {strides = array<i32>} : memref<64x128xf32, #tpu.memory_space<vmem>>, vector<64x128xf32>,
    %526 = vector.extract_strided_slice %524 {offsets = [56, 0], sizes = [8, 128], strides = [1, 1]} : vector<64x128xf32> to vector<8x128xf32>
    %527 = arith.negf %526 : vector<8x128xf32>
    %528 = math.exp %527 : vector<8x128xf32>
    %cst_165 = arith.constant 1.000000e+00 : f32
    %529 = vector.broadcast %cst_165 : f32 to vector<8x128xf32>
    %530 = arith.addf %529, %528 : vector<8x128xf32>
    %531 = arith.divf %529, %530 : vector<8x128xf32>
    %c0_166 = arith.constant 0 : index
    %c0_167 = arith.constant 0 : index
    %532 = vector.load %arg12[%c0_166, %c0_167] : memref<8x128xf32, #tpu.memory_space<vmem>>, vector<8x128xf32>
    tpu.vector_store %arg12[%c0_166, %c0_167], %531 {strides = array<i32>} : memref<8x128xf32, #tpu.memory_space<vmem>>, vector<8x128xf32>,
    return
  }
}

</mosaic_0001>

<bundles_post_ra>
// kernel: tpu_custom_call.1
= control target key start
LH: loop header
LB: loop body
LE: loop exit
PB: predicated region body
PF: predicated region fallthrough
CT: control target
= control target key end

     0   :  { %20 = vsyncpa [#allocation5], 0  ;;  %s5221_s0 = inlined_call_operand.hbm [shape: s32[8,8], index: 0, kind: input, shape index: {}]   ;;  %s5222_s1 = inlined_call_operand.hbm [shape: f32[128,384], index: 1, kind: input, shape index: {}]   ;;  %s5223_s2 = inlined_call_operand.hbm [shape: f32[1,384], index: 2, kind: input, shape index: {}]   ;;  %s5224_s3 = inlined_call_operand.hbm [shape: f32[128,384], index: 3, kind: input, shape index: {}]   ;;  %s5225_s4 = inlined_call_operand.vmem [shape: f32[1,384], index: 4, kind: input, shape index: {}]   ;;  %s5226_s5 = inlined_call_operand.hbm [shape: f32[128,384], index: 5, kind: input, shape index: {}]   ;;  %s5227_s6 = inlined_call_operand.hbm [shape: f32[1,384], index: 6, kind: input, shape index: {}]   ;;  %s5228_s7 = inlined_call_operand.hbm [shape: f32[128,384], index: 7, kind: input, shape index: {}]   ;;  %s5229_s8 = inlined_call_operand.vmem [shape: f32[1,384], index: 8, kind: input, shape index: {}]   ;;  %s5230_s9 = inlined_call_operand.hbm [shape: f32[128,128], index: 9, kind: input, shape index: {}]   ;;  %s5231_s10 = inlined_call_operand.vmem [shape: f32[1,128], index: 10, kind: input, shape index: {}]   ;;  %s5232_s11 = inlined_call_operand.hbm [shape: f32[2,8,128], index: 11, kind: input, shape index: {}]   ;;  %s5233_s12 = inlined_call_operand.hbm [shape: f32[8,128], index: 12, kind: output, shape index: {0}]   ;;  %s5234_s13 = inlined_call_operand.hbm [shape: f32[64,128], index: 13, kind: output, shape index: {1}]   ;;  %s5235_s14 = inlined_call_operand.hbm [shape: f32[2,8,128], index: 14, kind: output, shape index: {2}]  }
   0x1   :  { %21 = vsyncpa [#allocation8], 0 }
   0x2   :  { %22 = vsyncpa [#allocation11], 0 }
   0x3   :  { %23 = vsyncpa [#allocation14], 0 }
   0x4   :  { %24 = vsyncpa [#allocation17], 0 }
   0x5   :  { %25 = vsyncpa [#allocation6], 0  ;;  %s42_s15 = sshll.u32 %s5222_s1, 4  ;;  %s43_s15 = int_to_ptr.hbm [resolvable:$true] %s42_s15 }
   0x6   :  { %26 = vsyncpa [#allocation21], 0  ;;  %s3388_s16 = smov [#allocation7]   ;;  %s66_s20 = sshll.u32 %s5224_s3, 4  ;;  %s67_s20 = int_to_ptr.hbm [resolvable:$true] %s66_s20 }
   0x7   :  { %s44_s17 = sshll.u32 %s3388_s16, 4  ;;  %s3389_s21 = smov 384   ;;  %s45_s17 = int_to_ptr.vmem [resolvable:$true] %s44_s17 }
   0x8   :  { %s3390_s22 = smov 24   ;;  %s3391_s23 = smov [#allocation10]  }
   0x9   :  { %50 = dma.hbm_to_vmem [thread:$0]  %s43_s15, 6144, %s45_s17, [#allocation8], %s3389_s21, %s3389_s21, %s3390_s22  }
   0xa   :  { %s68_s24 = sshll.u32 %s3391_s23, 4  ;;  %s95_s26 = sshll.u32 %s5227_s6, 4  ;;  %s69_s24 = int_to_ptr.vmem [resolvable:$true] %s68_s24  ;;  %s96_s26 = int_to_ptr.hbm [resolvable:$true] %s95_s26 }
   0xb   :  { %74 = dma.hbm_to_vmem [thread:$0]  %s67_s20, 6144, %s69_s24, [#allocation11], %s3389_s21, %s3389_s21, %s3390_s22  }
   0xc   :  { %s120_s28 = sshll.u32 %s5230_s9, 4  ;;  %s3392_s29 = smov [#allocation13]   ;;  %s121_s28 = int_to_ptr.hbm [resolvable:$true] %s120_s28 }
   0xd   :  { %s97_s30 = sshll.u32 %s3392_s29, 4  ;;  %s3393_s15 = smov [#allocation16]   ;;  %s98_s30 = int_to_ptr.vmem [resolvable:$true] %s97_s30 }
   0xe   :  { %100 = dma.hbm_to_vmem [thread:$0]  %s96_s26, 48, %s98_s30, [#allocation14]  }
   0xf   :  { %s122_s16 = sshll.u32 %s3393_s15, 4  ;;  %s3394_s17 = smov 128   ;;  %s123_s16 = int_to_ptr.vmem [resolvable:$true] %s122_s16 }
  0x10   :  { %s3395_s6 = smov 8   ;;  %s32_s20 = sshll.u32 %s5221_s0, 4  ;;  %s33_s20 = int_to_ptr.hbm [resolvable:$true] %s32_s20 }
  0x11   :  { %128 = dma.hbm_to_vmem [thread:$0]  %s121_s28, 2048, %s123_s16, [#allocation17], %s3394_s17, %s3394_s17, %s3395_s6  }
  0x12   :  { %s3396_s9 = smov [#allocation4]   ;;  %s56_s1 = sshll.u32 %s5223_s2, 4  ;;  %s57_s1 = int_to_ptr.hbm [resolvable:$true] %s56_s1 }
  0x13   :  { %s34_s23 = sshll.u32 %s3396_s9, 4  ;;  %s3397_s26 = smov [#allocation9]   ;;  %s35_s23 = int_to_ptr.vmem [resolvable:$true] %s34_s23 }
  0x14   :  { %37 = dma.hbm_to_vmem [thread:$0]  %s33_s20, 128, %s35_s23, [#allocation5]  }
  0x15   :  { %s58_s3 = sshll.u32 %s3397_s26, 4  ;;  %s81_s28 = sshll.u32 %s5226_s5, 4  ;;  %s59_s3 = int_to_ptr.vmem [resolvable:$true] %s58_s3  ;;  %s82_s28 = int_to_ptr.hbm [resolvable:$true] %s81_s28 }
  0x16   :  { %61 = dma.hbm_to_vmem [thread:$0]  %s57_s1, 48, %s59_s3, [#allocation8]  }
  0x17   :  { %s105_s15 = sshll.u32 %s5228_s7, 4  ;;  %s3398_s16 = smov [#allocation12]   ;;  %s106_s15 = int_to_ptr.hbm [resolvable:$true] %s105_s15 }
  0x18   :  { %s83_s18 = sshll.u32 %s3398_s16, 4  ;;  %s3399_s2 = smov [#allocation15]   ;;  %s84_s18 = int_to_ptr.vmem [resolvable:$true] %s83_s18 }
  0x19   :  { %89 = dma.hbm_to_vmem [thread:$0]  %s82_s28, 6144, %s84_s18, [#allocation11], %s3389_s21, %s3389_s21, %s3390_s22  }
  0x1a   :  { %s107_s19 = sshll.u32 %s3399_s2, 4  ;;  %s135_s5 = sshll.u32 %s5232_s11, 4  ;;  %s108_s19 = int_to_ptr.vmem [resolvable:$true] %s107_s19  ;;  %s136_s5 = int_to_ptr.hbm [resolvable:$true] %s135_s5 }
  0x1b   :  { %113 = dma.hbm_to_vmem [thread:$0]  %s106_s15, 6144, %s108_s19, [#allocation14], %s3389_s21, %s3389_s21, %s3390_s22  }
  0x1c   :  { %s3400_s7 = smov [#allocation18]  }
  0x1d   :  { %s137_s23 = sshll.u32 %s3400_s7, 4  ;;  %s138_s23 = int_to_ptr.vmem [resolvable:$true] %s137_s23 }
  0x1e   :  { %143 = dma.hbm_to_vmem [thread:$0]  %s136_s5, 256, %s138_s23, [#allocation17], %s3394_s17, %s3394_s17, %s3395_s6  }
  0x1f   :  { %3374 = dma.done.wait [#allocation5], 128  }
  0x20   :  { %3375 = vsyncadd [#allocation5], 4294967168 }
  0x21   :  { %3376 = dma.done.wait [#allocation8], 6192  }
  0x22   :  { %3377 = vsyncadd [#allocation8], 4294961104 }
  0x23   :  { %3378 = dma.done.wait [#allocation11], 12288  }
  0x24   :  { %3379 = vsyncadd [#allocation11], 4294955008 }
  0x25   :  { %3380 = dma.done.wait [#allocation14], 6192  }
  0x26   :  { %3381 = vsyncadd [#allocation14], 4294961104 }
  0x27   :  { %3382 = dma.done.wait [#allocation17], 2304  }
  0x28   :  { %3383 = vsyncadd [#allocation17], 4294964992  ;;  %v181_v0 = vlaneseq  ;;  %v180_v2 = vld [vmem:[#allocation4] sm:$0xff]  ;;  %v3526_v3 = vld [vmem:[#allocation10 + $0x168] sm:$0xff]  ;;  %s2685_s3 = sshll.u32 %s5234_s13, 4  ;;  %s3403_s27 = smov [#allocation22]   ;;  %s2686_s3 = int_to_ptr.hbm [resolvable:$true] %s2685_s3 }
  0x29   :  { %v3528_v4 = vld [vmem:[#allocation10 + $0x150] sm:$0xff]  ;;  %v197_v5 = vperm.slane %v180_v2, 2  ;;  %v183_v6 = vperm.slane %v180_v2, 0  ;;  %526 = vmatpush.msra.mxu3 %v3526_v3  ;;  %v308_v7 = vld [vmem:[#allocation7 + $0x168] sm:$0xff]  ;;  %v204_v8 = vperm.slane %v180_v2, 3  ;;  %v3532_v10 = vld [vmem:[#allocation10 + $0x138] sm:$0xff] }
  0x2a   :  { %v185_v1 = vshrl.u32 %v181_v0, 7  ;;  %319 = vmatpush.msra.mxu1 %v308_v7  ;;  %v305_v9 = vld [vmem:[#allocation7 + $0x150] sm:$0xff]  ;;  %2789 = vmatpush.msra.mxu2 %v308_v7  ;;  %v302_v11 = vld [vmem:[#allocation7 + $0x138] sm:$0xff]  ;;  %v3534_v12 = vld [vmem:[#allocation10 + $0x120] sm:$0xff]  ;;  %v211_v16 = vperm.slane %v180_v2, 4  ;;  %v190_v17 = vperm.slane %v180_v2, 1 }
  0x2b   :  { %527 = vmatpush.msra.mxu3 %v3528_v4  ;;  %v299_v13 = vld [vmem:[#allocation7 + $0x120] sm:$0xff]  ;;  %v3537_v14 = vld [vmem:[#allocation10 + $0x108] sm:$0xff]  ;;  %v3540_v18 = vld [vmem:[#allocation10 + $0xf0] sm:$0xff]  ;;  %v218_v19 = vperm.slane %v180_v2, 5  ;;  %v232_v26 = vperm.slane %v180_v2, 7  ;;  %v225_v27 = vperm.slane %v180_v2, 6 }
  0x2c   :  { %2823 = vset.pattern.permute.xlu1 %v185_v1  ;;  %2822 = vset.pattern.permute.xlu0 %v185_v1  ;;  %v296_v15 = vld [vmem:[#allocation7 + $0x108] sm:$0xff]  ;;  %v3543_v20 = vld [vmem:[#allocation10 + $0xd8] sm:$0xff]  ;;  %v293_v21 = vld [vmem:[#allocation7 + $0xf0] sm:$0xff]  ;;  %s2696_s29 = sshll.u32 %s3403_s27, 4  ;;  %s2698_s30 = sshll.u32 %s5235_s14, 4  ;;  %s2697_s29 = int_to_ptr.vmem [resolvable:$true] %s2696_s29  ;;  %s2699_s30 = int_to_ptr.hbm [resolvable:$true] %s2698_s30 }
  0x2d   :  { %2824 = vset.pattern.permute.xlu2 %v185_v1  ;;  %320 = vmatpush.msra.mxu1 %v305_v9  ;;  %v3546_v22 = vld [vmem:[#allocation10 + $0xc0] sm:$0xff]  ;;  %v290_v23 = vld [vmem:[#allocation7 + $0xd8] sm:$0xff]  ;;  %v3549_v24 = vld [vmem:[#allocation10 + $0xa8] sm:$0xff]  ;;  %s3404_s13 = smov [#allocation19]   ;;  %s2675_s18 = sshll.u32 %s5233_s12, 4  ;;  %s2676_s18 = int_to_ptr.hbm [resolvable:$true] %s2675_s18 }
  0x2e   :  { %2790 = vmatpush.msra.mxu2 %v305_v9  ;;  %528 = vmatpush.msra.mxu3 %v3532_v10  ;;  %v287_v25 = vld [vmem:[#allocation7 + $0xc0] sm:$0xff]  ;;  %v3552_v28 = vld [vmem:[#allocation10 + $0x90] sm:$0xff]  ;;  %v284_v30 = vld [vmem:[#allocation7 + $0xa8] sm:$0xff]  ;;  %s2673_s14 = sshll.u32 %s3404_s13, 4  ;;  %s2674_s14 = int_to_ptr.vmem [resolvable:$true] %s2673_s14 }
  0x2f   :  { %321 = vmatpush.msra.mxu1 %v302_v11  ;;  %v3555_v29 = vld [vmem:[#allocation10 + $0x78] sm:$0xff]  ;;  %v3558_v31 = vld [vmem:[#allocation10 + $0x60] sm:$0xff]  ;;  %v281_v32 = vld [vmem:[#allocation7 + $0x90] sm:$0xff] }
  0x30   :  { %2791 = vmatpush.msra.mxu2 %v302_v11  ;;  %529 = vmatpush.msra.mxu3 %v3534_v12  ;;  %v3561_v33 = vld [vmem:[#allocation10 + $0x48] sm:$0xff]  ;;  %v278_v34 = vld [vmem:[#allocation7 + $0x78] sm:$0xff]  ;;  %v275_v36 = vld [vmem:[#allocation7 + $0x60] sm:$0xff] }
  0x31   :  { %322 = vmatpush.msra.mxu1 %v299_v13  ;;  %v3564_v35 = vld [vmem:[#allocation10 + $0x30] sm:$0xff]  ;;  %v3567_v37 = vld [vmem:[#allocation10 + $0x18] sm:$0xff]  ;;  %v272_v38 = vld [vmem:[#allocation7 + $0x48] sm:$0xff] }
  0x32   :  { %2792 = vmatpush.msra.mxu2 %v299_v13  ;;  %530 = vmatpush.msra.mxu3 %v3537_v14  ;;  %5295 = vst [vmem:[#allocation30_spill] sm:$0xff] %v3564_v35  ;;  %v3570_v39 = vld [vmem:[#allocation10] sm:$0xff]  ;;  %v269_v40 = vld [vmem:[#allocation7 + $0x30] sm:$0xff]  ;;  %v266_v43 = vld [vmem:[#allocation7 + $0x18] sm:$0xff] }
  0x33   :  { %323 = vmatpush.msra.mxu1 %v296_v15  ;;  %5296 = vst [vmem:[#allocation31_spill] sm:$0xff] %v3567_v37  ;;  %v3573_v41 = vld [vmem:[#allocation18] sm:$0xff]  ;;  %v3575_v42 = vld [vmem:[#allocation10 + $0x170] sm:$0xff]  ;;  %v3579_v44 = vld [vmem:[#allocation10 + $0x158] sm:$0xff] }
  0x34   :  { %202 = vperm.xlu1 %2823, %v197_v5   ;;  %188 = vperm.xlu0 %2822, %v183_v6   ;;  %5297 = vst [vmem:[#allocation32_spill] sm:$0xff] %v3570_v39  ;;  %v263_v45 = vld [vmem:[#allocation7] sm:$0xff]  ;;  %v309_v48 = vld [vmem:[#allocation7 + $0x170] sm:$0xff]  ;;  %v306_v51 = vld [vmem:[#allocation7 + $0x158] sm:$0xff] }
  0x35   :  { %209 = vperm.xlu2 %2824, %v204_v8   ;;  %2793 = vmatpush.msra.mxu2 %v296_v15  ;;  %v3583_v46 = vld [vmem:[#allocation10 + $0x140] sm:$0xff]  ;;  %v3585_v47 = vld [vmem:[#allocation10 + $0x178] sm:$0xff]  ;;  %v3589_v49 = vld [vmem:[#allocation10 + $0x128] sm:$0xff] }
  0x36   :  { %531 = vmatpush.msra.mxu3 %v3540_v18  ;;  %324 = vmatpush.msra.mxu1 %v293_v21  ;;  %v3591_v50 = vld [vmem:[#allocation10 + $0x160] sm:$0xff]  ;;  %v3594_v52 = vld [vmem:[#allocation10 + $0x110] sm:$0xff]  ;;  %v3596_v53 = vld [vmem:[#allocation10 + $0x148] sm:$0xff] }
  0x37   :  { %2794 = vmatpush.msra.mxu2 %v293_v21  ;;  %566 = vmatpush.msra.mxu0 %v3585_v47  ;;  %v303_v54 = vld [vmem:[#allocation7 + $0x140] sm:$0xff]  ;;  %v3602_v56 = vld [vmem:[#allocation10 + $0x130] sm:$0xff]  ;;  %v300_v57 = vld [vmem:[#allocation7 + $0x128] sm:$0xff] }
  0x38   :  { %532 = vmatpush.msra.mxu3 %v3543_v20  ;;  %325 = vmatpush.msra.mxu1 %v290_v23  ;;  %v3599_v55 = vld [vmem:[#allocation10 + $0xf8] sm:$0xff]  ;;  %v3607_v58 = vld [vmem:[#allocation10 + $0xe0] sm:$0xff]  ;;  %v297_v60 = vld [vmem:[#allocation7 + $0x110] sm:$0xff] }
  0x39   :  { %2795 = vmatpush.msra.mxu2 %v290_v23  ;;  %567 = vmatpush.msra.mxu0 %v3591_v50  ;;  %v3609_v59 = vld [vmem:[#allocation10 + $0x118] sm:$0xff]  ;;  %v3613_v62 = vld [vmem:[#allocation10 + $0xc8] sm:$0xff]  ;;  %v3615_v63 = vld [vmem:[#allocation10 + $0x100] sm:$0xff] }
  0x3a   :  { %533 = vmatpush.msra.mxu3 %v3546_v22  ;;  %326 = vmatpush.msra.mxu1 %v287_v25  ;;  %v310_v61 = vld [vmem:[#allocation7 + $0x178] sm:$0xff]  ;;  %v307_v2 = vld [vmem:[#allocation7 + $0x160] sm:$0xff]  ;;  %v3621_v6 = vld [vmem:[#allocation10 + $0xe8] sm:$0xff] }
  0x3b   :  { %2796 = vmatpush.msra.mxu2 %v287_v25  ;;  %568 = vmatpush.msra.mxu0 %v3596_v53  ;;  %v294_v1 = vld [vmem:[#allocation7 + $0xf8] sm:$0xff]  ;;  %v291_v7 = vld [vmem:[#allocation7 + $0xe0] sm:$0xff]  ;;  %v304_v8 = vld [vmem:[#allocation7 + $0x148] sm:$0xff] }
  0x3c   :  { %216 = vperm.xlu1 %2823, %v211_v16   ;;  %195 = vperm.xlu0 %2822, %v190_v17   ;;  %v3619_v5 = vld [vmem:[#allocation10 + $0xb0] sm:$0xff]  ;;  %v3623_v9 = vld [vmem:[#allocation10 + $0x98] sm:$0xff]  ;;  %v288_v13 = vld [vmem:[#allocation7 + $0xc8] sm:$0xff] }
  0x3d   :  { %223 = vperm.xlu2 %2824, %v218_v19   ;;  %534 = vmatpush.msra.mxu3 %v3549_v24  ;;  %v3625_v11 = vld [vmem:[#allocation10 + $0xd0] sm:$0xff]  ;;  %v3631_v16 = vld [vmem:[#allocation10 + $0x80] sm:$0xff]  ;;  %v3633_v17 = vld [vmem:[#allocation10 + $0xb8] sm:$0xff] }
  0x3e   :  { %327 = vmatpush.msra.mxu1 %v284_v30  ;;  %2797 = vmatpush.msra.mxu2 %v284_v30  ;;  %v301_v15 = vld [vmem:[#allocation7 + $0x130] sm:$0xff]  ;;  %v298_v21 = vld [vmem:[#allocation7 + $0x118] sm:$0xff]  ;;  %v3639_v25 = vld [vmem:[#allocation10 + $0xa0] sm:$0xff] }
  0x3f   :  { %535 = vmatpush.msra.mxu3 %v3552_v28  ;;  %569 = vmatpush.msra.mxu0 %v3602_v56  ;;  %v285_v19 = vld [vmem:[#allocation7 + $0xb0] sm:$0xff] }
  0x40   :  { %328 = vmatpush.msra.mxu1 %v281_v32  ;;  %2798 = vmatpush.msra.mxu2 %v281_v32  ;;  %v3637_v23 = vld [vmem:[#allocation10 + $0x68] sm:$0xff]  ;;  %v3643_v30 = vld [vmem:[#allocation10 + $0x50] sm:$0xff] }
  0x41   :  { %536 = vmatpush.msra.mxu3 %v3555_v29  ;;  %570 = vmatpush.msra.mxu0 %v3609_v59  ;;  %v3645_v32 = vld [vmem:[#allocation10 + $0x88] sm:$0xff] }
  0x42   :  { %329 = vmatpush.msra.mxu1 %v278_v34  ;;  %2799 = vmatpush.msra.mxu2 %v278_v34  ;;  %v279_v34 = vld [vmem:[#allocation7 + $0x80] sm:$0xff] }
  0x43   :  { %537 = vmatpush.msra.mxu3 %v3558_v31  ;;  %571 = vmatpush.msra.mxu0 %v3615_v63 }
  0x44   :  { %237 = vperm.xlu1 %2823, %v232_v26   ;;  %230 = vperm.xlu0 %2822, %v225_v27   ;;  %v282_v26 = vld [vmem:[#allocation7 + $0x98] sm:$0xff]  ;;  %v295_v27 = vld [vmem:[#allocation7 + $0x100] sm:$0xff] }
  0x45   :  { %538 = vmatpush.msra.mxu3 %v3561_v33  ;;  %330 = vmatpush.msra.mxu1 %v275_v36 }
  0x46   :  { %2800 = vmatpush.msra.mxu2 %v275_v36  ;;  %572 = vmatpush.msra.mxu0 %v3621_v6  ;;  %v292_v36 = vld [vmem:[#allocation7 + $0xe8] sm:$0xff] }
  0x47   :  { %539 = vmatpush.msra.mxu3 %v3564_v35  ;;  %331 = vmatpush.msra.mxu1 %v272_v38 }
  0x48   :  { %2801 = vmatpush.msra.mxu2 %v272_v38  ;;  %573 = vmatpush.msra.mxu0 %v3625_v11  ;;  %v3647_v38 = vld [vmem:[#allocation10 + $0x38] sm:$0xff] }
  0x49   :  { %540 = vmatpush.msra.mxu3 %v3567_v37  ;;  %332 = vmatpush.msra.mxu1 %v269_v40  ;;  %5298 = vst [vmem:[#allocation33_spill] sm:$0xff] %v3647_v38 }
  0x4a   :  { %2802 = vmatpush.msra.mxu2 %v269_v40  ;;  %574 = vmatpush.msra.mxu0 %v3633_v17  ;;  %v3649_v40 = vld [vmem:[#allocation10 + $0x70] sm:$0xff] }
  0x4b   :  { %541 = vmatpush.msra.mxu3 %v3570_v39  ;;  %333 = vmatpush.msra.mxu1 %v266_v43 }
  0x4c   :  { %542 = vmatmul.f32.vlgmr.msra.gmra.mxu3 %v3573_v41  ;;  %2803 = vmatpush.msra.mxu2 %v266_v43  ;;  %v276_v43 = vld [vmem:[#allocation7 + $0x68] sm:$0xff] }
  0x4d   :  { %546 = vmatpush.msrb.mxu3 %v3575_v42  ;;  %334 = vmatpush.msra.mxu1 %v263_v45 }
  0x4e   :  { %2804 = vmatpush.msra.mxu2 %v263_v45  ;;  %575 = vmatpush.msra.mxu0 %v3639_v25  ;;  %v289_v45 = vld [vmem:[#allocation7 + $0xd0] sm:$0xff] }
  0x4f   :  { %547 = vmatpush.msrb.mxu3 %v3579_v44  ;;  %360 = vmatpush.msrb.mxu1 %v309_v48  ;;  %v3653_v48 = vld [vmem:[#allocation10 + $0x20] sm:$0xff] }
  0x50   :  { %401 = vmatpush.msrb.mxu2 %v310_v61  ;;  %576 = vmatpush.msra.mxu0 %v3645_v32  ;;  %5299 = vst [vmem:[#allocation34_spill] sm:$0xff] %v3653_v48  ;;  %v3663_v61 = vld [vmem:[#allocation10 + $0x40] sm:$0xff] }
  0x51   :  { %548 = vmatpush.msrb.mxu3 %v3583_v46  ;;  %361 = vmatpush.msrb.mxu1 %v306_v51  ;;  %v3655_v51 = vld [vmem:[#allocation10 + $0x58] sm:$0xff] }
  0x52   :  { %402 = vmatpush.msrb.mxu2 %v307_v2  ;;  %577 = vmatpush.msra.mxu0 %v3649_v40  ;;  %v283_v2 = vld [vmem:[#allocation7 + $0xa0] sm:$0xff] }
  0x53   :  { %549 = vmatpush.msrb.mxu3 %v3589_v49  ;;  %362 = vmatpush.msrb.mxu1 %v303_v54  ;;  %v273_v54 = vld [vmem:[#allocation7 + $0x50] sm:$0xff] }
  0x54   :  { %403 = vmatpush.msrb.mxu2 %v304_v8  ;;  %578 = vmatpush.msra.mxu0 %v3655_v51  ;;  %v267_v8 = vld [vmem:[#allocation7 + $0x20] sm:$0xff] }
  0x55   :  { %550 = vmatpush.msrb.mxu3 %v3594_v52  ;;  %363 = vmatpush.msrb.mxu1 %v300_v57  ;;  %v286_v57 = vld [vmem:[#allocation7 + $0xb8] sm:$0xff] }
  0x56   :  { %404 = vmatpush.msrb.mxu2 %v301_v15  ;;  %579 = vmatpush.msra.mxu0 %v3663_v61  ;;  %v280_v15 = vld [vmem:[#allocation7 + $0x88] sm:$0xff] }
  0x57   :  { %551 = vmatpush.msrb.mxu3 %v3599_v55  ;;  %364 = vmatpush.msrb.mxu1 %v297_v60  ;;  %v3661_v60 = vld [vmem:[#allocation10 + $0x8] sm:$0xff] }
  0x58   :  { %405 = vmatpush.msrb.mxu2 %v298_v21  ;;  %5300 = vst [vmem:[#allocation35_spill] sm:$0xff] %v3661_v60  ;;  %v264_v21 = vld [vmem:[#allocation7 + $0x8] sm:$0xff] }
  0x59   :  { %552 = vmatpush.msrb.mxu3 %v3607_v58  ;;  %365 = vmatpush.msrb.mxu1 %v294_v1  ;;  %v270_v1 = vld [vmem:[#allocation7 + $0x38] sm:$0xff] }
  0x5a   :  { %406 = vmatpush.msrb.mxu2 %v295_v27 }
  0x5b   :  { %553 = vmatpush.msrb.mxu3 %v3613_v62  ;;  %366 = vmatpush.msrb.mxu1 %v291_v7  ;;  %v3667_v7 = vld [vmem:[#allocation10 + $0x28] sm:$0xff] }
  0x5c   :  { %407 = vmatpush.msrb.mxu2 %v292_v36  ;;  %5301 = vst [vmem:[#allocation36_spill] sm:$0xff] %v3667_v7  ;;  %580 = vmatpush.msra.mxu0 %v3667_v7 }
  0x5d   :  { %554 = vmatpush.msrb.mxu3 %v3619_v5  ;;  %367 = vmatpush.msrb.mxu1 %v288_v13  ;;  %v3670_v13 = vand.u32 127, %v181_v0  ;;  %v3401_v0 = vmov 1.0  }
  0x5e   :  { %408 = vmatpush.msrb.mxu2 %v289_v45  ;;  %v271_v45 = vld [vmem:[#allocation7 + $0x40] sm:$0xff] }
  0x5f   :  { %555 = vmatpush.msrb.mxu3 %v3623_v9  ;;  %368 = vmatpush.msrb.mxu1 %v285_v19  ;;  %v3673_v19 = vld [vmem:[#allocation10 + $0x10] sm:$0xff] }
  0x60   :  { %409 = vmatpush.msrb.mxu2 %v286_v57  ;;  %5302 = vst [vmem:[#allocation37_spill] sm:$0xff] %v3673_v19  ;;  %581 = vmatpush.msra.mxu0 %v3673_v19 }
  0x61   :  { %556 = vmatpush.msrb.mxu3 %v3631_v16  ;;  %369 = vmatpush.msrb.mxu1 %v282_v26  ;;  %v277_v26 = vld [vmem:[#allocation7 + $0x70] sm:$0xff] }
  0x62   :  { %410 = vmatpush.msrb.mxu2 %v283_v2  ;;  %582 = vmatmul.f32.vlgmr.msra.gmra.mxu0 %v3573_v41  ;;  %v265_v2 = vld [vmem:[#allocation7 + $0x10] sm:$0xff] }
  0x63   :  { %557 = vmatpush.msrb.mxu3 %v3637_v23  ;;  %370 = vmatpush.msrb.mxu1 %v279_v34 }
  0x64   :  { %411 = vmatpush.msrb.mxu2 %v280_v15  ;;  %748 = vmatpush.msrb.mxu0 %v3526_v3 }
  0x65   :  { %558 = vmatpush.msrb.mxu3 %v3643_v30  ;;  %371 = vmatpush.msrb.mxu1 %v276_v43  ;;  %v274_v43 = vld [vmem:[#allocation7 + $0x58] sm:$0xff] }
  0x66   :  { %412 = vmatpush.msrb.mxu2 %v277_v26  ;;  %749 = vmatpush.msrb.mxu0 %v3528_v4  ;;  %v514_v26 = vld [vmem:[%s5225_s4] sm:$0x7] }
  0x67   :  { %559 = vmatpush.msrb.mxu3 %v3647_v38  ;;  %372 = vmatpush.msrb.mxu1 %v273_v54  ;;  %v268_v54 = vld [vmem:[#allocation7 + $0x28] sm:$0xff] }
  0x68   :  { %413 = vmatpush.msrb.mxu2 %v274_v43  ;;  %750 = vmatpush.msrb.mxu0 %v3532_v10 }
  0x69   :  { %560 = vmatpush.msrb.mxu3 %v3653_v48  ;;  %373 = vmatpush.msrb.mxu1 %v270_v1 }
  0x6a   :  { %414 = vmatpush.msrb.mxu2 %v271_v45  ;;  %751 = vmatpush.msrb.mxu0 %v3534_v12 }
  0x6b   :  { %561 = vmatpush.msrb.mxu3 %v3661_v60  ;;  %374 = vmatpush.msrb.mxu1 %v267_v8 }
  0x6c   :  { %562 = vmatmul.f32.vlgmr.msrb.gmra.mxu3 %v3573_v41  ;;  %415 = vmatpush.msrb.mxu2 %v268_v54 }
  0x6d   :  { %677 = vmatpush.msra.mxu3 %v3585_v47  ;;  %375 = vmatpush.msrb.mxu1 %v264_v21 }
  0x6e   :  { %416 = vmatpush.msrb.mxu2 %v265_v2  ;;  %752 = vmatpush.msrb.mxu0 %v3537_v14 }
  0x6f   :  { %678 = vmatpush.msra.mxu3 %v3591_v50 }
  0x70   :  { %753 = vmatpush.msrb.mxu0 %v3540_v18 }
  0x71   :  { %679 = vmatpush.msra.mxu3 %v3596_v53 }
  0x72   :  { %754 = vmatpush.msrb.mxu0 %v3543_v20 }
  0x73   :  { %680 = vmatpush.msra.mxu3 %v3602_v56 }
  0x74   :  { %755 = vmatpush.msrb.mxu0 %v3546_v22 }
  0x75   :  { %681 = vmatpush.msra.mxu3 %v3609_v59 }
  0x76   :  { %756 = vmatpush.msrb.mxu0 %v3549_v24 }
  0x77   :  { %682 = vmatpush.msra.mxu3 %v3615_v63 }
  0x78   :  { %757 = vmatpush.msrb.mxu0 %v3552_v28 }
  0x79   :  { %683 = vmatpush.msra.mxu3 %v3621_v6 }
  0x7a   :  { %758 = vmatpush.msrb.mxu0 %v3555_v29 }
  0x7b   :  { %684 = vmatpush.msra.mxu3 %v3625_v11 }
  0x7c   :  { %759 = vmatpush.msrb.mxu0 %v3558_v31 }
  0x7d   :  { %685 = vmatpush.msra.mxu3 %v3633_v17 }
  0x7e   :  { %760 = vmatpush.msrb.mxu0 %v3561_v33 }
  0x7f   :  { %686 = vmatpush.msra.mxu3 %v3639_v25 }
  0x80   :  { %761 = vmatpush.msrb.mxu0 %v3564_v35 }
  0x81   :  { %687 = vmatpush.msra.mxu3 %v3645_v32 }
  0x82   :  { %762 = vmatpush.msrb.mxu0 %v3567_v37 }
  0x83   :  { %688 = vmatpush.msra.mxu3 %v3649_v40 }
  0x84   :  { %763 = vmatpush.msrb.mxu0 %v3570_v39 }
  0x85   :  { %689 = vmatpush.msra.mxu3 %v3655_v51 }
  0x86   :  { %879 = vmatpush.msra.mxu0 %v3575_v42 }
  0x87   :  { %690 = vmatpush.msra.mxu3 %v3663_v61 }
  0x88   :  { %880 = vmatpush.msra.mxu0 %v3579_v44 }
  0x89   :  { %691 = vmatpush.msra.mxu3 %v3667_v7 }
  0x8a   :  { %881 = vmatpush.msra.mxu0 %v3583_v46 }
  0x8b   :  { %692 = vmatpush.msra.mxu3 %v3673_v19 }
  0x8c   :  { %882 = vmatpush.msra.mxu0 %v3589_v49 }
  0x8d   :  { %859 = vmatpush.msrb.mxu3 %v3526_v3 }
  0x8e   :  { %883 = vmatpush.msra.mxu0 %v3594_v52 }
  0x8f   :  { %v3689_v36 = vpop.permute.xlu2 %209  ;;  %860 = vmatpush.msrb.mxu3 %v3528_v4 }
  0x90   :  { %vm242_vm5 = vcmp.eq.s32.totalorder %v3689_v36, %v3670_v13  ;;  %884 = vmatpush.msra.mxu0 %v3599_v55 }
  0x91   :  { %861 = vmatpush.msrb.mxu3 %v3532_v10 }
  0x92   :  { %885 = vmatpush.msra.mxu0 %v3607_v58 }
  0x93   :  { %862 = vmatpush.msrb.mxu3 %v3534_v12 }
  0x94   :  { %886 = vmatpush.msra.mxu0 %v3613_v62 }
  0x95   :  { %863 = vmatpush.msrb.mxu3 %v3537_v14 }
  0x96   :  { %887 = vmatpush.msra.mxu0 %v3619_v5 }
  0x97   :  { %v3719_v8 = vpop.permute.xlu2 %223  ;;  %864 = vmatpush.msrb.mxu3 %v3540_v18 }
  0x98   :  { %vm244_vm3 = vcmp.eq.s32.totalorder %v3719_v8, %v3670_v13  ;;  %888 = vmatpush.msra.mxu0 %v3623_v9 }
  0x99   :  { %865 = vmatpush.msrb.mxu3 %v3543_v20 }
  0x9a   :  { %889 = vmatpush.msra.mxu0 %v3631_v16 }
  0x9b   :  { %866 = vmatpush.msrb.mxu3 %v3546_v22 }
  0x9c   :  { %890 = vmatpush.msra.mxu0 %v3637_v23 }
  0x9d   :  { %867 = vmatpush.msrb.mxu3 %v3549_v24 }
  0x9e   :  { %891 = vmatpush.msra.mxu0 %v3643_v30 }
  0x9f   :  { %868 = vmatpush.msrb.mxu3 %v3552_v28 }
  0xa0   :  { %892 = vmatpush.msra.mxu0 %v3647_v38 }
  0xa1   :  { %869 = vmatpush.msrb.mxu3 %v3555_v29 }
  0xa2   :  { %893 = vmatpush.msra.mxu0 %v3653_v48 }
  0xa3   :  { %870 = vmatpush.msrb.mxu3 %v3558_v31 }
  0xa4   :  { %894 = vmatpush.msra.mxu0 %v3661_v60 }
  0xa5   :  { %871 = vmatpush.msrb.mxu3 %v3561_v33 }
  0xa6   :  { %v3677_v27 = vpop.permute.xlu1 %202  ;;  %v3679_v34 = vpop.permute.xlu0 %188 }
  0xa7   :  { %vm239_vm0 = vcmp.eq.s32.totalorder %v3679_v34, %v3670_v13  ;;  %vm241_vm4 = vcmp.eq.s32.totalorder %v3677_v27, %v3670_v13  ;;  %872 = vmatpush.msrb.mxu3 %v3564_v35  ;;  %v311_v27 = vld [vmem:[#allocation9] sm:$0x7]  ;;  %v3937_v34 = vperm.slane %v514_v26, 0 }
  0xa8   :  { %2732 = vmatmul.msk.f32.vlgmr.msra.gmra.mxu1 %vm239_vm0, %v3401_v0  ;;  %v3939_v43 = vperm.slane %v311_v27, 0 }
  0xa9   :  { %637 = vmatpush.msra.mxu1 %v3526_v3  ;;  %873 = vmatpush.msrb.mxu3 %v3567_v37  ;;  %5303 = vst [vmem:[#allocation38_spill] sm:$0xff] %v3937_v34 }
  0xaa   :  { %5304 = vst [vmem:[#allocation39_spill] sm:$0xff] %v3939_v43 }
  0xab   :  { %638 = vmatpush.msra.mxu1 %v3528_v4  ;;  %874 = vmatpush.msrb.mxu3 %v3570_v39 }
  0xad   :  { %639 = vmatpush.msra.mxu1 %v3532_v10 }
  0xae   :  { %v3699_v57 = vpop.permute.xlu1 %216  ;;  %v3701_v1 = vpop.permute.xlu0 %195 }
  0xaf   :  { %vm243_vm1 = vcmp.eq.s32.totalorder %v3699_v57, %v3670_v13  ;;  %vm240_vm2 = vcmp.eq.s32.totalorder %v3701_v1, %v3670_v13  ;;  %640 = vmatpush.msra.mxu1 %v3534_v12 }
  0xb0   :  { %2733 = vmatmul.msk.f32.gmra.mxu1 %vm240_vm2, %v3401_v0  ;;  %2736 = vmatmul.msk.f32.vlgmr.msra.gmra.mxu2 %vm243_vm1, %v3401_v0 }
  0xb1   :  { %641 = vmatpush.msra.mxu1 %v3537_v14  ;;  %657 = vmatpush.msra.mxu2 %v3575_v42 }
  0xb3   :  { %642 = vmatpush.msra.mxu1 %v3540_v18  ;;  %658 = vmatpush.msra.mxu2 %v3579_v44 }
  0xb5   :  { %643 = vmatpush.msra.mxu1 %v3543_v20  ;;  %659 = vmatpush.msra.mxu2 %v3583_v46 }
  0xb6   :  { %v3751_v15 = vpop.permute.xlu0 %230  ;;  %v3779_v21 = vpop.permute.xlu1 %237 }
  0xb7   :  { %644 = vmatpush.msra.mxu1 %v3546_v22  ;;  %660 = vmatpush.msra.mxu2 %v3589_v49  ;;  %vm245_vm6 = vcmp.eq.s32.totalorder %v3751_v15, %v3670_v13  ;;  %vm246_vm7 = vcmp.eq.s32.totalorder %v3779_v21, %v3670_v13 }
  0xb8   :  { %2734 = vmatmul.msk.f32.gmra.mxu1 %vm241_vm4, %v3401_v0  ;;  %2737 = vmatmul.msk.f32.gmra.mxu2 %vm244_vm3, %v3401_v0 }
  0xb9   :  { %645 = vmatpush.msra.mxu1 %v3549_v24  ;;  %661 = vmatpush.msra.mxu2 %v3594_v52 }
  0xbb   :  { %646 = vmatpush.msra.mxu1 %v3552_v28  ;;  %662 = vmatpush.msra.mxu2 %v3599_v55 }
  0xbd   :  { %647 = vmatpush.msra.mxu1 %v3555_v29  ;;  %663 = vmatpush.msra.mxu2 %v3607_v58 }
  0xbf   :  { %648 = vmatpush.msra.mxu1 %v3558_v31  ;;  %664 = vmatpush.msra.mxu2 %v3613_v62 }
  0xc0   :  { %2735 = vmatmul.msk.f32.gmra.mxu1 %vm242_vm5, %v3401_v0  ;;  %2738 = vmatmul.msk.f32.gmra.mxu2 %vm245_vm6, %v3401_v0 }
  0xc1   :  { %649 = vmatpush.msra.mxu1 %v3561_v33  ;;  %665 = vmatpush.msra.mxu2 %v3619_v5 }
  0xc3   :  { %650 = vmatpush.msra.mxu1 %v3564_v35  ;;  %666 = vmatpush.msra.mxu2 %v3623_v9 }
  0xc5   :  { %651 = vmatpush.msra.mxu1 %v3567_v37  ;;  %667 = vmatpush.msra.mxu2 %v3631_v16 }
  0xc7   :  { %652 = vmatpush.msra.mxu1 %v3570_v39  ;;  %668 = vmatpush.msra.mxu2 %v3637_v23 }
  0xc8   :  { %2739 = vmatmul.msk.f32.gmra.mxu2 %vm246_vm7, %v3401_v0  ;;  %2740 = vmatmul.msk.f32.vlgmr.msrb.gmra.mxu1 %vm239_vm0, %v3401_v0 }
  0xc9   :  { %768 = vmatpush.msrb.mxu1 %v3575_v42  ;;  %669 = vmatpush.msra.mxu2 %v3643_v30 }
  0xcb   :  { %769 = vmatpush.msrb.mxu1 %v3579_v44  ;;  %670 = vmatpush.msra.mxu2 %v3647_v38 }
  0xcd   :  { %770 = vmatpush.msrb.mxu1 %v3583_v46  ;;  %671 = vmatpush.msra.mxu2 %v3653_v48 }
  0xcf   :  { %672 = vmatpush.msra.mxu2 %v3661_v60  ;;  %771 = vmatpush.msrb.mxu1 %v3589_v49  ;;  %v543_v36 = vpop.f32.mrf.mxu3 }
  0xd0   :  { %2741 = vmatmul.msk.f32.gmra.mxu1 %vm240_vm2, %v3401_v0  ;;  %2748 = vmatmul.msk.f32.vlgmr.msrb.gmra.mxu2 %vm239_vm0, %v3401_v0  ;;  %v544_v45 = vadd.f32 %v543_v36, %v3937_v34 }
  0xd1   :  { %788 = vmatpush.msrb.mxu2 %v3585_v47  ;;  %772 = vmatpush.msrb.mxu1 %v3594_v52 }
  0xd3   :  { %789 = vmatpush.msrb.mxu2 %v3591_v50  ;;  %773 = vmatpush.msrb.mxu1 %v3599_v55 }
  0xd5   :  { %790 = vmatpush.msrb.mxu2 %v3596_v53  ;;  %774 = vmatpush.msrb.mxu1 %v3607_v58 }
  0xd7   :  { %791 = vmatpush.msrb.mxu2 %v3602_v56  ;;  %775 = vmatpush.msrb.mxu1 %v3613_v62 }
  0xd8   :  { %2742 = vmatmul.msk.f32.gmra.mxu1 %vm241_vm4, %v3401_v0  ;;  %2749 = vmatmul.msk.f32.gmra.mxu2 %vm240_vm2, %v3401_v0 }
  0xd9   :  { %792 = vmatpush.msrb.mxu2 %v3609_v59  ;;  %776 = vmatpush.msrb.mxu1 %v3619_v5 }
  0xdb   :  { %793 = vmatpush.msrb.mxu2 %v3615_v63  ;;  %777 = vmatpush.msrb.mxu1 %v3623_v9 }
  0xdd   :  { %794 = vmatpush.msrb.mxu2 %v3621_v6  ;;  %778 = vmatpush.msrb.mxu1 %v3631_v16 }
  0xdf   :  { %795 = vmatpush.msrb.mxu2 %v3625_v11  ;;  %779 = vmatpush.msrb.mxu1 %v3637_v23 }
  0xe0   :  { %2743 = vmatmul.msk.f32.gmra.mxu1 %vm242_vm5, %v3401_v0  ;;  %2750 = vmatmul.msk.f32.gmra.mxu2 %vm241_vm4, %v3401_v0 }
  0xe1   :  { %796 = vmatpush.msrb.mxu2 %v3633_v17  ;;  %780 = vmatpush.msrb.mxu1 %v3643_v30 }
  0xe3   :  { %797 = vmatpush.msrb.mxu2 %v3639_v25  ;;  %781 = vmatpush.msrb.mxu1 %v3647_v38 }
  0xe5   :  { %798 = vmatpush.msrb.mxu2 %v3645_v32  ;;  %782 = vmatpush.msrb.mxu1 %v3653_v48 }
  0xe7   :  { %799 = vmatpush.msrb.mxu2 %v3649_v40  ;;  %783 = vmatpush.msrb.mxu1 %v3661_v60 }
  0xe8   :  { %2744 = vmatmul.msk.f32.gmra.mxu1 %vm243_vm1, %v3401_v0  ;;  %2751 = vmatmul.msk.f32.gmra.mxu2 %vm242_vm5, %v3401_v0 }
  0xe9   :  { %800 = vmatpush.msrb.mxu2 %v3655_v51 }
  0xeb   :  { %801 = vmatpush.msrb.mxu2 %v3663_v61 }
  0xed   :  { %802 = vmatpush.msrb.mxu2 %v3667_v7 }
  0xef   :  { %803 = vmatpush.msrb.mxu2 %v3673_v19 }
  0xf0   :  { %2745 = vmatmul.msk.f32.gmra.mxu1 %vm244_vm3, %v3401_v0  ;;  %2752 = vmatmul.msk.f32.gmra.mxu2 %vm243_vm1, %v3401_v0 }
  0xf8   :  { %2746 = vmatmul.msk.f32.gmra.mxu1 %vm245_vm6, %v3401_v0  ;;  %2753 = vmatmul.msk.f32.gmra.mxu2 %vm244_vm3, %v3401_v0 }
 0x100   :  { %2747 = vmatmul.msk.f32.gmra.mxu1 %vm246_vm7, %v3401_v0  ;;  %2754 = vmatmul.msk.f32.gmra.mxu2 %vm245_vm6, %v3401_v0 }
 0x108   :  { %2755 = vmatmul.msk.f32.gmra.mxu2 %vm246_vm7, %v3401_v0 }
 0x125   :  { %v336_v54 = vpop.f32.mrf.mxu1 }
 0x126   :  { %v337_v57 = vadd.f32 %v336_v54, %v3939_v43  ;;  %v3956_v54 = vperm.slane %v514_v26, 1 }
 0x128   :  { %v586_v1 = vadd.f32 %v544_v45, %v337_v57  ;;  %5310 = vst [vmem:[#allocation45_spill] sm:$0xff] %v3956_v54  ;;  %v563_v57 = vpop.f32.mrf.mxu3 }
 0x12a   :  { %v2756_v2 = vmul.f32 -1.442695, %v586_v1 }
 0x12c   :  { %2826 = vpow2.f32 %v2756_v2  ;;  %v3958_v2 = vperm.slane %v311_v27, 1 }
 0x12d   :  { %v339_v8 = vpop.f32.mrf.mxu1 }
 0x12e   :  { %v3944_v13 = vadd.f32 %v339_v8, %v3939_v43  ;;  %5311 = vst [vmem:[#allocation46_spill] sm:$0xff] %v3958_v2 }
 0x130   :  { %5305 = vst [vmem:[#allocation40_spill] sm:$0xff] %v3944_v13 }
 0x132   :  { %v2827_v15 = vpop.eup %2826 }
 0x133   :  { %v3946_v0 = vpop.f32.mrf.mxu2  ;;  %v590_v39 = vadd.f32 1.0, %v2827_v15 }
 0x134   :  { %5306 = vst [vmem:[#allocation41_spill] sm:$0xff] %v3946_v0  ;;  %v564_v0 = vadd.f32 %v563_v57, %v3956_v54  ;;  %v3969_v57 = vperm.slane %v514_v26, 2 }
 0x135   :  { %v342_v21 = vpop.f32.mrf.mxu1  ;;  %2828 = vrcp.f32 %v590_v39  ;;  %v602_v7 = vand.u32 2147483648, %v590_v39  ;;  %vm596_vm9 = vweird.f32 %v590_v39  ;;  %v600_v54 = vand.u32 2147483647, %v590_v39 }
 0x136   :  { %v3949_v60 = vadd.f32 %v342_v21, %v3939_v43 }
 0x137   :  { %vm601_vm11 = vcmp.eq.f32.partialorder %v600_v54, 8.507059e+37 }
 0x138   :  { %5307 = vst [vmem:[#allocation42_spill] sm:$0xff] %v3949_v60 }
 0x13b   :  { %v3951_v19 = vpop.f32.mrf.mxu2  ;;  %v2829_v1 = vpop.eup %2828 }
 0x13c   :  { %5308 = vst [vmem:[#allocation43_spill] sm:$0xff] %v3951_v19  ;;  %v592_v21 = vmul.f32 %v2829_v1, %v590_v39  ;;  %vm597_vm8 = vweird.f32 %v2829_v1 }
 0x13d   :  { %v345_v36 = vpop.f32.mrf.mxu1  ;;  %vm598_vm10 = vmor %vm596_vm9, %vm597_vm8 }
 0x13e   :  { %v3954_v45 = vadd.f32 %v345_v36, %v3939_v43  ;;  %v593_v13 = vsub.f32 1.0, %v592_v21  ;;  %v583_v21 = vpop.f32.mrf.mxu0 }
 0x140   :  { %5309 = vst [vmem:[#allocation44_spill] sm:$0xff] %v3954_v45  ;;  %v594_v36 = vmul.f32 %v2829_v1, %v593_v13 }
 0x142   :  { %v595_v37 = vadd.f32 %v2829_v1, %v594_v36  ;;  %v584_v36 = vadd.f32 %v583_v21, %v3969_v57 }
 0x143   :  { %v3960_v8 = vpop.f32.mrf.mxu2 }
 0x144   :  { %5312 = vst [vmem:[#allocation47_spill] sm:$0xff] %v3960_v8 }
 0x145   :  { %v377_v60 = vpop.f32.mrf.mxu1 }
 0x146   :  { %v378_v15 = vadd.f32 %v377_v60, %v3958_v2 }
 0x148   :  { %v606_v19 = vadd.f32 %v564_v0, %v378_v15  ;;  %v603_v15 = vor.u32 1.1754944e-38, %v602_v7 }
 0x14a   :  { %v2757_v34 = vmul.f32 -1.442695, %v606_v19  ;;  %v599_v19 = vsel %vm598_vm10, %v2829_v1, %v595_v37 }
 0x14b   :  { %v3964_v48 = vpop.f32.mrf.mxu2  ;;  %v604_v26 = vsel %vm601_vm11, %v603_v15, %v599_v19 }
 0x14c   :  { %5313 = vst [vmem:[#allocation48_spill] sm:$0xff] %v3964_v48  ;;  %2830 = vpow2.f32 %v2757_v34  ;;  %v3971_v34 = vperm.slane %v311_v27, 2 }
 0x14d   :  { %v380_v43 = vpop.f32.mrf.mxu1 }
 0x14e   :  { %v3967_v45 = vadd.f32 %v380_v43, %v3958_v2  ;;  %5315 = vst [vmem:[#allocation50_spill] sm:$0xff] %v3971_v34 }
 0x150   :  { %5314 = vst [vmem:[#allocation49_spill] sm:$0xff] %v3967_v45 }
 0x152   :  { %v2831_v8 = vpop.eup %2830 }
 0x153   :  { %v610_v60 = vadd.f32 1.0, %v2831_v8  ;;  %v418_v0 = vpop.f32.mrf.mxu2  ;;  %v626_v8 = vmul.f32 %v604_v26, %v584_v36 }
 0x154   :  { %v419_v48 = vadd.f32 %v418_v0, %v3971_v34 }
 0x155   :  { %2832 = vrcp.f32 %v610_v60  ;;  %v383_v13 = vpop.f32.mrf.mxu1  ;;  %v622_v7 = vand.u32 2147483648, %v610_v60  ;;  %vm616_vm13 = vweird.f32 %v610_v60 }
 0x156   :  { %v3974_v43 = vadd.f32 %v383_v13, %v3958_v2  ;;  %v627_v37 = vadd.f32 %v626_v8, %v419_v48 }
 0x157   :  { %v623_v21 = vor.u32 1.1754944e-38, %v622_v7 }
 0x158   :  { %5316 = vst [vmem:[#allocation51_spill] sm:$0xff] %v3974_v43  ;;  %v620_v43 = vand.u32 2147483647, %v610_v60  ;;  %2834 = vtanh.f32 %v627_v37 }
 0x15a   :  { %vm621_vm15 = vcmp.eq.f32.partialorder %v620_v43, 8.507059e+37 }
 0x15b   :  { %v2833_v39 = vpop.eup %2832  ;;  %v3978_v45 = vpop.f32.mrf.mxu2 }
 0x15c   :  { %v612_v38 = vmul.f32 %v2833_v39, %v610_v60  ;;  %vm617_vm12 = vweird.f32 %v2833_v39 }
 0x15d   :  { %v386_v1 = vpop.f32.mrf.mxu1  ;;  %vm618_vm14 = vmor %vm616_vm13, %vm617_vm12 }
 0x15e   :  { %v613_v27 = vsub.f32 1.0, %v612_v38  ;;  %v3981_v35 = vadd.f32 %v386_v1, %v3958_v2  ;;  %v2835_v26 = vpop.eup %2834 }
 0x160   :  { %v614_v13 = vmul.f32 %v2833_v39, %v613_v27 }
 0x162   :  { %v615_v54 = vadd.f32 %v2833_v39, %v614_v13  ;;  %v5334_v13 = vld [vmem:[#allocation38_spill] sm:$0xff] }
 0x163   :  { %v3983_v0 = vpop.f32.mrf.mxu2 }
 0x164   :  { %v619_v19 = vsel %vm618_vm14, %v2833_v39, %v615_v54 }
 0x165   :  { %v624_v15 = vsel %vm621_vm15, %v623_v21, %v619_v19  ;;  %v389_v48 = vpop.f32.mrf.mxu1  ;;  %v5335_v21 = vld [vmem:[#allocation40_spill] sm:$0xff] }
 0x166   :  { %v629_v36 = vsub.f32 1.0, %v624_v15  ;;  %v3986_v38 = vadd.f32 %v389_v48, %v3958_v2  ;;  %v631_v1 = vmul.f32 %v624_v15, %v3573_v41 }
 0x168   :  { %5317 = vst [vmem:[#allocation52_spill] sm:$0xff] %v3986_v38  ;;  %v630_v8 = vmul.f32 %v2835_v26, %v629_v36  ;;  %v5336_v36 = vld [vmem:[#allocation45_spill] sm:$0xff] }
 0x16a   :  { %v3989_v27 = vadd.f32 %v631_v1, %v630_v8  ;;  %v5337_v8 = vld [vmem:[#allocation49_spill] sm:$0xff] }
 0x16b   :  { %v427_v60 = vpop.f32.mrf.mxu2 }
 0x16c   :  { %5318 = vst [vmem:[#allocation53_spill] sm:$0xff] %v3989_v27  ;;  %v3992_v37 = vadd.f32 %v427_v60, %v3971_v34  ;;  %653 = vmatmul.f32.vlgmr.msra.gmra.mxu1 %v3989_v27  ;;  %673 = vmatmul.f32.vlgmr.msra.gmra.mxu2 %v3989_v27 }
 0x16d   :  { %693 = vmatmul.f32.vlgmr.msra.gmra.mxu3 %v3989_v27  ;;  %v392_v43 = vpop.f32.mrf.mxu1  ;;  %899 = vmatpush.msra.mxu1 %v3585_v47 }
 0x16e   :  { %v3999_v39 = vadd.f32 %v392_v43, %v3958_v2  ;;  %970 = vmatpush.msra.mxu2 %v3526_v3  ;;  %990 = vmatpush.msra.mxu3 %v3575_v42  ;;  %v5330_v42 = vld [vmem:[#allocation32_spill] sm:$0xff] }
 0x16f   :  { %900 = vmatpush.msra.mxu1 %v3591_v50 }
 0x170   :  { %5319 = vst [vmem:[#allocation54_spill] sm:$0xff] %v3999_v39  ;;  %971 = vmatpush.msra.mxu2 %v3528_v4  ;;  %991 = vmatpush.msra.mxu3 %v3579_v44  ;;  %v5331_v44 = vld [vmem:[#allocation35_spill] sm:$0xff] }
 0x171   :  { %901 = vmatpush.msra.mxu1 %v3596_v53 }
 0x172   :  { %972 = vmatpush.msra.mxu2 %v3532_v10  ;;  %992 = vmatpush.msra.mxu3 %v3583_v46 }
 0x173   :  { %v430_v41 = vpop.f32.mrf.mxu2  ;;  %902 = vmatpush.msra.mxu1 %v3602_v56 }
 0x174   :  { %v4011_v7 = vadd.f32 %v430_v41, %v3971_v34  ;;  %973 = vmatpush.msra.mxu2 %v3534_v12  ;;  %993 = vmatpush.msra.mxu3 %v3589_v49 }
 0x175   :  { %v395_v3 = vpop.f32.mrf.mxu1  ;;  %903 = vmatpush.msra.mxu1 %v3609_v59 }
 0x176   :  { %5320 = vst [vmem:[#allocation55_spill] sm:$0xff] %v4011_v7  ;;  %v4017_v4 = vadd.f32 %v395_v3, %v3958_v2  ;;  %974 = vmatpush.msra.mxu2 %v3537_v14  ;;  %994 = vmatpush.msra.mxu3 %v3594_v52 }
 0x177   :  { %904 = vmatpush.msra.mxu1 %v3615_v63 }
 0x178   :  { %5321 = vst [vmem:[#allocation56_spill] sm:$0xff] %v4017_v4  ;;  %975 = vmatpush.msra.mxu2 %v3540_v18  ;;  %995 = vmatpush.msra.mxu3 %v3599_v55 }
 0x179   :  { %905 = vmatpush.msra.mxu1 %v3621_v6 }
 0x17a   :  { %976 = vmatpush.msra.mxu2 %v3543_v20  ;;  %996 = vmatpush.msra.mxu3 %v3607_v58  ;;  %v5324_v20 = vld [vmem:[#allocation30_spill] sm:$0xff] }
 0x17b   :  { %v433_v10 = vpop.f32.mrf.mxu2  ;;  %906 = vmatpush.msra.mxu1 %v3625_v11 }
 0x17c   :  { %v4029_v12 = vadd.f32 %v433_v10, %v3971_v34  ;;  %977 = vmatpush.msra.mxu2 %v3546_v22  ;;  %997 = vmatpush.msra.mxu3 %v3613_v62  ;;  %v5325_v22 = vld [vmem:[#allocation33_spill] sm:$0xff] }
 0x17d   :  { %907 = vmatpush.msra.mxu1 %v3633_v17 }
 0x17e   :  { %5322 = vst [vmem:[#allocation57_spill] sm:$0xff] %v4029_v12  ;;  %978 = vmatpush.msra.mxu2 %v3549_v24  ;;  %998 = vmatpush.msra.mxu3 %v3619_v5  ;;  %v5326_v24 = vld [vmem:[#allocation36_spill] sm:$0xff] }
 0x17f   :  { %908 = vmatpush.msra.mxu1 %v3639_v25  ;;  %v5349_v12 = vld [vmem:[#allocation44_spill] sm:$0xff] }
 0x180   :  { %979 = vmatpush.msra.mxu2 %v3552_v28  ;;  %999 = vmatpush.msra.mxu3 %v3623_v9  ;;  %v5327_v28 = vld [vmem:[#allocation31_spill] sm:$0xff] }
 0x181   :  { %909 = vmatpush.msra.mxu1 %v3645_v32 }
 0x182   :  { %980 = vmatpush.msra.mxu2 %v3555_v29  ;;  %1000 = vmatpush.msra.mxu3 %v3631_v16  ;;  %v5328_v29 = vld [vmem:[#allocation34_spill] sm:$0xff] }
 0x183   :  { %v436_v14 = vpop.f32.mrf.mxu2  ;;  %910 = vmatpush.msra.mxu1 %v3649_v40 }
 0x184   :  { %v4044_v18 = vadd.f32 %v436_v14, %v3971_v34  ;;  %981 = vmatpush.msra.mxu2 %v3558_v31  ;;  %1001 = vmatpush.msra.mxu3 %v3637_v23  ;;  %v5329_v31 = vld [vmem:[#allocation37_spill] sm:$0xff] }
 0x185   :  { %911 = vmatpush.msra.mxu1 %v3655_v51 }
 0x186   :  { %5323 = vst [vmem:[#allocation58_spill] sm:$0xff] %v4044_v18  ;;  %982 = vmatpush.msra.mxu2 %v3561_v33  ;;  %1002 = vmatpush.msra.mxu3 %v3643_v30  ;;  %v4060_v33 = vpop.f32.mrf.mxu1 }
 0x187   :  { %912 = vmatpush.msra.mxu1 %v3663_v61  ;;  %5332 = vst [vmem:[#allocation30_spill] sm:$0xff] %v4060_v33 }
 0x188   :  { %983 = vmatpush.msra.mxu2 %v5324_v20  ;;  %1003 = vmatpush.msra.mxu3 %v5325_v22 }
 0x189   :  { %913 = vmatpush.msra.mxu1 %v5326_v24 }
 0x18a   :  { %984 = vmatpush.msra.mxu2 %v5327_v28  ;;  %1004 = vmatpush.msra.mxu3 %v5328_v29 }
 0x18b   :  { %914 = vmatpush.msra.mxu1 %v5329_v31  ;;  %v4062_v46 = vpop.f32.mrf.mxu2 }
 0x18c   :  { %985 = vmatpush.msra.mxu2 %v5330_v42  ;;  %1005 = vmatpush.msra.mxu3 %v5331_v44  ;;  %5333 = vst [vmem:[#allocation33_spill] sm:$0xff] %v4062_v46 }
 0x1e9   :  { %v654_v49 = vpop.f32.mrf.mxu1 }
 0x1ea   :  { %v655_v54 = vadd.f32 %v654_v49, %v5334_v13 }
 0x1ec   :  { %v697_v19 = vadd.f32 %v655_v54, %v5335_v21 }
 0x1ee   :  { %v2758_v15 = vmul.f32 -1.442695, %v697_v19 }
 0x1ef   :  { %v674_v48 = vpop.f32.mrf.mxu2 }
 0x1f0   :  { %2836 = vpow2.f32 %v2758_v15  ;;  %v675_v26 = vadd.f32 %v674_v48, %v5336_v36  ;;  %v694_v19 = vpop.f32.mrf.mxu3 }
 0x1f2   :  { %v717_v1 = vadd.f32 %v675_v26, %v5337_v8 }
 0x1f4   :  { %v2759_v60 = vmul.f32 -1.442695, %v717_v1  ;;  %v695_v1 = vadd.f32 %v694_v19, %v3969_v57 }
 0x1f6   :  { %v2837_v43 = vpop.eup %2836  ;;  %2838 = vpow2.f32 %v2759_v60 }
 0x1f7   :  { %v701_v41 = vadd.f32 1.0, %v2837_v43  ;;  %v422_v43 = vadd.f32 %v3978_v45, %v3971_v34 }
 0x1f9   :  { %2840 = vrcp.f32 %v701_v41  ;;  %v713_v42 = vand.u32 2147483648, %v701_v41  ;;  %v711_v54 = vand.u32 2147483647, %v701_v41  ;;  %vm707_vm1 = vweird.f32 %v701_v41 }
 0x1fb   :  { %v714_v26 = vor.u32 1.1754944e-38, %v713_v42  ;;  %vm712_vm3 = vcmp.eq.f32.partialorder %v711_v54, 8.507059e+37 }
 0x1fc   :  { %v2839_v3 = vpop.eup %2838 }
 0x1fd   :  { %v721_v10 = vadd.f32 1.0, %v2839_v3 }
 0x1ff   :  { %v2841_v14 = vpop.eup %2840  ;;  %2842 = vrcp.f32 %v721_v10  ;;  %v731_v33 = vand.u32 2147483647, %v721_v10  ;;  %vm727_vm5 = vweird.f32 %v721_v10 }
 0x200   :  { %v703_v20 = vmul.f32 %v2841_v14, %v701_v41  ;;  %vm708_vm0 = vweird.f32 %v2841_v14 }
 0x201   :  { %vm709_vm2 = vmor %vm707_vm1, %vm708_vm0  ;;  %vm732_vm7 = vcmp.eq.f32.partialorder %v731_v33, 8.507059e+37  ;;  %v4085_v33 = vld [vmem:[#allocation10 + $0x150] sm:$0xff] }
 0x202   :  { %v704_v28 = vsub.f32 1.0, %v703_v20 }
 0x204   :  { %v705_v49 = vmul.f32 %v2841_v14, %v704_v28  ;;  %v733_v28 = vand.u32 2147483648, %v721_v10 }
 0x205   :  { %v2843_v21 = vpop.eup %2842 }
 0x206   :  { %v723_v15 = vmul.f32 %v2843_v21, %v721_v10  ;;  %v706_v48 = vadd.f32 %v2841_v14, %v705_v49  ;;  %vm728_vm4 = vweird.f32 %v2843_v21  ;;  %v734_v41 = vor.u32 1.1754944e-38, %v733_v28  ;;  %v4088_v10 = vld [vmem:[#allocation10 + $0x158] sm:$0xff] }
 0x207   :  { %vm729_vm6 = vmor %vm727_vm5, %vm728_vm4 }
 0x208   :  { %v724_v8 = vsub.f32 1.0, %v723_v15  ;;  %v710_v60 = vsel %vm709_vm2, %v2841_v14, %v706_v48 }
 0x209   :  { %v715_v3 = vsel %vm712_vm3, %v714_v26, %v710_v60  ;;  %v4102_v26 = vld [vmem:[#allocation10 + $0x128] sm:$0xff] }
 0x20a   :  { %v725_v20 = vmul.f32 %v2843_v21, %v724_v8  ;;  %v737_v46 = vmul.f32 %v715_v3, %v695_v1  ;;  %v4111_v8 = vld [vmem:[#allocation10 + $0xf0] sm:$0xff] }
 0x20c   :  { %v726_v2 = vadd.f32 %v2843_v21, %v725_v20  ;;  %v738_v49 = vadd.f32 %v737_v46, %v422_v43  ;;  %v4078_v46 = vld [vmem:[#allocation10 + $0x168] sm:$0xff] }
 0x20e   :  { %v730_v42 = vsel %vm729_vm6, %v2843_v21, %v726_v2  ;;  %2844 = vtanh.f32 %v738_v49  ;;  %v4081_v2 = vld [vmem:[#allocation10 + $0x170] sm:$0xff]  ;;  %v4095_v21 = vld [vmem:[#allocation10 + $0x140] sm:$0xff] }
 0x20f   :  { %v735_v19 = vsel %vm732_vm7, %v734_v41, %v730_v42 }
 0x210   :  { %v740_v14 = vsub.f32 1.0, %v735_v19  ;;  %v742_v45 = vmul.f32 %v735_v19, %v3989_v27 }
 0x214   :  { %v2845_v54 = vpop.eup %2844 }
 0x215   :  { %v741_v15 = vmul.f32 %v2845_v54, %v740_v14 }
 0x217   :  { %v4072_v48 = vadd.f32 %v742_v45, %v741_v15 }
 0x219   :  { %5338 = vst [vmem:[#allocation36_spill] sm:$0xff] %v4072_v48  ;;  %764 = vmatmul.f32.vlgmr.msrb.gmra.mxu0 %v4072_v48  ;;  %784 = vmatmul.f32.vlgmr.msrb.gmra.mxu1 %v4072_v48 }
 0x21a   :  { %804 = vmatmul.f32.vlgmr.msrb.gmra.mxu2 %v4072_v48  ;;  %1010 = vmatpush.msrb.mxu0 %v3585_v47  ;;  %v4092_v47 = vld [vmem:[#allocation10 + $0x138] sm:$0xff] }
 0x21b   :  { %1081 = vmatpush.msrb.mxu1 %v4078_v46  ;;  %1101 = vmatpush.msrb.mxu2 %v4081_v2 }
 0x21c   :  { %1011 = vmatpush.msrb.mxu0 %v3591_v50  ;;  %v4099_v50 = vld [vmem:[#allocation10 + $0x120] sm:$0xff] }
 0x21d   :  { %1082 = vmatpush.msrb.mxu1 %v4085_v33  ;;  %1102 = vmatpush.msrb.mxu2 %v4088_v10 }
 0x21e   :  { %1012 = vmatpush.msrb.mxu0 %v3596_v53  ;;  %v4106_v53 = vld [vmem:[#allocation10 + $0x108] sm:$0xff] }
 0x21f   :  { %1083 = vmatpush.msrb.mxu1 %v4092_v47  ;;  %1103 = vmatpush.msrb.mxu2 %v4095_v21 }
 0x220   :  { %1013 = vmatpush.msrb.mxu0 %v3602_v56  ;;  %v4116_v56 = vld [vmem:[#allocation10 + $0xd8] sm:$0xff] }
 0x221   :  { %1084 = vmatpush.msrb.mxu1 %v4099_v50  ;;  %1104 = vmatpush.msrb.mxu2 %v4102_v26 }
 0x222   :  { %1014 = vmatpush.msrb.mxu0 %v3609_v59  ;;  %v4121_v59 = vld [vmem:[#allocation10 + $0xc0] sm:$0xff] }
 0x223   :  { %1085 = vmatpush.msrb.mxu1 %v4106_v53  ;;  %1105 = vmatpush.msrb.mxu2 %v3594_v52  ;;  %v4126_v52 = vld [vmem:[#allocation10 + $0xa8] sm:$0xff] }
 0x224   :  { %1015 = vmatpush.msrb.mxu0 %v3615_v63  ;;  %v4146_v63 = vld [vmem:[#allocation10 + $0x48] sm:$0xff] }
 0x225   :  { %1086 = vmatpush.msrb.mxu1 %v4111_v8  ;;  %1106 = vmatpush.msrb.mxu2 %v3599_v55  ;;  %v4131_v55 = vld [vmem:[#allocation10 + $0x90] sm:$0xff] }
 0x226   :  { %1016 = vmatpush.msrb.mxu0 %v3621_v6  ;;  %v4156_v6 = vld [vmem:[#allocation10 + $0x18] sm:$0xff] }
 0x227   :  { %1087 = vmatpush.msrb.mxu1 %v4116_v56  ;;  %1107 = vmatpush.msrb.mxu2 %v3607_v58  ;;  %v4136_v58 = vld [vmem:[#allocation10 + $0x78] sm:$0xff]  ;;  %5340 = vst [vmem:[#allocation34_spill] sm:$0xff] %v4156_v6 }
 0x228   :  { %1017 = vmatpush.msrb.mxu0 %v3625_v11 }
 0x229   :  { %1088 = vmatpush.msrb.mxu1 %v4121_v59  ;;  %1108 = vmatpush.msrb.mxu2 %v3613_v62  ;;  %v4141_v62 = vld [vmem:[#allocation10 + $0x60] sm:$0xff] }
 0x22a   :  { %1018 = vmatpush.msrb.mxu0 %v3633_v17 }
 0x22b   :  { %1089 = vmatpush.msrb.mxu1 %v4126_v52  ;;  %1109 = vmatpush.msrb.mxu2 %v3619_v5  ;;  %v4151_v5 = vld [vmem:[#allocation10 + $0x30] sm:$0xff] }
 0x22c   :  { %1019 = vmatpush.msrb.mxu0 %v3639_v25  ;;  %5339 = vst [vmem:[#allocation31_spill] sm:$0xff] %v4151_v5  ;;  %v5342_v25 = vld [vmem:[#allocation42_spill] sm:$0xff] }
 0x22d   :  { %1090 = vmatpush.msrb.mxu1 %v4131_v55  ;;  %1110 = vmatpush.msrb.mxu2 %v3623_v9  ;;  %v4161_v9 = vld [vmem:[#allocation10] sm:$0xff] }
 0x22e   :  { %1020 = vmatpush.msrb.mxu0 %v3645_v32  ;;  %5341 = vst [vmem:[#allocation37_spill] sm:$0xff] %v4161_v9  ;;  %v5343_v32 = vld [vmem:[#allocation51_spill] sm:$0xff] }
 0x22f   :  { %1091 = vmatpush.msrb.mxu1 %v4136_v58  ;;  %1111 = vmatpush.msrb.mxu2 %v3631_v16 }
 0x230   :  { %1021 = vmatpush.msrb.mxu0 %v3649_v40 }
 0x231   :  { %1092 = vmatpush.msrb.mxu1 %v4141_v62  ;;  %1112 = vmatpush.msrb.mxu2 %v3637_v23 }
 0x232   :  { %1022 = vmatpush.msrb.mxu0 %v3655_v51 }
 0x233   :  { %1093 = vmatpush.msrb.mxu1 %v4146_v63  ;;  %1113 = vmatpush.msrb.mxu2 %v3643_v30 }
 0x234   :  { %1023 = vmatpush.msrb.mxu0 %v3663_v61 }
 0x235   :  { %1094 = vmatpush.msrb.mxu1 %v4151_v5  ;;  %1114 = vmatpush.msrb.mxu2 %v5325_v22 }
 0x236   :  { %1024 = vmatpush.msrb.mxu0 %v5326_v24 }
 0x237   :  { %1095 = vmatpush.msrb.mxu1 %v4156_v6  ;;  %1115 = vmatpush.msrb.mxu2 %v5328_v29 }
 0x238   :  { %1025 = vmatpush.msrb.mxu0 %v5329_v31 }
 0x239   :  { %1096 = vmatpush.msrb.mxu1 %v4161_v9  ;;  %1116 = vmatpush.msrb.mxu2 %v5331_v44 }
 0x296   :  { %v765_v11 = vpop.f32.mrf.mxu0  ;;  %v785_v16 = vpop.f32.mrf.mxu1 }
 0x297   :  { %v766_v17 = vadd.f32 %v765_v11, %v5334_v13  ;;  %v786_v23 = vadd.f32 %v785_v16, %v5336_v36 }
 0x299   :  { %v808_v30 = vadd.f32 %v766_v17, %v5342_v25  ;;  %v828_v40 = vadd.f32 %v786_v23, %v5343_v32  ;;  %v425_v17 = vadd.f32 %v3983_v0, %v3971_v34  ;;  %v4178_v0 = vld [vmem:[#allocation10 + $0x178] sm:$0xff] }
 0x29b   :  { %v2760_v51 = vmul.f32 -1.442695, %v808_v30  ;;  %v2761_v61 = vmul.f32 -1.442695, %v828_v40 }
 0x29d   :  { %2846 = vpow2.f32 %v2760_v51  ;;  %v805_v19 = vpop.f32.mrf.mxu2 }
 0x29e   :  { %2848 = vpow2.f32 %v2761_v61  ;;  %v806_v15 = vadd.f32 %v805_v19, %v3969_v57  ;;  %v4219_v19 = vld [vmem:[#allocation10 + $0xd0] sm:$0xff] }
 0x2a3   :  { %v2847_v22 = vpop.eup %2846 }
 0x2a4   :  { %v2849_v24 = vpop.eup %2848  ;;  %v812_v29 = vadd.f32 1.0, %v2847_v22 }
 0x2a5   :  { %v832_v31 = vadd.f32 1.0, %v2849_v24 }
 0x2a6   :  { %2850 = vrcp.f32 %v812_v29  ;;  %v824_v28 = vand.u32 2147483648, %v812_v29  ;;  %v822_v41 = vand.u32 2147483647, %v812_v29  ;;  %vm818_vm9 = vweird.f32 %v812_v29 }
 0x2a7   :  { %2852 = vrcp.f32 %v832_v31  ;;  %v844_v23 = vand.u32 2147483648, %v832_v31  ;;  %vm838_vm13 = vweird.f32 %v832_v31  ;;  %v842_v30 = vand.u32 2147483647, %v832_v31 }
 0x2a8   :  { %v825_v54 = vor.u32 1.1754944e-38, %v824_v28  ;;  %vm823_vm11 = vcmp.eq.f32.partialorder %v822_v41, 8.507059e+37  ;;  %v4205_v28 = vld [vmem:[#allocation10 + $0x100] sm:$0xff]  ;;  %v4212_v41 = vld [vmem:[#allocation10 + $0xe8] sm:$0xff] }
 0x2a9   :  { %v845_v51 = vor.u32 1.1754944e-38, %v844_v23  ;;  %vm843_vm15 = vcmp.eq.f32.partialorder %v842_v30, 8.507059e+37  ;;  %v4247_v23 = vld [vmem:[#allocation10 + $0x70] sm:$0xff]  ;;  %v4254_v30 = vld [vmem:[#allocation10 + $0x58] sm:$0xff] }
 0x2ac   :  { %v2851_v44 = vpop.eup %2850 }
 0x2ad   :  { %v2853_v1 = vpop.eup %2852  ;;  %v814_v60 = vmul.f32 %v2851_v44, %v812_v29  ;;  %vm819_vm8 = vweird.f32 %v2851_v44 }
 0x2ae   :  { %v834_v43 = vmul.f32 %v2853_v1, %v832_v31  ;;  %vm820_vm10 = vmor %vm818_vm9, %vm819_vm8  ;;  %vm839_vm12 = vweird.f32 %v2853_v1  ;;  %v4183_v31 = vld [vmem:[#allocation10 + $0x160] sm:$0xff] }
 0x2af   :  { %v815_v3 = vsub.f32 1.0, %v814_v60  ;;  %vm840_vm14 = vmor %vm838_vm13, %vm839_vm12 }
 0x2b0   :  { %v835_v20 = vsub.f32 1.0, %v834_v43  ;;  %v4193_v43 = vld [vmem:[#allocation10 + $0x130] sm:$0xff] }
 0x2b1   :  { %v816_v49 = vmul.f32 %v2851_v44, %v815_v3  ;;  %v4198_v3 = vld [vmem:[#allocation10 + $0x118] sm:$0xff] }
 0x2b2   :  { %v836_v42 = vmul.f32 %v2853_v1, %v835_v20  ;;  %v4202_v20 = vld [vmem:[#allocation10 + $0x110] sm:$0xff] }
 0x2b3   :  { %v817_v14 = vadd.f32 %v2851_v44, %v816_v49  ;;  %v4209_v49 = vld [vmem:[#allocation10 + $0xf8] sm:$0xff] }
 0x2b4   :  { %v837_v16 = vadd.f32 %v2853_v1, %v836_v42  ;;  %v4216_v42 = vld [vmem:[#allocation10 + $0xe0] sm:$0xff] }
 0x2b5   :  { %v821_v45 = vsel %vm820_vm10, %v2851_v44, %v817_v14  ;;  %v4223_v14 = vld [vmem:[#allocation10 + $0xc8] sm:$0xff] }
 0x2b6   :  { %v826_v11 = vsel %vm823_vm11, %v825_v54, %v821_v45  ;;  %v841_v40 = vsel %vm840_vm14, %v2853_v1, %v837_v16  ;;  %v4188_v1 = vld [vmem:[#allocation10 + $0x148] sm:$0xff]  ;;  %v4226_v54 = vld [vmem:[#allocation10 + $0xb8] sm:$0xff]  ;;  %v4233_v45 = vld [vmem:[#allocation10 + $0xa0] sm:$0xff] }
 0x2b7   :  { %v848_v25 = vmul.f32 %v826_v11, %v806_v15  ;;  %v846_v61 = vsel %vm843_vm15, %v845_v51, %v841_v40  ;;  %v4230_v15 = vld [vmem:[#allocation10 + $0xb0] sm:$0xff]  ;;  %v4237_v11 = vld [vmem:[#allocation10 + $0x98] sm:$0xff]  ;;  %v4240_v16 = vld [vmem:[#allocation10 + $0x88] sm:$0xff] }
 0x2b8   :  { %v851_v22 = vsub.f32 1.0, %v846_v61  ;;  %v853_v44 = vmul.f32 %v846_v61, %v4072_v48  ;;  %v4261_v40 = vld [vmem:[#allocation10 + $0x40] sm:$0xff]  ;;  %v4265_v51 = vld [vmem:[#allocation10 + $0x38] sm:$0xff]  ;;  %v4268_v61 = vld [vmem:[#allocation10 + $0x28] sm:$0xff] }
 0x2b9   :  { %v849_v32 = vadd.f32 %v848_v25, %v425_v17  ;;  %v4244_v17 = vld [vmem:[#allocation10 + $0x80] sm:$0xff]  ;;  %v4251_v25 = vld [vmem:[#allocation10 + $0x68] sm:$0xff]  ;;  %5344 = vst [vmem:[#allocation32_spill] sm:$0xff] %v4265_v51 }
 0x2ba   :  { %5345 = vst [vmem:[#allocation35_spill] sm:$0xff] %v4268_v61 }
 0x2bb   :  { %2854 = vtanh.f32 %v849_v32  ;;  %v4258_v32 = vld [vmem:[#allocation10 + $0x50] sm:$0xff] }
 0x2c1   :  { %v2855_v24 = vpop.eup %2854 }
 0x2c2   :  { %v852_v29 = vmul.f32 %v2855_v24, %v851_v22  ;;  %v4272_v22 = vld [vmem:[#allocation10 + $0x20] sm:$0xff]  ;;  %v4275_v24 = vld [vmem:[#allocation10 + $0x10] sm:$0xff] }
 0x2c3   :  { %5346 = vst [vmem:[#allocation40_spill] sm:$0xff] %v4272_v22 }
 0x2c4   :  { %v4173_v60 = vadd.f32 %v853_v44, %v852_v29  ;;  %5347 = vst [vmem:[#allocation49_spill] sm:$0xff] %v4275_v24  ;;  %v4279_v29 = vld [vmem:[#allocation10 + $0x8] sm:$0xff] }
 0x2c5   :  { %5348 = vst [vmem:[#allocation42_spill] sm:$0xff] %v4279_v29 }
 0x2c6   :  { %875 = vmatmul.f32.vlgmr.msrb.gmra.mxu3 %v4173_v60  ;;  %895 = vmatmul.f32.vlgmr.msra.gmra.mxu0 %v4173_v60 }
 0x2c7   :  { %915 = vmatmul.f32.vlgmr.msra.gmra.mxu1 %v4173_v60  ;;  %1121 = vmatpush.msrb.mxu3 %v4178_v0 }
 0x2c8   :  { %1192 = vmatpush.msra.mxu0 %v4078_v46  ;;  %1212 = vmatpush.msra.mxu1 %v4081_v2 }
 0x2c9   :  { %1122 = vmatpush.msrb.mxu3 %v4183_v31 }
 0x2ca   :  { %1193 = vmatpush.msra.mxu0 %v4085_v33  ;;  %1213 = vmatpush.msra.mxu1 %v4088_v10 }
 0x2cb   :  { %1123 = vmatpush.msrb.mxu3 %v4188_v1 }
 0x2cc   :  { %1194 = vmatpush.msra.mxu0 %v4092_v47  ;;  %1214 = vmatpush.msra.mxu1 %v4095_v21 }
 0x2cd   :  { %1124 = vmatpush.msrb.mxu3 %v4193_v43 }
 0x2ce   :  { %1195 = vmatpush.msra.mxu0 %v4099_v50  ;;  %1215 = vmatpush.msra.mxu1 %v4102_v26 }
 0x2cf   :  { %1125 = vmatpush.msrb.mxu3 %v4198_v3 }
 0x2d0   :  { %1196 = vmatpush.msra.mxu0 %v4106_v53  ;;  %1216 = vmatpush.msra.mxu1 %v4202_v20 }
 0x2d1   :  { %1126 = vmatpush.msrb.mxu3 %v4205_v28 }
 0x2d2   :  { %1197 = vmatpush.msra.mxu0 %v4111_v8  ;;  %1217 = vmatpush.msra.mxu1 %v4209_v49 }
 0x2d3   :  { %1127 = vmatpush.msrb.mxu3 %v4212_v41 }
 0x2d4   :  { %1198 = vmatpush.msra.mxu0 %v4116_v56  ;;  %1218 = vmatpush.msra.mxu1 %v4216_v42 }
 0x2d5   :  { %1128 = vmatpush.msrb.mxu3 %v4219_v19 }
 0x2d6   :  { %1199 = vmatpush.msra.mxu0 %v4121_v59  ;;  %1219 = vmatpush.msra.mxu1 %v4223_v14 }
 0x2d7   :  { %1129 = vmatpush.msrb.mxu3 %v4226_v54 }
 0x2d8   :  { %1200 = vmatpush.msra.mxu0 %v4126_v52  ;;  %1220 = vmatpush.msra.mxu1 %v4230_v15 }
 0x2d9   :  { %1130 = vmatpush.msrb.mxu3 %v4233_v45 }
 0x2da   :  { %1201 = vmatpush.msra.mxu0 %v4131_v55  ;;  %1221 = vmatpush.msra.mxu1 %v4237_v11 }
 0x2db   :  { %1131 = vmatpush.msrb.mxu3 %v4240_v16 }
 0x2dc   :  { %1202 = vmatpush.msra.mxu0 %v4136_v58  ;;  %1222 = vmatpush.msra.mxu1 %v4244_v17 }
 0x2dd   :  { %1132 = vmatpush.msrb.mxu3 %v4247_v23 }
 0x2de   :  { %1203 = vmatpush.msra.mxu0 %v4141_v62  ;;  %1223 = vmatpush.msra.mxu1 %v4251_v25 }
 0x2df   :  { %1133 = vmatpush.msrb.mxu3 %v4254_v30 }
 0x2e0   :  { %1204 = vmatpush.msra.mxu0 %v4146_v63  ;;  %1224 = vmatpush.msra.mxu1 %v4258_v32 }
 0x2e1   :  { %1134 = vmatpush.msrb.mxu3 %v4261_v40 }
 0x2e2   :  { %1205 = vmatpush.msra.mxu0 %v4151_v5  ;;  %1225 = vmatpush.msra.mxu1 %v4265_v51 }
 0x2e3   :  { %1135 = vmatpush.msrb.mxu3 %v4268_v61 }
 0x2e4   :  { %1206 = vmatpush.msra.mxu0 %v4156_v6  ;;  %1226 = vmatpush.msra.mxu1 %v4272_v22 }
 0x2e5   :  { %1136 = vmatpush.msrb.mxu3 %v4275_v24 }
 0x2e6   :  { %1207 = vmatpush.msra.mxu0 %v4161_v9  ;;  %1227 = vmatpush.msra.mxu1 %v4279_v29 }
 0x343   :  { %v896_v44 = vpop.f32.mrf.mxu0 }
 0x344   :  { %v897_v34 = vadd.f32 %v896_v44, %v5336_v36 }
 0x346   :  { %v939_v18 = vadd.f32 %v897_v34, %v3981_v35 }
 0x348   :  { %v2763_v4 = vmul.f32 -1.442695, %v939_v18 }
 0x349   :  { %v876_v48 = vpop.f32.mrf.mxu3 }
 0x34a   :  { %2856 = vpow2.f32 %v2763_v4  ;;  %v877_v27 = vadd.f32 %v876_v48, %v5334_v13 }
 0x34c   :  { %v919_v39 = vadd.f32 %v877_v27, %v5349_v12  ;;  %v916_v27 = vpop.f32.mrf.mxu1 }
 0x34e   :  { %v2762_v7 = vmul.f32 -1.442695, %v919_v39 }
 0x350   :  { %v2857_v38 = vpop.eup %2856  ;;  %2858 = vpow2.f32 %v2762_v7  ;;  %v917_v7 = vadd.f32 %v916_v27, %v3969_v57 }
 0x351   :  { %v943_v9 = vadd.f32 1.0, %v2857_v38 }
 0x353   :  { %2860 = vrcp.f32 %v943_v9  ;;  %v955_v51 = vand.u32 2147483648, %v943_v9  ;;  %vm949_vm5 = vweird.f32 %v943_v9 }
 0x355   :  { %v956_v5 = vor.u32 1.1754944e-38, %v955_v51 }
 0x356   :  { %v2859_v24 = vpop.eup %2858 }
 0x357   :  { %v923_v22 = vadd.f32 1.0, %v2859_v24 }
 0x359   :  { %2862 = vrcp.f32 %v923_v22  ;;  %v2861_v29 = vpop.eup %2860  ;;  %v935_v18 = vand.u32 2147483648, %v923_v22  ;;  %v933_v48 = vand.u32 2147483647, %v923_v22  ;;  %vm929_vm1 = vweird.f32 %v923_v22 }
 0x35a   :  { %v945_v6 = vmul.f32 %v2861_v29, %v943_v9  ;;  %vm950_vm4 = vweird.f32 %v2861_v29 }
 0x35b   :  { %v936_v38 = vor.u32 1.1754944e-38, %v935_v18  ;;  %vm934_vm3 = vcmp.eq.f32.partialorder %v933_v48, 8.507059e+37  ;;  %vm951_vm6 = vmor %vm949_vm5, %vm950_vm4 }
 0x35c   :  { %v946_v35 = vsub.f32 1.0, %v945_v6 }
 0x35e   :  { %v947_v13 = vmul.f32 %v2861_v29, %v946_v35 }
 0x35f   :  { %v2863_v44 = vpop.eup %2862 }
 0x360   :  { %v925_v36 = vmul.f32 %v2863_v44, %v923_v22  ;;  %vm930_vm0 = vweird.f32 %v2863_v44  ;;  %v948_v24 = vadd.f32 %v2861_v29, %v947_v13 }
 0x361   :  { %vm931_vm2 = vmor %vm929_vm1, %vm930_vm0 }
 0x362   :  { %v926_v34 = vsub.f32 1.0, %v925_v36  ;;  %v953_v36 = vand.u32 2147483647, %v943_v9  ;;  %v952_v35 = vsel %vm951_vm6, %v2861_v29, %v948_v24 }
 0x364   :  { %v927_v4 = vmul.f32 %v2863_v44, %v926_v34  ;;  %vm954_vm7 = vcmp.eq.f32.partialorder %v953_v36, 8.507059e+37 }
 0x365   :  { %v957_v22 = vsel %vm954_vm7, %v956_v5, %v952_v35  ;;  %v5362_v5 = vld [vmem:[#allocation52_spill] sm:$0xff] }
 0x366   :  { %v928_v39 = vadd.f32 %v2863_v44, %v927_v4  ;;  %v962_v18 = vsub.f32 1.0, %v957_v22 }
 0x368   :  { %v932_v12 = vsel %vm931_vm2, %v2863_v44, %v928_v39  ;;  %v964_v44 = vmul.f32 %v957_v22, %v4173_v60 }
 0x369   :  { %v937_v61 = vsel %vm934_vm3, %v936_v38, %v932_v12 }
 0x36a   :  { %v959_v6 = vmul.f32 %v937_v61, %v917_v7 }
 0x36c   :  { %v960_v34 = vadd.f32 %v959_v6, %v3992_v37  ;;  %v5350_v37 = vld [vmem:[#allocation31_spill] sm:$0xff] }
 0x36e   :  { %2864 = vtanh.f32 %v960_v34 }
 0x374   :  { %v2865_v4 = vpop.eup %2864 }
 0x375   :  { %v963_v48 = vmul.f32 %v2865_v4, %v962_v18 }
 0x377   :  { %v4289_v13 = vadd.f32 %v964_v44, %v963_v48  ;;  %v5363_v48 = vld [vmem:[#allocation55_spill] sm:$0xff] }
 0x379   :  { %986 = vmatmul.f32.vlgmr.msra.gmra.mxu2 %v4289_v13  ;;  %1006 = vmatmul.f32.vlgmr.msra.gmra.mxu3 %v4289_v13 }
 0x37a   :  { %1026 = vmatmul.f32.vlgmr.msrb.gmra.mxu0 %v4289_v13  ;;  %1232 = vmatpush.msra.mxu2 %v4178_v0 }
 0x37b   :  { %1303 = vmatpush.msra.mxu3 %v4078_v46  ;;  %1323 = vmatpush.msrb.mxu0 %v4081_v2  ;;  %v5351_v46 = vld [vmem:[#allocation32_spill] sm:$0xff]  ;;  %v5352_v2 = vld [vmem:[#allocation35_spill] sm:$0xff] }
 0x37c   :  { %1233 = vmatpush.msra.mxu2 %v4183_v31 }
 0x37d   :  { %1304 = vmatpush.msra.mxu3 %v4085_v33  ;;  %1324 = vmatpush.msrb.mxu0 %v4088_v10  ;;  %v5353_v33 = vld [vmem:[#allocation34_spill] sm:$0xff]  ;;  %v5354_v10 = vld [vmem:[#allocation40_spill] sm:$0xff] }
 0x37e   :  { %1234 = vmatpush.msra.mxu2 %v4188_v1 }
 0x37f   :  { %1305 = vmatpush.msra.mxu3 %v4092_v47  ;;  %1325 = vmatpush.msrb.mxu0 %v4095_v21  ;;  %v5355_v47 = vld [vmem:[#allocation49_spill] sm:$0xff] }
 0x380   :  { %1235 = vmatpush.msra.mxu2 %v4193_v43  ;;  %v5356_v21 = vld [vmem:[#allocation37_spill] sm:$0xff] }
 0x381   :  { %1306 = vmatpush.msra.mxu3 %v4099_v50  ;;  %1326 = vmatpush.msrb.mxu0 %v4102_v26  ;;  %v5357_v50 = vld [vmem:[#allocation42_spill] sm:$0xff] }
 0x382   :  { %1236 = vmatpush.msra.mxu2 %v4198_v3 }
 0x383   :  { %1307 = vmatpush.msra.mxu3 %v4106_v53  ;;  %1327 = vmatpush.msrb.mxu0 %v4202_v20 }
 0x384   :  { %1237 = vmatpush.msra.mxu2 %v4205_v28 }
 0x385   :  { %1308 = vmatpush.msra.mxu3 %v4111_v8  ;;  %1328 = vmatpush.msrb.mxu0 %v4209_v49  ;;  %v5358_v8 = vld [vmem:[#allocation39_spill] sm:$0xff] }
 0x386   :  { %1238 = vmatpush.msra.mxu2 %v4212_v41 }
 0x387   :  { %1309 = vmatpush.msra.mxu3 %v4116_v56  ;;  %1329 = vmatpush.msrb.mxu0 %v4216_v42  ;;  %v5359_v56 = vld [vmem:[#allocation41_spill] sm:$0xff] }
 0x388   :  { %1239 = vmatpush.msra.mxu2 %v4219_v19 }
 0x389   :  { %1310 = vmatpush.msra.mxu3 %v4121_v59  ;;  %1330 = vmatpush.msrb.mxu0 %v4223_v14  ;;  %v349_v59 = vadd.f32 %v5359_v56, %v5358_v8 }
 0x38a   :  { %1240 = vmatpush.msra.mxu2 %v4226_v54 }
 0x38b   :  { %1311 = vmatpush.msra.mxu3 %v4126_v52  ;;  %1331 = vmatpush.msrb.mxu0 %v4230_v15  ;;  %v5360_v52 = vld [vmem:[#allocation38_spill] sm:$0xff] }
 0x38c   :  { %1241 = vmatpush.msra.mxu2 %v4233_v45 }
 0x38d   :  { %1312 = vmatpush.msra.mxu3 %v4131_v55  ;;  %1332 = vmatpush.msrb.mxu0 %v4237_v11 }
 0x38e   :  { %1242 = vmatpush.msra.mxu2 %v4240_v16 }
 0x38f   :  { %1313 = vmatpush.msra.mxu3 %v4136_v58  ;;  %1333 = vmatpush.msrb.mxu0 %v4244_v17  ;;  %v5361_v58 = vld [vmem:[#allocation45_spill] sm:$0xff] }
 0x390   :  { %1243 = vmatpush.msra.mxu2 %v4247_v23 }
 0x391   :  { %1314 = vmatpush.msra.mxu3 %v4141_v62  ;;  %1334 = vmatpush.msrb.mxu0 %v4251_v25 }
 0x392   :  { %1244 = vmatpush.msra.mxu2 %v4254_v30 }
 0x393   :  { %1315 = vmatpush.msra.mxu3 %v4146_v63  ;;  %1335 = vmatpush.msrb.mxu0 %v4258_v32 }
 0x394   :  { %1245 = vmatpush.msra.mxu2 %v4261_v40 }
 0x395   :  { %1316 = vmatpush.msra.mxu3 %v5350_v37  ;;  %1336 = vmatpush.msrb.mxu0 %v5351_v46 }
 0x396   :  { %1246 = vmatpush.msra.mxu2 %v5352_v2 }
 0x397   :  { %1317 = vmatpush.msra.mxu3 %v5353_v33  ;;  %1337 = vmatpush.msrb.mxu0 %v5354_v10 }
 0x398   :  { %1247 = vmatpush.msra.mxu2 %v5355_v47 }
 0x399   :  { %1318 = vmatpush.msra.mxu3 %v5356_v21  ;;  %1338 = vmatpush.msrb.mxu0 %v5357_v50 }
 0x3f7   :  { %v1027_v7 = vpop.f32.mrf.mxu0 }
 0x3f8   :  { %v1028_v36 = vadd.f32 %v1027_v7, %v3969_v57 }
 0x3fc   :  { %v987_v26 = vpop.f32.mrf.mxu2  ;;  %v1007_v53 = vpop.f32.mrf.mxu3 }
 0x3fd   :  { %v988_v55 = vadd.f32 %v987_v26, %v5360_v52  ;;  %v1008_v62 = vadd.f32 %v1007_v53, %v5361_v58 }
 0x3ff   :  { %v1030_v63 = vadd.f32 %v988_v55, %v349_v59  ;;  %v1050_v9 = vadd.f32 %v1008_v62, %v5362_v5  ;;  %v5365_v59 = vld [vmem:[#allocation54_spill] sm:$0xff] }
 0x400   :  { %v1441_v62 = vld [vmem:[#allocation12 + $0xa8] sm:$0xff]  ;;  %v1438_v5 = vld [vmem:[#allocation12 + $0x90] sm:$0xff] }
 0x401   :  { %v2764_v20 = vmul.f32 -1.442695, %v1030_v63  ;;  %v2765_v49 = vmul.f32 -1.442695, %v1050_v9 }
 0x403   :  { %2866 = vpow2.f32 %v2764_v20  ;;  %v1435_v20 = vld [vmem:[#allocation12 + $0x78] sm:$0xff] }
 0x404   :  { %2868 = vpow2.f32 %v2765_v49 }
 0x409   :  { %v2867_v42 = vpop.eup %2866 }
 0x40a   :  { %v2869_v14 = vpop.eup %2868  ;;  %v1034_v15 = vadd.f32 1.0, %v2867_v42  ;;  %v1432_v42 = vld [vmem:[#allocation12 + $0x60] sm:$0xff] }
 0x40b   :  { %v1054_v11 = vadd.f32 1.0, %v2869_v14  ;;  %v1429_v14 = vld [vmem:[#allocation12 + $0x48] sm:$0xff] }
 0x40c   :  { %2870 = vrcp.f32 %v1034_v15  ;;  %v1046_v29 = vand.u32 2147483648, %v1034_v15  ;;  %v1044_v38 = vand.u32 2147483647, %v1034_v15  ;;  %vm1040_vm9 = vweird.f32 %v1034_v15 }
 0x40d   :  { %2872 = vrcp.f32 %v1054_v11  ;;  %v1066_v4 = vand.u32 2147483648, %v1054_v11  ;;  %vm1060_vm13 = vweird.f32 %v1054_v11  ;;  %v1064_v44 = vand.u32 2147483647, %v1054_v11 }
 0x40e   :  { %v1047_v6 = vor.u32 1.1754944e-38, %v1046_v29  ;;  %vm1045_vm11 = vcmp.eq.f32.partialorder %v1044_v38, 8.507059e+37 }
 0x40f   :  { %v1067_v33 = vor.u32 1.1754944e-38, %v1066_v4  ;;  %vm1065_vm15 = vcmp.eq.f32.partialorder %v1064_v44, 8.507059e+37 }
 0x412   :  { %v2871_v17 = vpop.eup %2870 }
 0x413   :  { %v2873_v25 = vpop.eup %2872  ;;  %v1036_v32 = vmul.f32 %v2871_v17, %v1034_v15  ;;  %vm1041_vm8 = vweird.f32 %v2871_v17  ;;  %v1426_v15 = vld [vmem:[#allocation12 + $0x30] sm:$0xff] }
 0x414   :  { %v1056_v51 = vmul.f32 %v2873_v25, %v1054_v11  ;;  %vm1042_vm10 = vmor %vm1040_vm9, %vm1041_vm8  ;;  %vm1061_vm12 = vweird.f32 %v2873_v25 }
 0x415   :  { %v1037_v61 = vsub.f32 1.0, %v1036_v32  ;;  %vm1062_vm14 = vmor %vm1060_vm13, %vm1061_vm12  ;;  %v1420_v32 = vld [vmem:[#allocation12] sm:$0xff] }
 0x416   :  { %v1057_v27 = vsub.f32 1.0, %v1056_v51 }
 0x417   :  { %v1038_v39 = vmul.f32 %v2871_v17, %v1037_v61 }
 0x418   :  { %v1058_v12 = vmul.f32 %v2873_v25, %v1057_v27 }
 0x419   :  { %v1039_v24 = vadd.f32 %v2871_v17, %v1038_v39 }
 0x41a   :  { %v1059_v22 = vadd.f32 %v2873_v25, %v1058_v12 }
 0x41b   :  { %v1043_v34 = vsel %vm1042_vm10, %v2871_v17, %v1039_v24  ;;  %v1423_v17 = vld [vmem:[#allocation12 + $0x18] sm:$0xff] }
 0x41c   :  { %v1048_v35 = vsel %vm1045_vm11, %v1047_v6, %v1043_v34  ;;  %v1063_v46 = vsel %vm1062_vm14, %v2873_v25, %v1059_v22 }
 0x41d   :  { %v1070_v18 = vmul.f32 %v1048_v35, %v1028_v36  ;;  %v1068_v10 = vsel %vm1065_vm15, %v1067_v33, %v1063_v46  ;;  %v5366_v33 = vld [vmem:[#allocation57_spill] sm:$0xff] }
 0x41e   :  { %v1073_v21 = vsub.f32 1.0, %v1068_v10  ;;  %v1075_v53 = vmul.f32 %v1068_v10, %v4289_v13 }
 0x41f   :  { %v1071_v37 = vadd.f32 %v1070_v18, %v5363_v48 }
 0x421   :  { %2874 = vtanh.f32 %v1071_v37 }
 0x427   :  { %v2875_v50 = vpop.eup %2874 }
 0x428   :  { %v1074_v26 = vmul.f32 %v2875_v50, %v1073_v21 }
 0x42a   :  { %v4350_v56 = vadd.f32 %v1075_v53, %v1074_v26 }
 0x42c   :  { %1097 = vmatmul.f32.vlgmr.msrb.gmra.mxu1 %v4350_v56  ;;  %1117 = vmatmul.f32.vlgmr.msrb.gmra.mxu2 %v4350_v56 }
 0x42d   :  { %1137 = vmatmul.f32.vlgmr.msrb.gmra.mxu3 %v4350_v56  ;;  %1343 = vmatpush.msrb.mxu1 %v4178_v0  ;;  %v1465_v0 = vld [vmem:[#allocation12 + $0x168] sm:$0xff] }
 0x42e   :  { %1476 = vmatpush.msrb.mxu2 %v1465_v0 }
 0x42f   :  { %1344 = vmatpush.msrb.mxu1 %v4183_v31  ;;  %v1462_v31 = vld [vmem:[#allocation12 + $0x150] sm:$0xff] }
 0x430   :  { %1477 = vmatpush.msrb.mxu2 %v1462_v31 }
 0x431   :  { %1345 = vmatpush.msrb.mxu1 %v4188_v1  ;;  %v1459_v1 = vld [vmem:[#allocation12 + $0x138] sm:$0xff] }
 0x432   :  { %1478 = vmatpush.msrb.mxu2 %v1459_v1 }
 0x433   :  { %1346 = vmatpush.msrb.mxu1 %v4193_v43  ;;  %v1456_v43 = vld [vmem:[#allocation12 + $0x120] sm:$0xff] }
 0x434   :  { %1479 = vmatpush.msrb.mxu2 %v1456_v43 }
 0x435   :  { %1347 = vmatpush.msrb.mxu1 %v4198_v3 }
 0x437   :  { %1348 = vmatpush.msrb.mxu1 %v4205_v28  ;;  %v5364_v28 = vld [vmem:[#allocation43_spill] sm:$0xff] }
 0x439   :  { %1349 = vmatpush.msrb.mxu1 %v4212_v41  ;;  %v352_v41 = vadd.f32 %v5364_v28, %v5358_v8  ;;  %v5368_v28 = vld [vmem:[#allocation36_spill] sm:$0xff] }
 0x43b   :  { %1350 = vmatpush.msrb.mxu1 %v4219_v19 }
 0x43d   :  { %1351 = vmatpush.msrb.mxu1 %v4226_v54  ;;  %v1453_v54 = vld [vmem:[#allocation12 + $0x108] sm:$0xff] }
 0x43e   :  { %1480 = vmatpush.msrb.mxu2 %v1453_v54  ;;  %v4396_v54 = vld [vmem:[#allocation15 + $0x138] sm:$0xff] }
 0x43f   :  { %1352 = vmatpush.msrb.mxu1 %v4233_v45 }
 0x441   :  { %1353 = vmatpush.msrb.mxu1 %v4240_v16  ;;  %v1450_v16 = vld [vmem:[#allocation12 + $0xf0] sm:$0xff] }
 0x442   :  { %1481 = vmatpush.msrb.mxu2 %v1450_v16  ;;  %v1466_v16 = vld [vmem:[#allocation12 + $0x170] sm:$0xff] }
 0x443   :  { %1354 = vmatpush.msrb.mxu1 %v4247_v23  ;;  %1517 = vmatpush.msrb.mxu3 %v1466_v16  ;;  %v4439_v16 = vld [vmem:[#allocation15] sm:$0xff] }
 0x444   :  { %5372 = vst [vmem:[#allocation44_spill] sm:$0xff] %v4439_v16 }
 0x445   :  { %1355 = vmatpush.msrb.mxu1 %v4254_v30  ;;  %v1447_v30 = vld [vmem:[#allocation12 + $0xd8] sm:$0xff] }
 0x446   :  { %1482 = vmatpush.msrb.mxu2 %v1447_v30  ;;  %v4402_v30 = vld [vmem:[#allocation15 + $0x108] sm:$0xff] }
 0x447   :  { %1356 = vmatpush.msrb.mxu1 %v4261_v40 }
 0x449   :  { %1357 = vmatpush.msrb.mxu1 %v5352_v2 }
 0x44b   :  { %1358 = vmatpush.msrb.mxu1 %v5355_v47  ;;  %v1444_v47 = vld [vmem:[#allocation12 + $0xc0] sm:$0xff] }
 0x44c   :  { %1483 = vmatpush.msrb.mxu2 %v1444_v47  ;;  %v4405_v47 = vld [vmem:[#allocation15 + $0xf0] sm:$0xff] }
 0x44e   :  { %1484 = vmatpush.msrb.mxu2 %v1441_v62  ;;  %v4408_v62 = vld [vmem:[#allocation15 + $0xd8] sm:$0xff] }
 0x450   :  { %1485 = vmatpush.msrb.mxu2 %v1438_v5 }
 0x452   :  { %1486 = vmatpush.msrb.mxu2 %v1435_v20 }
 0x454   :  { %1487 = vmatpush.msrb.mxu2 %v1432_v42 }
 0x456   :  { %1488 = vmatpush.msrb.mxu2 %v1429_v14  ;;  %v1457_v14 = vld [vmem:[#allocation12 + $0x128] sm:$0xff] }
 0x458   :  { %1489 = vmatpush.msrb.mxu2 %v1426_v15  ;;  %v1458_v15 = vld [vmem:[#allocation12 + $0x130] sm:$0xff] }
 0x45a   :  { %1490 = vmatpush.msrb.mxu2 %v1423_v17 }
 0x45c   :  { %1491 = vmatpush.msrb.mxu2 %v1420_v32 }
 0x4a9   :  { %v1098_v3 = vpop.f32.mrf.mxu1 }
 0x4aa   :  { %v1099_v19 = vadd.f32 %v1098_v3, %v5360_v52  ;;  %v5367_v3 = vld [vmem:[#allocation53_spill] sm:$0xff] }
 0x4ac   :  { %v1141_v45 = vadd.f32 %v1099_v19, %v352_v41  ;;  %v4390_v41 = vld [vmem:[#allocation15 + $0x168] sm:$0xff]  ;;  %v4393_v19 = vld [vmem:[#allocation15 + $0x150] sm:$0xff] }
 0x4ae   :  { %v2766_v23 = vmul.f32 -1.442695, %v1141_v45  ;;  %v4399_v45 = vld [vmem:[#allocation15 + $0x120] sm:$0xff] }
 0x4af   :  { %v1118_v40 = vpop.f32.mrf.mxu2 }
 0x4b0   :  { %2876 = vpow2.f32 %v2766_v23  ;;  %v1119_v2 = vadd.f32 %v1118_v40, %v5361_v58  ;;  %v1138_v12 = vpop.f32.mrf.mxu3  ;;  %v1467_v23 = vld [vmem:[#allocation12 + $0x178] sm:$0xff] }
 0x4b1   :  { %v1139_v35 = vadd.f32 %v1138_v12, %v3969_v57  ;;  %v1463_v40 = vld [vmem:[#allocation12 + $0x158] sm:$0xff] }
 0x4b2   :  { %v1161_v55 = vadd.f32 %v1119_v2, %v5365_v59  ;;  %v1464_v2 = vld [vmem:[#allocation12 + $0x160] sm:$0xff]  ;;  %1518 = vmatpush.msrb.mxu3 %v1463_v40  ;;  %v4422_v12 = vld [vmem:[#allocation15 + $0x90] sm:$0xff] }
 0x4b3   :  { %v1460_v59 = vld [vmem:[#allocation12 + $0x140] sm:$0xff]  ;;  %v1431_v40 = vld [vmem:[#allocation12 + $0x58] sm:$0xff] }
 0x4b4   :  { %v2767_v63 = vmul.f32 -1.442695, %v1161_v55  ;;  %v1461_v55 = vld [vmem:[#allocation12 + $0x148] sm:$0xff]  ;;  %1519 = vmatpush.msrb.mxu3 %v1460_v59  ;;  %v1428_v59 = vld [vmem:[#allocation12 + $0x40] sm:$0xff] }
 0x4b6   :  { %v2877_v9 = vpop.eup %2876  ;;  %2878 = vpow2.f32 %v2767_v63  ;;  %1520 = vmatpush.msrb.mxu3 %v1457_v14 }
 0x4b7   :  { %v1145_v49 = vadd.f32 1.0, %v2877_v9  ;;  %v5369_v9 = vld [vmem:[#allocation47_spill] sm:$0xff] }
 0x4b8   :  { %v355_v20 = vadd.f32 %v5369_v9, %v5358_v8 }
 0x4b9   :  { %2880 = vrcp.f32 %v1145_v49  ;;  %v1157_v27 = vand.u32 2147483648, %v1145_v49  ;;  %v1155_v38 = vand.u32 2147483647, %v1145_v49  ;;  %vm1151_vm1 = vweird.f32 %v1145_v49 }
 0x4bb   :  { %v1158_v36 = vor.u32 1.1754944e-38, %v1157_v27  ;;  %vm1156_vm3 = vcmp.eq.f32.partialorder %v1155_v38, 8.507059e+37  ;;  %v1451_v38 = vld [vmem:[#allocation12 + $0xf8] sm:$0xff] }
 0x4bc   :  { %v2879_v11 = vpop.eup %2878 }
 0x4bd   :  { %v1165_v25 = vadd.f32 1.0, %v2879_v11  ;;  %v4415_v11 = vld [vmem:[#allocation15 + $0xc0] sm:$0xff] }
 0x4bf   :  { %v2881_v51 = vpop.eup %2880  ;;  %2882 = vrcp.f32 %v1165_v25  ;;  %v1177_v44 = vand.u32 2147483648, %v1165_v25  ;;  %v1175_v37 = vand.u32 2147483647, %v1165_v25  ;;  %vm1171_vm5 = vweird.f32 %v1165_v25 }
 0x4c0   :  { %v1147_v61 = vmul.f32 %v2881_v51, %v1145_v49  ;;  %vm1152_vm0 = vweird.f32 %v2881_v51 }
 0x4c1   :  { %vm1153_vm2 = vmor %vm1151_vm1, %vm1152_vm0  ;;  %v1178_v21 = vor.u32 1.1754944e-38, %v1177_v44  ;;  %vm1176_vm7 = vcmp.eq.f32.partialorder %v1175_v37, 8.507059e+37  ;;  %v4431_v44 = vld [vmem:[#allocation15 + $0x48] sm:$0xff]  ;;  %v1439_v37 = vld [vmem:[#allocation12 + $0x98] sm:$0xff] }
 0x4c2   :  { %v1148_v29 = vsub.f32 1.0, %v1147_v61  ;;  %v1455_v61 = vld [vmem:[#allocation12 + $0x118] sm:$0xff] }
 0x4c4   :  { %v1149_v39 = vmul.f32 %v2881_v51, %v1148_v29  ;;  %v4419_v29 = vld [vmem:[#allocation15 + $0xa8] sm:$0xff] }
 0x4c5   :  { %v2883_v7 = vpop.eup %2882 }
 0x4c6   :  { %v1167_v24 = vmul.f32 %v2883_v7, %v1165_v25  ;;  %v1150_v6 = vadd.f32 %v2881_v51, %v1149_v39  ;;  %vm1172_vm4 = vweird.f32 %v2883_v7  ;;  %v5370_v25 = vld [vmem:[#allocation56_spill] sm:$0xff] }
 0x4c7   :  { %vm1173_vm6 = vmor %vm1171_vm5, %vm1172_vm4 }
 0x4c8   :  { %v1168_v34 = vsub.f32 1.0, %v1167_v24  ;;  %v1154_v22 = vsel %vm1153_vm2, %v2881_v51, %v1150_v6  ;;  %v1454_v51 = vld [vmem:[#allocation12 + $0x110] sm:$0xff]  ;;  %v1448_v24 = vld [vmem:[#allocation12 + $0xe0] sm:$0xff]  ;;  %v1449_v6 = vld [vmem:[#allocation12 + $0xe8] sm:$0xff] }
 0x4c9   :  { %v1159_v18 = vsel %vm1156_vm3, %v1158_v36, %v1154_v22  ;;  %1521 = vmatpush.msrb.mxu3 %v1454_v51  ;;  %v4425_v36 = vld [vmem:[#allocation15 + $0x78] sm:$0xff]  ;;  %v4428_v22 = vld [vmem:[#allocation15 + $0x60] sm:$0xff] }
 0x4ca   :  { %v1169_v4 = vmul.f32 %v2883_v7, %v1168_v34  ;;  %v1181_v48 = vmul.f32 %v1159_v18, %v1139_v35  ;;  %v1445_v34 = vld [vmem:[#allocation12 + $0xc8] sm:$0xff]  ;;  %v1446_v35 = vld [vmem:[#allocation12 + $0xd0] sm:$0xff] }
 0x4cb   :  { %1522 = vmatpush.msrb.mxu3 %v1451_v38  ;;  %v1442_v18 = vld [vmem:[#allocation12 + $0xb0] sm:$0xff] }
 0x4cc   :  { %v1170_v46 = vadd.f32 %v2883_v7, %v1169_v4  ;;  %v1182_v10 = vadd.f32 %v1181_v48, %v5366_v33  ;;  %v1443_v4 = vld [vmem:[#allocation12 + $0xb8] sm:$0xff] }
 0x4cd   :  { %1523 = vmatpush.msrb.mxu3 %v1448_v24  ;;  %v4434_v33 = vld [vmem:[#allocation15 + $0x30] sm:$0xff] }
 0x4ce   :  { %v1174_v50 = vsel %vm1173_vm6, %v2883_v7, %v1170_v46  ;;  %2884 = vtanh.f32 %v1182_v10  ;;  %v1452_v7 = vld [vmem:[#allocation12 + $0x100] sm:$0xff] }
 0x4cf   :  { %v1179_v26 = vsel %vm1176_vm7, %v1178_v21, %v1174_v50  ;;  %1524 = vmatpush.msrb.mxu3 %v1445_v34  ;;  %v1440_v46 = vld [vmem:[#allocation12 + $0xa0] sm:$0xff] }
 0x4d0   :  { %v1184_v53 = vsub.f32 1.0, %v1179_v26  ;;  %v1186_v1 = vmul.f32 %v1179_v26, %v4350_v56  ;;  %v1436_v50 = vld [vmem:[#allocation12 + $0x80] sm:$0xff]  ;;  %v1437_v26 = vld [vmem:[#allocation12 + $0x88] sm:$0xff] }
 0x4d1   :  { %1525 = vmatpush.msrb.mxu3 %v1442_v18 }
 0x4d3   :  { %1526 = vmatpush.msrb.mxu3 %v1439_v37 }
 0x4d4   :  { %v2885_v0 = vpop.eup %2884 }
 0x4d5   :  { %v1185_v31 = vmul.f32 %v2885_v0, %v1184_v53  ;;  %v4436_v53 = vld [vmem:[#allocation15 + $0x18] sm:$0xff]  ;;  %1527 = vmatpush.msrb.mxu3 %v1436_v50 }
 0x4d6   :  { %5371 = vst [vmem:[#allocation51_spill] sm:$0xff] %v4436_v53 }
 0x4d7   :  { %v4379_v43 = vadd.f32 %v1186_v1, %v1185_v31  ;;  %v1433_v31 = vld [vmem:[#allocation12 + $0x68] sm:$0xff]  ;;  %v1434_v1 = vld [vmem:[#allocation12 + $0x70] sm:$0xff] }
 0x4d8   :  { %1528 = vmatpush.msrb.mxu3 %v1433_v31 }
 0x4d9   :  { %1208 = vmatmul.f32.vlgmr.msra.gmra.mxu0 %v4379_v43  ;;  %1228 = vmatmul.f32.vlgmr.msra.gmra.mxu1 %v4379_v43 }
 0x4da   :  { %1248 = vmatmul.f32.vlgmr.msra.gmra.mxu2 %v4379_v43  ;;  %1684 = vmatpush.msra.mxu1 %v4390_v41 }
 0x4db   :  { %1558 = vmatpush.msra.mxu0 %v1467_v23  ;;  %v1430_v23 = vld [vmem:[#allocation12 + $0x50] sm:$0xff] }
 0x4dc   :  { %1685 = vmatpush.msra.mxu1 %v4393_v19  ;;  %1529 = vmatpush.msrb.mxu3 %v1430_v23 }
 0x4dd   :  { %1559 = vmatpush.msra.mxu0 %v1464_v2  ;;  %v1427_v2 = vld [vmem:[#allocation12 + $0x38] sm:$0xff] }
 0x4de   :  { %1686 = vmatpush.msra.mxu1 %v4396_v54  ;;  %1530 = vmatpush.msrb.mxu3 %v1427_v2  ;;  %v4458_v2 = vld [vmem:[#allocation15 + $0x140] sm:$0xff] }
 0x4df   :  { %1560 = vmatpush.msra.mxu0 %v1461_v55 }
 0x4e0   :  { %1687 = vmatpush.msra.mxu1 %v4399_v45 }
 0x4e1   :  { %1561 = vmatpush.msra.mxu0 %v1458_v15  ;;  %v1422_v15 = vld [vmem:[#allocation12 + $0x10] sm:$0xff] }
 0x4e2   :  { %1492 = vmatmul.f32.vlgmr.msrb.gmra.mxu2 %v5367_v3  ;;  %1688 = vmatpush.msra.mxu1 %v4402_v30 }
 0x4e3   :  { %1562 = vmatpush.msra.mxu0 %v1455_v61 }
 0x4e4   :  { %1689 = vmatpush.msra.mxu1 %v4405_v47 }
 0x4e5   :  { %1563 = vmatpush.msra.mxu0 %v1452_v7 }
 0x4e6   :  { %1690 = vmatpush.msra.mxu1 %v4408_v62 }
 0x4e7   :  { %1564 = vmatpush.msra.mxu0 %v1449_v6 }
 0x4e8   :  { %1691 = vmatpush.msra.mxu1 %v4415_v11 }
 0x4e9   :  { %1565 = vmatpush.msra.mxu0 %v1446_v35 }
 0x4ea   :  { %1495 = vmatmul.f32.gmra.mxu2 %v5368_v28  ;;  %1692 = vmatpush.msra.mxu1 %v4419_v29 }
 0x4eb   :  { %1566 = vmatpush.msra.mxu0 %v1443_v4 }
 0x4ec   :  { %1693 = vmatpush.msra.mxu1 %v4422_v12 }
 0x4ed   :  { %1567 = vmatpush.msra.mxu0 %v1440_v46 }
 0x4ee   :  { %1694 = vmatpush.msra.mxu1 %v4425_v36 }
 0x4ef   :  { %1568 = vmatpush.msra.mxu0 %v1437_v26 }
 0x4f0   :  { %1695 = vmatpush.msra.mxu1 %v4428_v22 }
 0x4f1   :  { %1569 = vmatpush.msra.mxu0 %v1434_v1 }
 0x4f2   :  { %1498 = vmatmul.f32.gmra.mxu2 %v4173_v60  ;;  %1696 = vmatpush.msra.mxu1 %v4431_v44 }
 0x4f3   :  { %1570 = vmatpush.msra.mxu0 %v1431_v40  ;;  %v4448_v40 = vld [vmem:[#allocation15 + $0x170] sm:$0xff] }
 0x4f4   :  { %1697 = vmatpush.msra.mxu1 %v4434_v33 }
 0x4f5   :  { %1571 = vmatpush.msra.mxu0 %v1428_v59  ;;  %v4463_v59 = vld [vmem:[#allocation15 + $0x128] sm:$0xff] }
 0x4f6   :  { %1698 = vmatpush.msra.mxu1 %v4436_v53 }
 0x4f8   :  { %1699 = vmatpush.msra.mxu1 %v4439_v16 }
 0x4fa   :  { %1501 = vmatmul.f32.gmra.mxu2 %v4289_v13 }
 0x502   :  { %1504 = vmatmul.f32.gmra.mxu2 %v4350_v56 }
 0x50a   :  { %1507 = vmatmul.f32.gmra.mxu2 %v4379_v43 }
 0x556   :  { %v1209_v63 = vpop.f32.mrf.mxu0  ;;  %v1229_v5 = vpop.f32.mrf.mxu1 }
 0x557   :  { %v1210_v49 = vadd.f32 %v1209_v63, %v5360_v52  ;;  %v1230_v42 = vadd.f32 %v1229_v5, %v5361_v58  ;;  %v1424_v63 = vld [vmem:[#allocation12 + $0x20] sm:$0xff]  ;;  %v1425_v5 = vld [vmem:[#allocation12 + $0x28] sm:$0xff] }
 0x558   :  { %1531 = vmatpush.msrb.mxu3 %v1424_v63  ;;  %1572 = vmatpush.msra.mxu0 %v1425_v5  ;;  %v4470_v63 = vld [vmem:[#allocation15 + $0x110] sm:$0xff]  ;;  %v4477_v5 = vld [vmem:[#allocation15 + $0xf8] sm:$0xff] }
 0x559   :  { %v1252_v17 = vadd.f32 %v1210_v49, %v355_v20  ;;  %v1272_v32 = vadd.f32 %v1230_v42, %v5370_v25  ;;  %v1421_v42 = vld [vmem:[#allocation12 + $0x8] sm:$0xff] }
 0x55a   :  { %1532 = vmatpush.msrb.mxu3 %v1421_v42  ;;  %1573 = vmatpush.msra.mxu0 %v1422_v15  ;;  %v4502_v42 = vld [vmem:[#allocation15 + $0x80] sm:$0xff]  ;;  %v4518_v15 = vld [vmem:[#allocation15 + $0x38] sm:$0xff] }
 0x55b   :  { %v2768_v27 = vmul.f32 -1.442695, %v1252_v17  ;;  %v2769_v39 = vmul.f32 -1.442695, %v1272_v32 }
 0x55d   :  { %2886 = vpow2.f32 %v2768_v27  ;;  %v1249_v27 = vpop.f32.mrf.mxu2 }
 0x55e   :  { %2888 = vpow2.f32 %v2769_v39  ;;  %v1250_v7 = vadd.f32 %v1249_v27, %v3969_v57 }
 0x563   :  { %v2887_v48 = vpop.eup %2886 }
 0x564   :  { %v2889_v10 = vpop.eup %2888  ;;  %v1256_v21 = vadd.f32 1.0, %v2887_v48  ;;  %v5373_v48 = vld [vmem:[#allocation58_spill] sm:$0xff] }
 0x565   :  { %v1276_v0 = vadd.f32 1.0, %v2889_v10 }
 0x566   :  { %2890 = vrcp.f32 %v1256_v21  ;;  %v1268_v25 = vand.u32 2147483648, %v1256_v21  ;;  %v1266_v51 = vand.u32 2147483647, %v1256_v21  ;;  %vm1262_vm9 = vweird.f32 %v1256_v21 }
 0x567   :  { %2892 = vrcp.f32 %v1276_v0  ;;  %v1288_v35 = vand.u32 2147483648, %v1276_v0  ;;  %vm1282_vm13 = vweird.f32 %v1276_v0  ;;  %v1286_v4 = vand.u32 2147483647, %v1276_v0 }
 0x568   :  { %v1269_v38 = vor.u32 1.1754944e-38, %v1268_v25  ;;  %vm1267_vm11 = vcmp.eq.f32.partialorder %v1266_v51, 8.507059e+37  ;;  %v4525_v25 = vld [vmem:[#allocation15 + $0x20] sm:$0xff] }
 0x569   :  { %v1289_v10 = vor.u32 1.1754944e-38, %v1288_v35  ;;  %vm1287_vm15 = vcmp.eq.f32.partialorder %v1286_v4, 8.507059e+37  ;;  %5374 = vst [vmem:[#allocation31_spill] sm:$0xff] %v4525_v25  ;;  %v4593_v4 = vld [vmem:[#allocation15 + $0x100] sm:$0xff] }
 0x56c   :  { %v2891_v55 = vpop.eup %2890 }
 0x56d   :  { %v2893_v9 = vpop.eup %2892  ;;  %v1258_v20 = vmul.f32 %v2891_v55, %v1256_v21  ;;  %vm1263_vm8 = vweird.f32 %v2891_v55 }
 0x56e   :  { %v1278_v49 = vmul.f32 %v2893_v9, %v1276_v0  ;;  %vm1264_vm10 = vmor %vm1262_vm9, %vm1263_vm8  ;;  %vm1283_vm12 = vweird.f32 %v2893_v9  ;;  %v4454_v0 = vld [vmem:[#allocation15 + $0x158] sm:$0xff] }
 0x56f   :  { %v1259_v14 = vsub.f32 1.0, %v1258_v20  ;;  %vm1284_vm14 = vmor %vm1282_vm13, %vm1283_vm12  ;;  %v4486_v20 = vld [vmem:[#allocation15 + $0xc8] sm:$0xff] }
 0x570   :  { %v1279_v17 = vsub.f32 1.0, %v1278_v49  ;;  %v4497_v49 = vld [vmem:[#allocation15 + $0x98] sm:$0xff] }
 0x571   :  { %v1260_v32 = vmul.f32 %v2891_v55, %v1259_v14  ;;  %v4507_v14 = vld [vmem:[#allocation15 + $0x68] sm:$0xff] }
 0x572   :  { %v1280_v61 = vmul.f32 %v2893_v9, %v1279_v17  ;;  %v4520_v17 = vld [vmem:[#allocation15 + $0x178] sm:$0xff] }
 0x573   :  { %v1261_v39 = vadd.f32 %v2891_v55, %v1260_v32  ;;  %1724 = vmatpush.msra.mxu2 %v4520_v17  ;;  %v4530_v32 = vld [vmem:[#allocation15 + $0x8] sm:$0xff] }
 0x574   :  { %v1281_v34 = vadd.f32 %v2893_v9, %v1280_v61  ;;  %5375 = vst [vmem:[#allocation32_spill] sm:$0xff] %v4530_v32 }
 0x575   :  { %v1265_v24 = vsel %vm1264_vm10, %v2891_v55, %v1261_v39  ;;  %v4467_v55 = vld [vmem:[#allocation18 + $0x8] sm:$0xff] }
 0x576   :  { %v1270_v6 = vsel %vm1267_vm11, %v1269_v38, %v1265_v24  ;;  %v1285_v46 = vsel %vm1284_vm14, %v2893_v9, %v1281_v34  ;;  %v4481_v9 = vld [vmem:[#allocation15 + $0xe0] sm:$0xff]  ;;  %v4579_v38 = vld [vmem:[#allocation15 + $0x148] sm:$0xff] }
 0x577   :  { %v1292_v18 = vmul.f32 %v1270_v6, %v1250_v7  ;;  %v1290_v21 = vsel %vm1287_vm15, %v1289_v10, %v1285_v46  ;;  %v4581_v7 = vld [vmem:[#allocation15 + $0x130] sm:$0xff]  ;;  %v5378_v6 = vld [vmem:[#allocation48_spill] sm:$0xff] }
 0x578   :  { %v1295_v50 = vsub.f32 1.0, %v1290_v21  ;;  %v1297_v1 = vmul.f32 %v1290_v21, %v4379_v43  ;;  %v358_v34 = vadd.f32 %v5378_v6, %v5358_v8  ;;  %v4610_v10 = vld [vmem:[#allocation15 + $0xb8] sm:$0xff] }
 0x579   :  { %v1293_v37 = vadd.f32 %v1292_v18, %v5373_v48  ;;  %v4588_v18 = vld [vmem:[#allocation15 + $0x118] sm:$0xff]  ;;  %v4598_v48 = vld [vmem:[#allocation15 + $0xe8] sm:$0xff] }
 0x57b   :  { %2894 = vtanh.f32 %v1293_v37  ;;  %v4603_v37 = vld [vmem:[#allocation15 + $0xd0] sm:$0xff] }
 0x581   :  { %v2895_v26 = vpop.eup %2894 }
 0x582   :  { %v1296_v31 = vmul.f32 %v2895_v26, %v1295_v50  ;;  %v4619_v50 = vld [vmem:[#allocation15 + $0xa0] sm:$0xff] }
 0x584   :  { %v4446_v23 = vadd.f32 %v1297_v1, %v1296_v31  ;;  %v4624_v31 = vld [vmem:[#allocation15 + $0x88] sm:$0xff] }
 0x586   :  { %1319 = vmatmul.f32.vlgmr.msra.gmra.mxu3 %v4446_v23  ;;  %1339 = vmatmul.f32.vlgmr.msrb.gmra.mxu0 %v4446_v23 }
 0x587   :  { %1359 = vmatmul.f32.vlgmr.msrb.gmra.mxu1 %v4446_v23  ;;  %1510 = vmatmul.f32.gmra.mxu2 %v4446_v23 }
 0x588   :  { %1704 = vmatpush.msrb.mxu1 %v4448_v40  ;;  %1795 = vmatpush.msra.mxu3 %v4390_v41 }
 0x589   :  { %1815 = vmatpush.msrb.mxu0 %v4448_v40 }
 0x58a   :  { %1705 = vmatpush.msrb.mxu1 %v4454_v0  ;;  %1796 = vmatpush.msra.mxu3 %v4393_v19 }
 0x58b   :  { %1816 = vmatpush.msrb.mxu0 %v4454_v0 }
 0x58c   :  { %1706 = vmatpush.msrb.mxu1 %v4458_v2  ;;  %1797 = vmatpush.msra.mxu3 %v4396_v54 }
 0x58d   :  { %1817 = vmatpush.msrb.mxu0 %v4458_v2 }
 0x58e   :  { %1707 = vmatpush.msrb.mxu1 %v4463_v59  ;;  %1533 = vmatmul.f32.vlgmr.msrb.gmra.mxu3 %v5367_v3 }
 0x58f   :  { %1574 = vmatmul.f32.vlgmr.msra.gmra.mxu0 %v5367_v3  ;;  %1700 = vmatmul.f32.vlgmr.msra.gmra.mxu1 %v4467_v55  ;;  %v4491_v3 = vld [vmem:[#allocation15 + $0xb0] sm:$0xff] }
 0x590   :  { %1708 = vmatpush.msrb.mxu1 %v4470_v63  ;;  %1798 = vmatpush.msra.mxu3 %v4399_v45 }
 0x591   :  { %1818 = vmatpush.msrb.mxu0 %v4463_v59 }
 0x592   :  { %1709 = vmatpush.msrb.mxu1 %v4477_v5  ;;  %1799 = vmatpush.msra.mxu3 %v4402_v30 }
 0x593   :  { %1819 = vmatpush.msrb.mxu0 %v4470_v63 }
 0x594   :  { %1710 = vmatpush.msrb.mxu1 %v4481_v9  ;;  %1800 = vmatpush.msra.mxu3 %v4405_v47 }
 0x595   :  { %1820 = vmatpush.msrb.mxu0 %v4477_v5 }
 0x596   :  { %1711 = vmatpush.msrb.mxu1 %v4486_v20  ;;  %1536 = vmatmul.f32.gmra.mxu3 %v5368_v28 }
 0x597   :  { %1577 = vmatmul.f32.gmra.mxu0 %v5368_v28  ;;  %1801 = vmatpush.msra.mxu3 %v4408_v62  ;;  %v4512_v28 = vld [vmem:[#allocation15 + $0x50] sm:$0xff] }
 0x598   :  { %1712 = vmatpush.msrb.mxu1 %v4491_v3  ;;  %1821 = vmatpush.msrb.mxu0 %v4481_v9 }
 0x599   :  { %1802 = vmatpush.msra.mxu3 %v4415_v11 }
 0x59a   :  { %1713 = vmatpush.msrb.mxu1 %v4497_v49  ;;  %1822 = vmatpush.msrb.mxu0 %v4486_v20 }
 0x59b   :  { %1803 = vmatpush.msra.mxu3 %v4419_v29 }
 0x59c   :  { %1714 = vmatpush.msrb.mxu1 %v4502_v42  ;;  %1823 = vmatpush.msrb.mxu0 %v4491_v3 }
 0x59d   :  { %1804 = vmatpush.msra.mxu3 %v4422_v12 }
 0x59e   :  { %1715 = vmatpush.msrb.mxu1 %v4507_v14  ;;  %1539 = vmatmul.f32.gmra.mxu3 %v4173_v60 }
 0x59f   :  { %1580 = vmatmul.f32.gmra.mxu0 %v4173_v60  ;;  %1805 = vmatpush.msra.mxu3 %v4425_v36  ;;  %v4571_v60 = vld [vmem:[#allocation15 + $0x160] sm:$0xff] }
 0x5a0   :  { %1716 = vmatpush.msrb.mxu1 %v4512_v28  ;;  %1824 = vmatpush.msrb.mxu0 %v4497_v49 }
 0x5a1   :  { %1806 = vmatpush.msra.mxu3 %v4428_v22  ;;  %1725 = vmatpush.msra.mxu2 %v4571_v60 }
 0x5a2   :  { %1717 = vmatpush.msrb.mxu1 %v4518_v15  ;;  %1825 = vmatpush.msrb.mxu0 %v4502_v42 }
 0x5a3   :  { %1807 = vmatpush.msra.mxu3 %v4431_v44  ;;  %1726 = vmatpush.msra.mxu2 %v4579_v38 }
 0x5a4   :  { %1718 = vmatpush.msrb.mxu1 %v4525_v25  ;;  %1826 = vmatpush.msrb.mxu0 %v4507_v14 }
 0x5a5   :  { %1808 = vmatpush.msra.mxu3 %v4434_v33  ;;  %1727 = vmatpush.msra.mxu2 %v4581_v7 }
 0x5a6   :  { %1719 = vmatpush.msrb.mxu1 %v4530_v32  ;;  %1542 = vmatmul.f32.gmra.mxu3 %v4289_v13 }
 0x5a7   :  { %1720 = vmatmul.f32.vlgmr.msrb.gmra.mxu1 %v4467_v55  ;;  %1583 = vmatmul.f32.gmra.mxu0 %v4289_v13 }
 0x5a8   :  { %1835 = vmatpush.msra.mxu1 %v4520_v17  ;;  %1809 = vmatpush.msra.mxu3 %v4436_v53 }
 0x5a9   :  { %1827 = vmatpush.msrb.mxu0 %v4512_v28  ;;  %1728 = vmatpush.msra.mxu2 %v4588_v18 }
 0x5aa   :  { %1810 = vmatpush.msra.mxu3 %v4439_v16  ;;  %1836 = vmatpush.msra.mxu1 %v4571_v60 }
 0x5ab   :  { %1828 = vmatpush.msrb.mxu0 %v4518_v15  ;;  %1729 = vmatpush.msra.mxu2 %v4593_v4 }
 0x5ac   :  { %1926 = vmatpush.msrb.mxu3 %v4448_v40  ;;  %1837 = vmatpush.msra.mxu1 %v4579_v38 }
 0x5ad   :  { %1829 = vmatpush.msrb.mxu0 %v4525_v25  ;;  %1730 = vmatpush.msra.mxu2 %v4598_v48 }
 0x5ae   :  { %1927 = vmatpush.msrb.mxu3 %v4454_v0  ;;  %1838 = vmatpush.msra.mxu1 %v4581_v7 }
 0x5af   :  { %1545 = vmatmul.f32.gmra.mxu3 %v4350_v56  ;;  %1586 = vmatmul.f32.gmra.mxu0 %v4350_v56  ;;  %v5376_v56 = vld [vmem:[#allocation46_spill] sm:$0xff] }
 0x5b0   :  { %1928 = vmatpush.msrb.mxu3 %v4458_v2  ;;  %1830 = vmatpush.msrb.mxu0 %v4530_v32 }
 0x5b1   :  { %1839 = vmatpush.msra.mxu1 %v4588_v18  ;;  %1731 = vmatpush.msra.mxu2 %v4603_v37 }
 0x5b2   :  { %1946 = vmatpush.msra.mxu0 %v4520_v17  ;;  %1929 = vmatpush.msrb.mxu3 %v4463_v59 }
 0x5b3   :  { %1840 = vmatpush.msra.mxu1 %v4593_v4  ;;  %1732 = vmatpush.msra.mxu2 %v4610_v10 }
 0x5b4   :  { %1930 = vmatpush.msrb.mxu3 %v4470_v63  ;;  %1947 = vmatpush.msra.mxu0 %v4571_v60 }
 0x5b5   :  { %1841 = vmatpush.msra.mxu1 %v4598_v48  ;;  %1733 = vmatpush.msra.mxu2 %v4619_v50 }
 0x5b6   :  { %1931 = vmatpush.msrb.mxu3 %v4477_v5  ;;  %1948 = vmatpush.msra.mxu0 %v4579_v38 }
 0x5b7   :  { %1548 = vmatmul.f32.gmra.mxu3 %v4379_v43  ;;  %1589 = vmatmul.f32.gmra.mxu0 %v4379_v43  ;;  %v5377_v43 = vld [vmem:[#allocation30_spill] sm:$0xff] }
 0x5b8   :  { %1932 = vmatpush.msrb.mxu3 %v4481_v9  ;;  %v399_v51 = vadd.f32 %v5377_v43, %v5376_v56  ;;  %1949 = vmatpush.msra.mxu0 %v4581_v7  ;;  %v4636_v56 = vld [vmem:[#allocation15 + $0x58] sm:$0xff] }
 0x5b9   :  { %1842 = vmatpush.msra.mxu1 %v4603_v37  ;;  %1734 = vmatpush.msra.mxu2 %v4624_v31  ;;  %5379 = vst [vmem:[#allocation35_spill] sm:$0xff] %v4636_v56 }
 0x5ba   :  { %1933 = vmatpush.msrb.mxu3 %v4486_v20  ;;  %1950 = vmatpush.msra.mxu0 %v4588_v18 }
 0x5bb   :  { %1843 = vmatpush.msra.mxu1 %v4610_v10 }
 0x5bc   :  { %1934 = vmatpush.msrb.mxu3 %v4491_v3  ;;  %1951 = vmatpush.msra.mxu0 %v4593_v4 }
 0x5bd   :  { %1844 = vmatpush.msra.mxu1 %v4619_v50 }
 0x5be   :  { %1935 = vmatpush.msrb.mxu3 %v4497_v49  ;;  %1952 = vmatpush.msra.mxu0 %v4598_v48 }
 0x5bf   :  { %1551 = vmatmul.f32.gmra.mxu3 %v4446_v23  ;;  %1592 = vmatmul.f32.gmra.mxu0 %v4446_v23 }
 0x5c0   :  { %1936 = vmatpush.msrb.mxu3 %v4502_v42  ;;  %1953 = vmatpush.msra.mxu0 %v4603_v37 }
 0x5c1   :  { %1845 = vmatpush.msra.mxu1 %v4624_v31 }
 0x5c2   :  { %1937 = vmatpush.msrb.mxu3 %v4507_v14  ;;  %1954 = vmatpush.msra.mxu0 %v4610_v10 }
 0x5c4   :  { %1938 = vmatpush.msrb.mxu3 %v4512_v28  ;;  %1955 = vmatpush.msra.mxu0 %v4619_v50 }
 0x5c6   :  { %1939 = vmatpush.msrb.mxu3 %v4518_v15  ;;  %1956 = vmatpush.msra.mxu0 %v4624_v31 }
 0x5c8   :  { %1940 = vmatpush.msrb.mxu3 %v4525_v25 }
 0x5ca   :  { %1941 = vmatpush.msrb.mxu3 %v4530_v32 }
 0x603   :  { %v1340_v13 = vpop.f32.mrf.mxu0 }
 0x604   :  { %v1341_v61 = vadd.f32 %v1340_v13, %v5361_v58  ;;  %v4631_v13 = vld [vmem:[#allocation15 + $0x70] sm:$0xff] }
 0x605   :  { %1735 = vmatpush.msra.mxu2 %v4631_v13  ;;  %1846 = vmatpush.msra.mxu1 %v4631_v13 }
 0x606   :  { %v1383_v27 = vadd.f32 %v1341_v61, %v399_v51  ;;  %1957 = vmatpush.msra.mxu0 %v4631_v13  ;;  %v4643_v51 = vld [vmem:[#allocation15 + $0x40] sm:$0xff] }
 0x607   :  { %1736 = vmatpush.msra.mxu2 %v4636_v56  ;;  %1847 = vmatpush.msra.mxu1 %v4636_v56  ;;  %5380 = vst [vmem:[#allocation34_spill] sm:$0xff] %v4643_v51 }
 0x608   :  { %v2771_v39 = vmul.f32 -1.442695, %v1383_v27  ;;  %1958 = vmatpush.msra.mxu0 %v4636_v56  ;;  %v4647_v27 = vld [vmem:[#allocation15 + $0x28] sm:$0xff] }
 0x609   :  { %v1320_v24 = vpop.f32.mrf.mxu3  ;;  %1737 = vmatpush.msra.mxu2 %v4643_v51  ;;  %5381 = vst [vmem:[#allocation40_spill] sm:$0xff] %v4647_v27  ;;  %1848 = vmatpush.msra.mxu1 %v4643_v51 }
 0x60a   :  { %2896 = vpow2.f32 %v2771_v39  ;;  %v1321_v35 = vadd.f32 %v1320_v24, %v5360_v52  ;;  %v4650_v24 = vld [vmem:[#allocation15 + $0x10] sm:$0xff]  ;;  %1959 = vmatpush.msra.mxu0 %v4643_v51 }
 0x60b   :  { %5382 = vst [vmem:[#allocation49_spill] sm:$0xff] %v4650_v24  ;;  %1738 = vmatpush.msra.mxu2 %v4647_v27  ;;  %1849 = vmatpush.msra.mxu1 %v4647_v27 }
 0x60c   :  { %v1363_v58 = vadd.f32 %v1321_v35, %v358_v34  ;;  %1960 = vmatpush.msra.mxu0 %v4647_v27 }
 0x60d   :  { %1739 = vmatpush.msra.mxu2 %v4650_v24  ;;  %1850 = vmatpush.msra.mxu1 %v4650_v24 }
 0x60e   :  { %v2770_v8 = vmul.f32 -1.442695, %v1363_v58  ;;  %1961 = vmatpush.msra.mxu0 %v4650_v24 }
 0x60f   :  { %1906 = vmatpush.msrb.mxu2 %v4390_v41  ;;  %2017 = vmatpush.msrb.mxu1 %v4390_v41 }
 0x610   :  { %v2897_v52 = vpop.eup %2896  ;;  %2898 = vpow2.f32 %v2770_v8 }
 0x611   :  { %v4606_v46 = vadd.f32 1.0, %v2897_v52  ;;  %v1360_v52 = vpop.f32.mrf.mxu1  ;;  %1907 = vmatpush.msrb.mxu2 %v4393_v19  ;;  %2018 = vmatpush.msrb.mxu1 %v4393_v19 }
 0x613   :  { %2900 = vrcp.f32 %v4606_v46  ;;  %1908 = vmatpush.msrb.mxu2 %v4396_v54  ;;  %2019 = vmatpush.msrb.mxu1 %v4396_v54  ;;  %vm1393_vm5 = vweird.f32 %v4606_v46 }
 0x615   :  { %1909 = vmatpush.msrb.mxu2 %v4399_v45  ;;  %2020 = vmatpush.msrb.mxu1 %v4399_v45 }
 0x616   :  { %v2899_v21 = vpop.eup %2898 }
 0x617   :  { %v1367_v26 = vadd.f32 1.0, %v2899_v21  ;;  %1910 = vmatpush.msrb.mxu2 %v4402_v30  ;;  %2021 = vmatpush.msrb.mxu1 %v4402_v30 }
 0x619   :  { %2902 = vrcp.f32 %v1367_v26  ;;  %v4629_v1 = vpop.eup %2900  ;;  %v1379_v35 = vand.u32 2147483648, %v1367_v26  ;;  %v1377_v8 = vand.u32 2147483647, %v1367_v26  ;;  %vm1373_vm1 = vweird.f32 %v1367_v26  ;;  %1911 = vmatpush.msrb.mxu2 %v4405_v47  ;;  %2022 = vmatpush.msrb.mxu1 %v4405_v47 }
 0x61a   :  { %v1389_v43 = vmul.f32 %v4629_v1, %v4606_v46  ;;  %vm1394_vm4 = vweird.f32 %v4629_v1 }
 0x61b   :  { %vm1378_vm3 = vcmp.eq.f32.partialorder %v1377_v8, 8.507059e+37  ;;  %vm1395_vm6 = vmor %vm1393_vm5, %vm1394_vm4  ;;  %1912 = vmatpush.msrb.mxu2 %v4408_v62  ;;  %2023 = vmatpush.msrb.mxu1 %v4408_v62 }
 0x61c   :  { %v1390_v6 = vsub.f32 1.0, %v1389_v43 }
 0x61d   :  { %1913 = vmatpush.msrb.mxu2 %v4415_v11  ;;  %2024 = vmatpush.msrb.mxu1 %v4415_v11 }
 0x61e   :  { %v1391_v21 = vmul.f32 %v4629_v1, %v1390_v6  ;;  %v5384_v6 = vld [vmem:[#allocation33_spill] sm:$0xff] }
 0x61f   :  { %v2903_v61 = vpop.eup %2902  ;;  %1914 = vmatpush.msrb.mxu2 %v4419_v29  ;;  %2025 = vmatpush.msrb.mxu1 %v4419_v29 }
 0x620   :  { %v1369_v39 = vmul.f32 %v2903_v61, %v1367_v26  ;;  %vm1374_vm0 = vweird.f32 %v2903_v61  ;;  %v1392_v51 = vadd.f32 %v4629_v1, %v1391_v21  ;;  %v5383_v26 = vld [vmem:[#allocation50_spill] sm:$0xff] }
 0x621   :  { %vm1375_vm2 = vmor %vm1373_vm1, %vm1374_vm0  ;;  %1915 = vmatpush.msrb.mxu2 %v4422_v12  ;;  %2026 = vmatpush.msrb.mxu1 %v4422_v12 }
 0x622   :  { %v1370_v34 = vsub.f32 1.0, %v1369_v39  ;;  %v1380_v39 = vor.u32 1.1754944e-38, %v1379_v35  ;;  %v1399_v35 = vand.u32 2147483648, %v4606_v46 }
 0x623   :  { %1916 = vmatpush.msrb.mxu2 %v4425_v36  ;;  %2027 = vmatpush.msrb.mxu1 %v4425_v36 }
 0x624   :  { %v1371_v58 = vmul.f32 %v2903_v61, %v1370_v34  ;;  %v1361_v34 = vadd.f32 %v1360_v52, %v3969_v57  ;;  %v1397_v57 = vand.u32 2147483647, %v4606_v46  ;;  %v1400_v8 = vor.u32 1.1754944e-38, %v1399_v35 }
 0x625   :  { %1917 = vmatpush.msrb.mxu2 %v4428_v22  ;;  %2028 = vmatpush.msrb.mxu1 %v4428_v22 }
 0x626   :  { %v1372_v43 = vadd.f32 %v2903_v61, %v1371_v58  ;;  %v440_v58 = vadd.f32 %v5384_v6, %v5383_v26  ;;  %vm1398_vm7 = vcmp.eq.f32.partialorder %v1397_v57, 8.507059e+37  ;;  %v1701_v26 = vpop.f32.mrf.mxu1 }
 0x627   :  { %1918 = vmatpush.msrb.mxu2 %v4431_v44  ;;  %2029 = vmatpush.msrb.mxu1 %v4431_v44 }
 0x628   :  { %v1376_v27 = vsel %vm1375_vm2, %v2903_v61, %v1372_v43  ;;  %v1671_v43 = vld [vmem:[%s5229_s8] sm:$0x7] }
 0x629   :  { %v1381_v24 = vsel %vm1378_vm3, %v1380_v39, %v1376_v27  ;;  %v1396_v27 = vsel %vm1395_vm6, %v4629_v1, %v1392_v51  ;;  %1919 = vmatpush.msrb.mxu2 %v4434_v33  ;;  %2030 = vmatpush.msrb.mxu1 %v4434_v33  ;;  %v1468_v39 = vld [vmem:[#allocation13] sm:$0x7] }
 0x62a   :  { %v1403_v56 = vmul.f32 %v1381_v24, %v1361_v34  ;;  %v1401_v24 = vsel %vm1398_vm7, %v1400_v8, %v1396_v27  ;;  %v4724_v34 = vperm.slane %v1671_v43, 0 }
 0x62b   :  { %v1406_v46 = vsub.f32 1.0, %v1401_v24  ;;  %v1408_v51 = vmul.f32 %v1401_v24, %v4446_v23  ;;  %1920 = vmatpush.msrb.mxu2 %v4436_v53  ;;  %2031 = vmatpush.msrb.mxu1 %v4436_v53  ;;  %v1493_v23 = vpop.f32.mrf.mxu2  ;;  %v4734_v24 = vperm.slane %v1468_v39, 1 }
 0x62c   :  { %v1404_v61 = vadd.f32 %v1403_v56, %v440_v58  ;;  %5386 = vst [vmem:[#allocation42_spill] sm:$0xff] %v4724_v34  ;;  %v4728_v58 = vperm.slane %v1468_v39, 0  ;;  %v1702_v35 = vadd.f32 %v1701_v26, %v4724_v34 }
 0x62d   :  { %1921 = vmatpush.msrb.mxu2 %v4439_v16  ;;  %2032 = vmatpush.msrb.mxu1 %v4439_v16  ;;  %5390 = vst [vmem:[#allocation45_spill] sm:$0xff] %v4734_v24 }
 0x62e   :  { %2904 = vtanh.f32 %v1404_v61  ;;  %5388 = vst [vmem:[#allocation41_spill] sm:$0xff] %v4728_v58  ;;  %v1494_v57 = vadd.f32 %v1493_v23, %v4728_v58  ;;  %v4732_v61 = vperm.slane %v1671_v43, 1  ;;  %v1721_v8 = vpop.f32.mrf.mxu1 }
 0x630   :  { %5389 = vst [vmem:[#allocation38_spill] sm:$0xff] %v4732_v61  ;;  %v1744_v27 = vadd.f32 %v1702_v35, %v1494_v57 }
 0x633   :  { %v4719_v21 = vpop.f32.mrf.mxu2 }
 0x634   :  { %v2905_v1 = vpop.eup %2904  ;;  %5385 = vst [vmem:[#allocation37_spill] sm:$0xff] %v4719_v21 }
 0x635   :  { %v1407_v56 = vmul.f32 %v2905_v1, %v1406_v46  ;;  %v1534_v46 = vpop.f32.mrf.mxu3 }
 0x637   :  { %v1409_v52 = vadd.f32 %v1408_v51, %v1407_v56  ;;  %v1722_v56 = vadd.f32 %v1721_v8, %v4732_v61  ;;  %v2772_v51 = vmul.f32 -1.442695, %v1744_v27  ;;  %v4750_v61 = vperm.slane %v1468_v39, 2 }
 0x639   :  { %1513 = vmatmul.f32.gmra.mxu2 %v1409_v52  ;;  %1411 = vst [vmem:[#allocation22] sm:$0xff] %v1409_v52  ;;  %1554 = vmatmul.f32.gmra.mxu3 %v1409_v52  ;;  %2906 = vpow2.f32 %v2772_v51 }
 0x63a   :  { %1595 = vmatmul.f32.gmra.mxu0 %v1409_v52  ;;  %v1535_v52 = vadd.f32 %v1534_v46, %v4734_v24 }
 0x63b   :  { %v4726_v6 = vpop.f32.mrf.mxu2 }
 0x63c   :  { %5387 = vst [vmem:[#allocation39_spill] sm:$0xff] %v4726_v6  ;;  %v1764_v6 = vadd.f32 %v1722_v56, %v1535_v52 }
 0x63e   :  { %v2773_v21 = vmul.f32 -1.442695, %v1764_v6 }
 0x63f   :  { %v2907_v23 = vpop.eup %2906 }
 0x640   :  { %2908 = vpow2.f32 %v2773_v21  ;;  %v1748_v34 = vadd.f32 1.0, %v2907_v23  ;;  %v4748_v23 = vperm.slane %v1671_v43, 2 }
 0x641   :  { %1740 = vmatmul.f32.vlgmr.msra.gmra.mxu2 %v4467_v55 }
 0x642   :  { %2037 = vmatpush.msra.mxu2 %v4448_v40  ;;  %2910 = vrcp.f32 %v1748_v34  ;;  %v1760_v21 = vand.u32 2147483648, %v1748_v34  ;;  %vm1754_vm9 = vweird.f32 %v1748_v34 }
 0x643   :  { %v4736_v1 = vpop.f32.mrf.mxu2 }
 0x644   :  { %2038 = vmatpush.msra.mxu2 %v4454_v0  ;;  %5391 = vst [vmem:[#allocation52_spill] sm:$0xff] %v4736_v1 }
 0x646   :  { %2039 = vmatpush.msra.mxu2 %v4458_v2  ;;  %v2909_v35 = vpop.eup %2908 }
 0x647   :  { %v1768_v58 = vadd.f32 1.0, %v2909_v35 }
 0x648   :  { %2040 = vmatpush.msra.mxu2 %v4463_v59 }
 0x649   :  { %2912 = vrcp.f32 %v1768_v58  ;;  %v1780_v43 = vand.u32 2147483648, %v1768_v58  ;;  %vm1774_vm13 = vweird.f32 %v1768_v58 }
 0x64a   :  { %2041 = vmatpush.msra.mxu2 %v4470_v63 }
 0x64b   :  { %v4740_v26 = vpop.f32.mrf.mxu2  ;;  %v1781_v53 = vor.u32 1.1754944e-38, %v1780_v43 }
 0x64c   :  { %2042 = vmatpush.msra.mxu2 %v4477_v5  ;;  %5392 = vst [vmem:[#allocation55_spill] sm:$0xff] %v4740_v26 }
 0x64e   :  { %2043 = vmatpush.msra.mxu2 %v4481_v9 }
 0x650   :  { %2044 = vmatpush.msra.mxu2 %v4486_v20 }
 0x652   :  { %2045 = vmatpush.msra.mxu2 %v4491_v3 }
 0x653   :  { %v4742_v57 = vpop.f32.mrf.mxu2 }
 0x654   :  { %2046 = vmatpush.msra.mxu2 %v4497_v49  ;;  %5393 = vst [vmem:[#allocation43_spill] sm:$0xff] %v4742_v57  ;;  %v1758_v57 = vand.u32 2147483647, %v1748_v34 }
 0x656   :  { %2047 = vmatpush.msra.mxu2 %v4502_v42  ;;  %vm1759_vm11 = vcmp.eq.f32.partialorder %v1758_v57, 8.507059e+37 }
 0x658   :  { %2048 = vmatpush.msra.mxu2 %v4507_v14 }
 0x65a   :  { %2049 = vmatpush.msra.mxu2 %v4512_v28 }
 0x65b   :  { %v4744_v8 = vpop.f32.mrf.mxu2 }
 0x65c   :  { %2050 = vmatpush.msra.mxu2 %v4518_v15  ;;  %5394 = vst [vmem:[#allocation54_spill] sm:$0xff] %v4744_v8  ;;  %v1575_v8 = vpop.f32.mrf.mxu0 }
 0x65e   :  { %2051 = vmatpush.msra.mxu2 %v4525_v25 }
 0x660   :  { %2052 = vmatpush.msra.mxu2 %v4530_v32  ;;  %v2911_v32 = vpop.eup %2910 }
 0x661   :  { %v1750_v1 = vmul.f32 %v2911_v32, %v1748_v34  ;;  %v2913_v27 = vpop.eup %2912  ;;  %vm1755_vm8 = vweird.f32 %v2911_v32  ;;  %v1778_v34 = vand.u32 2147483647, %v1768_v58 }
 0x662   :  { %v1770_v56 = vmul.f32 %v2913_v27, %v1768_v58  ;;  %vm1756_vm10 = vmor %vm1754_vm9, %vm1755_vm8  ;;  %vm1775_vm12 = vweird.f32 %v2913_v27 }
 0x663   :  { %v1751_v46 = vsub.f32 1.0, %v1750_v1  ;;  %v1761_v1 = vor.u32 1.1754944e-38, %v1760_v21  ;;  %vm1776_vm14 = vmor %vm1774_vm13, %vm1775_vm12  ;;  %vm1779_vm15 = vcmp.eq.f32.partialorder %v1778_v34, 8.507059e+37 }
 0x664   :  { %v1771_v52 = vsub.f32 1.0, %v1770_v56 }
 0x665   :  { %v1752_v51 = vmul.f32 %v2911_v32, %v1751_v46 }
 0x666   :  { %v1772_v35 = vmul.f32 %v2913_v27, %v1771_v52 }
 0x667   :  { %v1753_v26 = vadd.f32 %v2911_v32, %v1752_v51 }
 0x668   :  { %v1773_v51 = vadd.f32 %v2913_v27, %v1772_v35 }
 0x669   :  { %v1757_v24 = vsel %vm1756_vm10, %v2911_v32, %v1753_v26 }
 0x66a   :  { %v1762_v56 = vsel %vm1759_vm11, %v1761_v1, %v1757_v24  ;;  %v1777_v39 = vsel %vm1776_vm14, %v2913_v27, %v1773_v51  ;;  %v5414_v51 = vld [vmem:[#allocation38_spill] sm:$0xff] }
 0x66b   :  { %v1782_v32 = vsel %vm1779_vm15, %v1781_v53, %v1777_v39 }
 0x66c   :  { %v1787_v26 = vsub.f32 1.0, %v1782_v32  ;;  %v1789_v57 = vmul.f32 %v1782_v32, %v4467_v55  ;;  %v5415_v32 = vld [vmem:[#allocation41_spill] sm:$0xff] }
 0x6bc   :  { %v4746_v6 = vpop.f32.mrf.mxu2 }
 0x6bd   :  { %5395 = vst [vmem:[#allocation57_spill] sm:$0xff] %v4746_v6  ;;  %v1576_v6 = vadd.f32 %v1575_v8, %v4750_v61 }
 0x6c4   :  { %v1741_v16 = vpop.f32.mrf.mxu2 }
 0x6c5   :  { %v1742_v46 = vadd.f32 %v1741_v16, %v4748_v23 }
 0x6c7   :  { %v1784_v25 = vmul.f32 %v1762_v56, %v1742_v46  ;;  %v5413_v46 = vld [vmem:[#allocation45_spill] sm:$0xff] }
 0x6c9   :  { %v1785_v52 = vadd.f32 %v1784_v25, %v1576_v6 }
 0x6cb   :  { %2914 = vtanh.f32 %v1785_v52 }
 0x6d1   :  { %v2915_v21 = vpop.eup %2914 }
 0x6d2   :  { %v1788_v16 = vmul.f32 %v2915_v21, %v1787_v26  ;;  %v5416_v26 = vld [vmem:[#allocation37_spill] sm:$0xff] }
 0x6d3   :  { %v1497_v21 = vadd.f32 %v5416_v26, %v5415_v32 }
 0x6d4   :  { %v4755_v24 = vadd.f32 %v1789_v57, %v1788_v16  ;;  %v5417_v16 = vld [vmem:[#allocation42_spill] sm:$0xff] }
 0x6d6   :  { %1811 = vmatmul.f32.vlgmr.msra.gmra.mxu3 %v4755_v24  ;;  %1831 = vmatmul.f32.vlgmr.msrb.gmra.mxu0 %v4755_v24 }
 0x6d7   :  { %1851 = vmatmul.f32.vlgmr.msra.gmra.mxu1 %v4755_v24  ;;  %2057 = vmatpush.msra.mxu3 %v4520_v17 }
 0x6d8   :  { %2128 = vmatpush.msrb.mxu0 %v4390_v41  ;;  %2148 = vmatpush.msra.mxu1 %v4448_v40  ;;  %v5396_v41 = vld [vmem:[#allocation35_spill] sm:$0xff] }
 0x6d9   :  { %2058 = vmatpush.msra.mxu3 %v4571_v60 }
 0x6da   :  { %2129 = vmatpush.msrb.mxu0 %v4393_v19  ;;  %2149 = vmatpush.msra.mxu1 %v4454_v0  ;;  %v5397_v19 = vld [vmem:[#allocation34_spill] sm:$0xff] }
 0x6db   :  { %2059 = vmatpush.msra.mxu3 %v4579_v38 }
 0x6dc   :  { %2130 = vmatpush.msrb.mxu0 %v4396_v54  ;;  %2150 = vmatpush.msra.mxu1 %v4458_v2  ;;  %v5398_v54 = vld [vmem:[#allocation40_spill] sm:$0xff] }
 0x6dd   :  { %2060 = vmatpush.msra.mxu3 %v4581_v7 }
 0x6de   :  { %2131 = vmatpush.msrb.mxu0 %v4399_v45  ;;  %2151 = vmatpush.msra.mxu1 %v4463_v59  ;;  %v5399_v45 = vld [vmem:[#allocation51_spill] sm:$0xff] }
 0x6df   :  { %2061 = vmatpush.msra.mxu3 %v4588_v18 }
 0x6e0   :  { %2132 = vmatpush.msrb.mxu0 %v4402_v30  ;;  %2152 = vmatpush.msra.mxu1 %v4470_v63  ;;  %v5400_v30 = vld [vmem:[#allocation31_spill] sm:$0xff] }
 0x6e1   :  { %2062 = vmatpush.msra.mxu3 %v4593_v4 }
 0x6e2   :  { %2133 = vmatpush.msrb.mxu0 %v4405_v47  ;;  %2153 = vmatpush.msra.mxu1 %v4477_v5  ;;  %v5401_v47 = vld [vmem:[#allocation49_spill] sm:$0xff] }
 0x6e3   :  { %2063 = vmatpush.msra.mxu3 %v4598_v48 }
 0x6e4   :  { %2134 = vmatpush.msrb.mxu0 %v4408_v62  ;;  %2154 = vmatpush.msra.mxu1 %v4481_v9  ;;  %v5402_v62 = vld [vmem:[#allocation44_spill] sm:$0xff] }
 0x6e5   :  { %2064 = vmatpush.msra.mxu3 %v4603_v37 }
 0x6e6   :  { %2135 = vmatpush.msrb.mxu0 %v4415_v11  ;;  %2155 = vmatpush.msra.mxu1 %v4486_v20  ;;  %v5403_v11 = vld [vmem:[#allocation32_spill] sm:$0xff] }
 0x6e7   :  { %2065 = vmatpush.msra.mxu3 %v4610_v10 }
 0x6e8   :  { %2136 = vmatpush.msrb.mxu0 %v4419_v29  ;;  %2156 = vmatpush.msra.mxu1 %v4491_v3  ;;  %v1578_v29 = vpop.f32.mrf.mxu0 }
 0x6e9   :  { %2066 = vmatpush.msra.mxu3 %v4619_v50 }
 0x6ea   :  { %2137 = vmatpush.msrb.mxu0 %v4422_v12  ;;  %2157 = vmatpush.msra.mxu1 %v4497_v49  ;;  %v1537_v12 = vpop.f32.mrf.mxu3 }
 0x6eb   :  { %2067 = vmatpush.msra.mxu3 %v4624_v31  ;;  %v1538_v56 = vadd.f32 %v1537_v12, %v5413_v46 }
 0x6ec   :  { %2138 = vmatpush.msrb.mxu0 %v4425_v36  ;;  %2158 = vmatpush.msra.mxu1 %v4502_v42 }
 0x6ed   :  { %2068 = vmatpush.msra.mxu3 %v4631_v13 }
 0x6ee   :  { %2139 = vmatpush.msrb.mxu0 %v4428_v22  ;;  %2159 = vmatpush.msra.mxu1 %v4507_v14 }
 0x6ef   :  { %2069 = vmatpush.msra.mxu3 %v5396_v41 }
 0x6f0   :  { %2140 = vmatpush.msrb.mxu0 %v4431_v44  ;;  %2160 = vmatpush.msra.mxu1 %v4512_v28  ;;  %v4808_v36 = vpop.f32.mrf.mxu0 }
 0x6f1   :  { %2070 = vmatpush.msra.mxu3 %v5397_v19 }
 0x6f2   :  { %2141 = vmatpush.msrb.mxu0 %v4434_v33  ;;  %2161 = vmatpush.msra.mxu1 %v4518_v15  ;;  %v4810_v22 = vpop.f32.mrf.mxu3 }
 0x6f3   :  { %2071 = vmatpush.msra.mxu3 %v5398_v54 }
 0x6f4   :  { %2142 = vmatpush.msrb.mxu0 %v5399_v45  ;;  %2162 = vmatpush.msra.mxu1 %v5400_v30 }
 0x6f5   :  { %2072 = vmatpush.msra.mxu3 %v5401_v47 }
 0x6f6   :  { %2143 = vmatpush.msrb.mxu0 %v5402_v62  ;;  %2163 = vmatpush.msra.mxu1 %v5403_v11 }
 0x6f8   :  { %v4812_v44 = vpop.f32.mrf.mxu0 }
 0x6f9   :  { %5404 = vst [vmem:[#allocation53_spill] sm:$0xff] %v4812_v44 }
 0x6fa   :  { %v4814_v33 = vpop.f32.mrf.mxu3 }
 0x700   :  { %v4816_v53 = vpop.f32.mrf.mxu0 }
 0x701   :  { %5405 = vst [vmem:[#allocation36_spill] sm:$0xff] %v4816_v53 }
 0x702   :  { %v4818_v55 = vpop.f32.mrf.mxu3 }
 0x703   :  { %5406 = vst [vmem:[#allocation47_spill] sm:$0xff] %v4818_v55 }
 0x708   :  { %v4820_v25 = vpop.f32.mrf.mxu0 }
 0x709   :  { %5407 = vst [vmem:[#allocation56_spill] sm:$0xff] %v4820_v25 }
 0x70a   :  { %v4822_v58 = vpop.f32.mrf.mxu3 }
 0x70b   :  { %5408 = vst [vmem:[#allocation58_spill] sm:$0xff] %v4822_v58 }
 0x710   :  { %v4824_v8 = vpop.f32.mrf.mxu0 }
 0x711   :  { %5409 = vst [vmem:[#allocation46_spill] sm:$0xff] %v4824_v8 }
 0x712   :  { %v4826_v27 = vpop.f32.mrf.mxu3 }
 0x713   :  { %5410 = vst [vmem:[#allocation30_spill] sm:$0xff] %v4826_v27 }
 0x718   :  { %v4828_v6 = vpop.f32.mrf.mxu0 }
 0x719   :  { %5411 = vst [vmem:[#allocation48_spill] sm:$0xff] %v4828_v6 }
 0x71a   :  { %v4830_v35 = vpop.f32.mrf.mxu3 }
 0x71b   :  { %5412 = vst [vmem:[#allocation50_spill] sm:$0xff] %v4830_v35 }
 0x753   :  { %v1832_v1 = vpop.f32.mrf.mxu0 }
 0x754   :  { %v1833_v43 = vadd.f32 %v1832_v1, %v5414_v51 }
 0x756   :  { %v1875_v34 = vadd.f32 %v1833_v43, %v1538_v56 }
 0x758   :  { %v2775_v52 = vmul.f32 -1.442695, %v1875_v34 }
 0x759   :  { %v1812_v39 = vpop.f32.mrf.mxu3 }
 0x75a   :  { %2916 = vpow2.f32 %v2775_v52  ;;  %v1813_v57 = vadd.f32 %v1812_v39, %v5417_v16 }
 0x75c   :  { %v1855_v45 = vadd.f32 %v1813_v57, %v1497_v21  ;;  %v1852_v21 = vpop.f32.mrf.mxu1 }
 0x75e   :  { %v2774_v62 = vmul.f32 -1.442695, %v1855_v45  ;;  %v1853_v45 = vadd.f32 %v1852_v21, %v4748_v23 }
 0x760   :  { %v2917_v8 = vpop.eup %2916  ;;  %2918 = vpow2.f32 %v2774_v62 }
 0x761   :  { %v1879_v6 = vadd.f32 1.0, %v2917_v8 }
 0x763   :  { %2920 = vrcp.f32 %v1879_v6  ;;  %vm1885_vm5 = vweird.f32 %v1879_v6 }
 0x766   :  { %v2919_v35 = vpop.eup %2918 }
 0x767   :  { %v1859_v27 = vadd.f32 1.0, %v2919_v35 }
 0x769   :  { %2922 = vrcp.f32 %v1859_v27  ;;  %v2921_v12 = vpop.eup %2920  ;;  %v1871_v58 = vand.u32 2147483648, %v1859_v27  ;;  %v1869_v52 = vand.u32 2147483647, %v1859_v27  ;;  %vm1865_vm1 = vweird.f32 %v1859_v27 }
 0x76a   :  { %v1881_v1 = vmul.f32 %v2921_v12, %v1879_v6  ;;  %vm1886_vm4 = vweird.f32 %v2921_v12 }
 0x76b   :  { %v1872_v8 = vor.u32 1.1754944e-38, %v1871_v58  ;;  %vm1870_vm3 = vcmp.eq.f32.partialorder %v1869_v52, 8.507059e+37  ;;  %vm1887_vm6 = vmor %vm1885_vm5, %vm1886_vm4 }
 0x76c   :  { %v1882_v34 = vsub.f32 1.0, %v1881_v1  ;;  %v1579_v1 = vadd.f32 %v1578_v29, %v4750_v61  ;;  %v4846_v29 = vld [vmem:[#allocation15 + $0x168] sm:$0xff] }
 0x76e   :  { %v1883_v39 = vmul.f32 %v2921_v12, %v1882_v34 }
 0x76f   :  { %v2923_v56 = vpop.eup %2922 }
 0x770   :  { %v1861_v43 = vmul.f32 %v2923_v56, %v1859_v27  ;;  %vm1866_vm0 = vweird.f32 %v2923_v56  ;;  %v1884_v53 = vadd.f32 %v2921_v12, %v1883_v39 }
 0x771   :  { %vm1867_vm2 = vmor %vm1865_vm1, %vm1866_vm0 }
 0x772   :  { %v1862_v25 = vsub.f32 1.0, %v1861_v43  ;;  %v1891_v43 = vand.u32 2147483648, %v1879_v6  ;;  %v1888_v44 = vsel %vm1887_vm6, %v2921_v12, %v1884_v53  ;;  %v4856_v53 = vld [vmem:[#allocation15 + $0x138] sm:$0xff]  ;;  %v1541_v12 = vadd.f32 %v4810_v22, %v5413_v46 }
 0x774   :  { %v1863_v26 = vmul.f32 %v2923_v56, %v1862_v25  ;;  %v1889_v25 = vand.u32 2147483647, %v1879_v6 }
 0x776   :  { %v1864_v57 = vadd.f32 %v2923_v56, %v1863_v26  ;;  %v1892_v26 = vor.u32 1.1754944e-38, %v1891_v43  ;;  %vm1890_vm7 = vcmp.eq.f32.partialorder %v1889_v25, 8.507059e+37 }
 0x778   :  { %v1868_v35 = vsel %vm1867_vm2, %v2923_v56, %v1864_v57  ;;  %v1893_v58 = vsel %vm1890_vm7, %v1892_v26, %v1888_v44  ;;  %v4851_v44 = vld [vmem:[#allocation15 + $0x150] sm:$0xff] }
 0x779   :  { %v1873_v62 = vsel %vm1870_vm3, %v1872_v8, %v1868_v35  ;;  %v1898_v27 = vsub.f32 1.0, %v1893_v58  ;;  %v1900_v52 = vmul.f32 %v1893_v58, %v4755_v24 }
 0x77a   :  { %v1895_v55 = vmul.f32 %v1873_v62, %v1853_v45 }
 0x77c   :  { %v1896_v34 = vadd.f32 %v1895_v55, %v1579_v1 }
 0x77e   :  { %2924 = vtanh.f32 %v1896_v34 }
 0x784   :  { %v2925_v21 = vpop.eup %2924 }
 0x785   :  { %v1899_v56 = vmul.f32 %v2925_v21, %v1898_v27 }
 0x787   :  { %v4840_v57 = vadd.f32 %v1900_v52, %v1899_v56 }
 0x789   :  { %1922 = vmatmul.f32.vlgmr.msrb.gmra.mxu2 %v4840_v57  ;;  %1942 = vmatmul.f32.vlgmr.msrb.gmra.mxu3 %v4840_v57 }
 0x78a   :  { %1962 = vmatmul.f32.vlgmr.msra.gmra.mxu0 %v4840_v57  ;;  %2168 = vmatpush.msrb.mxu2 %v4520_v17  ;;  %v4861_v17 = vld [vmem:[#allocation15 + $0x120] sm:$0xff] }
 0x78b   :  { %2239 = vmatpush.msrb.mxu3 %v4846_v29  ;;  %2259 = vmatpush.msra.mxu0 %v4448_v40  ;;  %v4866_v40 = vld [vmem:[#allocation15 + $0x108] sm:$0xff] }
 0x78c   :  { %2169 = vmatpush.msrb.mxu2 %v4571_v60 }
 0x78d   :  { %2240 = vmatpush.msrb.mxu3 %v4851_v44  ;;  %2260 = vmatpush.msra.mxu0 %v4454_v0  ;;  %v4871_v0 = vld [vmem:[#allocation15 + $0xf0] sm:$0xff] }
 0x78e   :  { %2170 = vmatpush.msrb.mxu2 %v4579_v38 }
 0x78f   :  { %2241 = vmatpush.msrb.mxu3 %v4856_v53  ;;  %2261 = vmatpush.msra.mxu0 %v4458_v2  ;;  %v4876_v2 = vld [vmem:[#allocation15 + $0xd8] sm:$0xff] }
 0x790   :  { %2171 = vmatpush.msrb.mxu2 %v4581_v7 }
 0x791   :  { %2242 = vmatpush.msrb.mxu3 %v4861_v17  ;;  %2262 = vmatpush.msra.mxu0 %v4463_v59  ;;  %v4881_v59 = vld [vmem:[#allocation15 + $0xc0] sm:$0xff] }
 0x792   :  { %2172 = vmatpush.msrb.mxu2 %v4588_v18 }
 0x793   :  { %2243 = vmatpush.msrb.mxu3 %v4866_v40  ;;  %2263 = vmatpush.msra.mxu0 %v4470_v63  ;;  %v4886_v63 = vld [vmem:[#allocation15 + $0xa8] sm:$0xff] }
 0x794   :  { %2173 = vmatpush.msrb.mxu2 %v4593_v4 }
 0x795   :  { %2244 = vmatpush.msrb.mxu3 %v4871_v0  ;;  %2264 = vmatpush.msra.mxu0 %v4477_v5  ;;  %v4891_v5 = vld [vmem:[#allocation15 + $0x90] sm:$0xff] }
 0x796   :  { %2174 = vmatpush.msrb.mxu2 %v4598_v48 }
 0x797   :  { %2245 = vmatpush.msrb.mxu3 %v4876_v2  ;;  %2265 = vmatpush.msra.mxu0 %v4481_v9  ;;  %v4896_v9 = vld [vmem:[#allocation15 + $0x78] sm:$0xff] }
 0x798   :  { %2175 = vmatpush.msrb.mxu2 %v4603_v37 }
 0x799   :  { %2246 = vmatpush.msrb.mxu3 %v4881_v59  ;;  %2266 = vmatpush.msra.mxu0 %v4486_v20  ;;  %v4901_v20 = vld [vmem:[#allocation15 + $0x60] sm:$0xff] }
 0x79a   :  { %2176 = vmatpush.msrb.mxu2 %v4610_v10 }
 0x79b   :  { %2247 = vmatpush.msrb.mxu3 %v4886_v63  ;;  %2267 = vmatpush.msra.mxu0 %v4491_v3  ;;  %v4906_v3 = vld [vmem:[#allocation15 + $0x48] sm:$0xff] }
 0x79c   :  { %2177 = vmatpush.msrb.mxu2 %v4619_v50 }
 0x79d   :  { %2248 = vmatpush.msrb.mxu3 %v4891_v5  ;;  %2268 = vmatpush.msra.mxu0 %v4497_v49  ;;  %v4911_v49 = vld [vmem:[#allocation15 + $0x30] sm:$0xff] }
 0x79e   :  { %2178 = vmatpush.msrb.mxu2 %v4624_v31 }
 0x79f   :  { %2249 = vmatpush.msrb.mxu3 %v4896_v9  ;;  %2269 = vmatpush.msra.mxu0 %v4502_v42  ;;  %v4916_v42 = vld [vmem:[#allocation15 + $0x18] sm:$0xff] }
 0x7a0   :  { %2179 = vmatpush.msrb.mxu2 %v4631_v13 }
 0x7a1   :  { %2250 = vmatpush.msrb.mxu3 %v4901_v20  ;;  %2270 = vmatpush.msra.mxu0 %v4507_v14  ;;  %v4921_v14 = vld [vmem:[#allocation15] sm:$0xff] }
 0x7a2   :  { %2180 = vmatpush.msrb.mxu2 %v5396_v41 }
 0x7a3   :  { %2251 = vmatpush.msrb.mxu3 %v4906_v3  ;;  %2271 = vmatpush.msra.mxu0 %v4512_v28 }
 0x7a4   :  { %2181 = vmatpush.msrb.mxu2 %v5397_v19 }
 0x7a5   :  { %2252 = vmatpush.msrb.mxu3 %v4911_v49  ;;  %2272 = vmatpush.msra.mxu0 %v4518_v15  ;;  %v5418_v15 = vld [vmem:[#allocation39_spill] sm:$0xff] }
 0x7a6   :  { %2182 = vmatpush.msrb.mxu2 %v5398_v54  ;;  %v1500_v6 = vadd.f32 %v5418_v15, %v5415_v32 }
 0x7a7   :  { %2253 = vmatpush.msrb.mxu3 %v4916_v42  ;;  %2273 = vmatpush.msra.mxu0 %v5400_v30 }
 0x7a8   :  { %2183 = vmatpush.msrb.mxu2 %v5401_v47 }
 0x7a9   :  { %2254 = vmatpush.msrb.mxu3 %v4921_v14  ;;  %2274 = vmatpush.msra.mxu0 %v5403_v11 }
 0x80c   :  { %v1923_v28 = vpop.f32.mrf.mxu2  ;;  %v1943_v55 = vpop.f32.mrf.mxu3 }
 0x80d   :  { %v1924_v39 = vadd.f32 %v1923_v28, %v5417_v16  ;;  %v1944_v30 = vadd.f32 %v1943_v55, %v5414_v51  ;;  %v1963_v55 = vpop.f32.mrf.mxu0 }
 0x80f   :  { %v1966_v8 = vadd.f32 %v1924_v39, %v1500_v6  ;;  %v1986_v45 = vadd.f32 %v1944_v30, %v1541_v12  ;;  %v1964_v39 = vadd.f32 %v1963_v55, %v4748_v23  ;;  %v4954_v55 = vld [vmem:[#allocation15 + $0x140] sm:$0xff] }
 0x811   :  { %v2776_v35 = vmul.f32 -1.442695, %v1966_v8  ;;  %v2777_v62 = vmul.f32 -1.442695, %v1986_v45 }
 0x813   :  { %2926 = vpow2.f32 %v2776_v35  ;;  %v1582_v35 = vadd.f32 %v4808_v36, %v4750_v61  ;;  %v4940_v36 = vld [vmem:[#allocation15 + $0x178] sm:$0xff] }
 0x814   :  { %2928 = vpow2.f32 %v2777_v62 }
 0x819   :  { %v2927_v1 = vpop.eup %2926 }
 0x81a   :  { %v2929_v11 = vpop.eup %2928  ;;  %v1970_v43 = vadd.f32 1.0, %v2927_v1 }
 0x81b   :  { %v1990_v25 = vadd.f32 1.0, %v2929_v11 }
 0x81c   :  { %2930 = vrcp.f32 %v1970_v43  ;;  %v1982_v21 = vand.u32 2147483648, %v1970_v43  ;;  %v1980_v28 = vand.u32 2147483647, %v1970_v43  ;;  %vm1976_vm9 = vweird.f32 %v1970_v43 }
 0x81d   :  { %2932 = vrcp.f32 %v1990_v25  ;;  %v2002_v1 = vand.u32 2147483648, %v1990_v25  ;;  %vm1996_vm13 = vweird.f32 %v1990_v25  ;;  %v2000_v11 = vand.u32 2147483647, %v1990_v25 }
 0x81e   :  { %v1983_v12 = vor.u32 1.1754944e-38, %v1982_v21  ;;  %vm1981_vm11 = vcmp.eq.f32.partialorder %v1980_v28, 8.507059e+37 }
 0x81f   :  { %vm2001_vm15 = vcmp.eq.f32.partialorder %v2000_v11, 8.507059e+37 }
 0x822   :  { %v2931_v34 = vpop.eup %2930 }
 0x823   :  { %v2933_v26 = vpop.eup %2932  ;;  %v1972_v58 = vmul.f32 %v2931_v34, %v1970_v43  ;;  %vm1977_vm8 = vweird.f32 %v2931_v34  ;;  %v2003_v43 = vor.u32 1.1754944e-38, %v2002_v1 }
 0x824   :  { %v1992_v22 = vmul.f32 %v2933_v26, %v1990_v25  ;;  %vm1978_vm10 = vmor %vm1976_vm9, %vm1977_vm8  ;;  %vm1997_vm12 = vweird.f32 %v2933_v26  ;;  %v4944_v25 = vld [vmem:[#allocation15 + $0x170] sm:$0xff] }
 0x825   :  { %v1973_v27 = vsub.f32 1.0, %v1972_v58  ;;  %vm1998_vm14 = vmor %vm1996_vm13, %vm1997_vm12 }
 0x826   :  { %v1993_v56 = vsub.f32 1.0, %v1992_v22 }
 0x827   :  { %v1974_v52 = vmul.f32 %v2931_v34, %v1973_v27 }
 0x828   :  { %v1994_v15 = vmul.f32 %v2933_v26, %v1993_v56 }
 0x829   :  { %v1975_v6 = vadd.f32 %v2931_v34, %v1974_v52 }
 0x82a   :  { %v1995_v45 = vadd.f32 %v2933_v26, %v1994_v15  ;;  %v4959_v15 = vld [vmem:[#allocation15 + $0x128] sm:$0xff] }
 0x82b   :  { %v1979_v30 = vsel %vm1978_vm10, %v2931_v34, %v1975_v6  ;;  %v5419_v6 = vld [vmem:[#allocation52_spill] sm:$0xff] }
 0x82c   :  { %v1984_v8 = vsel %vm1981_vm11, %v1983_v12, %v1979_v30  ;;  %v1999_v22 = vsel %vm1998_vm14, %v2933_v26, %v1995_v45  ;;  %v4949_v26 = vld [vmem:[#allocation15 + $0x158] sm:$0xff]  ;;  %v1503_v12 = vadd.f32 %v5419_v6, %v5415_v32  ;;  %v1544_v45 = vadd.f32 %v4814_v33, %v5413_v46 }
 0x82d   :  { %v2006_v62 = vmul.f32 %v1984_v8, %v1964_v39  ;;  %v2004_v27 = vsel %vm2001_vm15, %v2003_v43, %v1999_v22 }
 0x82e   :  { %v2009_v21 = vsub.f32 1.0, %v2004_v27  ;;  %v2011_v52 = vmul.f32 %v2004_v27, %v4840_v57 }
 0x82f   :  { %v2007_v58 = vadd.f32 %v2006_v62, %v1582_v35 }
 0x831   :  { %2934 = vtanh.f32 %v2007_v58 }
 0x837   :  { %v2935_v34 = vpop.eup %2934 }
 0x838   :  { %v2010_v56 = vmul.f32 %v2935_v34, %v2009_v21 }
 0x83a   :  { %v4935_v28 = vadd.f32 %v2011_v52, %v2010_v56 }
 0x83c   :  { %2033 = vmatmul.f32.vlgmr.msrb.gmra.mxu1 %v4935_v28  ;;  %2053 = vmatmul.f32.vlgmr.msra.gmra.mxu2 %v4935_v28 }
 0x83d   :  { %2073 = vmatmul.f32.vlgmr.msra.gmra.mxu3 %v4935_v28  ;;  %2279 = vmatpush.msrb.mxu1 %v4940_v36 }
 0x83e   :  { %2350 = vmatpush.msra.mxu2 %v4846_v29  ;;  %2370 = vmatpush.msra.mxu3 %v4944_v25 }
 0x83f   :  { %2280 = vmatpush.msrb.mxu1 %v4571_v60  ;;  %v4964_v60 = vld [vmem:[#allocation15 + $0x110] sm:$0xff] }
 0x840   :  { %2351 = vmatpush.msra.mxu2 %v4851_v44  ;;  %2371 = vmatpush.msra.mxu3 %v4949_v26 }
 0x841   :  { %2281 = vmatpush.msrb.mxu1 %v4579_v38  ;;  %v4969_v38 = vld [vmem:[#allocation15 + $0xf8] sm:$0xff] }
 0x842   :  { %2352 = vmatpush.msra.mxu2 %v4856_v53  ;;  %2372 = vmatpush.msra.mxu3 %v4954_v55 }
 0x843   :  { %2282 = vmatpush.msrb.mxu1 %v4581_v7  ;;  %v4974_v7 = vld [vmem:[#allocation15 + $0xe0] sm:$0xff] }
 0x844   :  { %2353 = vmatpush.msra.mxu2 %v4861_v17  ;;  %2373 = vmatpush.msra.mxu3 %v4959_v15 }
 0x845   :  { %2283 = vmatpush.msrb.mxu1 %v4588_v18  ;;  %v4979_v18 = vld [vmem:[#allocation15 + $0xc8] sm:$0xff] }
 0x846   :  { %2354 = vmatpush.msra.mxu2 %v4866_v40  ;;  %2374 = vmatpush.msra.mxu3 %v4964_v60 }
 0x847   :  { %2284 = vmatpush.msrb.mxu1 %v4593_v4  ;;  %v4984_v4 = vld [vmem:[#allocation15 + $0xb0] sm:$0xff] }
 0x848   :  { %2355 = vmatpush.msra.mxu2 %v4871_v0  ;;  %2375 = vmatpush.msra.mxu3 %v4969_v38 }
 0x849   :  { %2285 = vmatpush.msrb.mxu1 %v4598_v48  ;;  %v4989_v48 = vld [vmem:[#allocation15 + $0x98] sm:$0xff] }
 0x84a   :  { %2356 = vmatpush.msra.mxu2 %v4876_v2  ;;  %2376 = vmatpush.msra.mxu3 %v4974_v7 }
 0x84b   :  { %2286 = vmatpush.msrb.mxu1 %v4603_v37  ;;  %v4994_v37 = vld [vmem:[#allocation15 + $0x80] sm:$0xff] }
 0x84c   :  { %2357 = vmatpush.msra.mxu2 %v4881_v59  ;;  %2377 = vmatpush.msra.mxu3 %v4979_v18 }
 0x84d   :  { %2287 = vmatpush.msrb.mxu1 %v4610_v10  ;;  %v4999_v10 = vld [vmem:[#allocation15 + $0x68] sm:$0xff] }
 0x84e   :  { %2358 = vmatpush.msra.mxu2 %v4886_v63  ;;  %2378 = vmatpush.msra.mxu3 %v4984_v4 }
 0x84f   :  { %2288 = vmatpush.msrb.mxu1 %v4619_v50  ;;  %v5004_v50 = vld [vmem:[#allocation15 + $0x50] sm:$0xff] }
 0x850   :  { %2359 = vmatpush.msra.mxu2 %v4891_v5  ;;  %2379 = vmatpush.msra.mxu3 %v4989_v48 }
 0x851   :  { %2289 = vmatpush.msrb.mxu1 %v4624_v31  ;;  %v5009_v31 = vld [vmem:[#allocation15 + $0x38] sm:$0xff] }
 0x852   :  { %2360 = vmatpush.msra.mxu2 %v4896_v9  ;;  %2380 = vmatpush.msra.mxu3 %v4994_v37 }
 0x853   :  { %2290 = vmatpush.msrb.mxu1 %v4631_v13  ;;  %v5014_v13 = vld [vmem:[#allocation15 + $0x20] sm:$0xff] }
 0x854   :  { %2361 = vmatpush.msra.mxu2 %v4901_v20  ;;  %2381 = vmatpush.msra.mxu3 %v4999_v10 }
 0x855   :  { %2291 = vmatpush.msrb.mxu1 %v5396_v41  ;;  %v5019_v41 = vld [vmem:[#allocation15 + $0x8] sm:$0xff] }
 0x856   :  { %2362 = vmatpush.msra.mxu2 %v4906_v3  ;;  %2382 = vmatpush.msra.mxu3 %v5004_v50 }
 0x857   :  { %2292 = vmatpush.msrb.mxu1 %v5397_v19 }
 0x858   :  { %2363 = vmatpush.msra.mxu2 %v4911_v49  ;;  %2383 = vmatpush.msra.mxu3 %v5009_v31 }
 0x859   :  { %2293 = vmatpush.msrb.mxu1 %v5398_v54 }
 0x85a   :  { %2364 = vmatpush.msra.mxu2 %v4916_v42  ;;  %2384 = vmatpush.msra.mxu3 %v5014_v13 }
 0x85b   :  { %2294 = vmatpush.msrb.mxu1 %v5401_v47 }
 0x85c   :  { %2365 = vmatpush.msra.mxu2 %v4921_v14  ;;  %2385 = vmatpush.msra.mxu3 %v5019_v41 }
 0x8b9   :  { %v2034_v19 = vpop.f32.mrf.mxu1 }
 0x8ba   :  { %v2035_v54 = vadd.f32 %v2034_v19, %v5417_v16 }
 0x8bc   :  { %v2077_v39 = vadd.f32 %v2035_v54, %v1503_v12 }
 0x8be   :  { %v2778_v30 = vmul.f32 -1.442695, %v2077_v39 }
 0x8bf   :  { %v2054_v8 = vpop.f32.mrf.mxu2 }
 0x8c0   :  { %2936 = vpow2.f32 %v2778_v30  ;;  %v2055_v47 = vadd.f32 %v2054_v8, %v5414_v51  ;;  %v2074_v19 = vpop.f32.mrf.mxu3 }
 0x8c1   :  { %v2075_v30 = vadd.f32 %v2074_v19, %v4748_v23 }
 0x8c2   :  { %v2097_v35 = vadd.f32 %v2055_v47, %v1544_v45  ;;  %v5420_v45 = vld [vmem:[#allocation53_spill] sm:$0xff] }
 0x8c3   :  { %v1585_v47 = vadd.f32 %v5420_v45, %v4750_v61 }
 0x8c4   :  { %v2779_v62 = vmul.f32 -1.442695, %v2097_v35 }
 0x8c6   :  { %v2937_v1 = vpop.eup %2936  ;;  %2938 = vpow2.f32 %v2779_v62 }
 0x8c7   :  { %v2081_v11 = vadd.f32 1.0, %v2937_v1 }
 0x8c9   :  { %2940 = vrcp.f32 %v2081_v11  ;;  %v2093_v34 = vand.u32 2147483648, %v2081_v11  ;;  %v2091_v52 = vand.u32 2147483647, %v2081_v11  ;;  %vm2087_vm1 = vweird.f32 %v2081_v11 }
 0x8cb   :  { %v2094_v54 = vor.u32 1.1754944e-38, %v2093_v34  ;;  %vm2092_vm3 = vcmp.eq.f32.partialorder %v2091_v52, 8.507059e+37 }
 0x8cc   :  { %v2939_v58 = vpop.eup %2938 }
 0x8cd   :  { %v2101_v22 = vadd.f32 1.0, %v2939_v58 }
 0x8cf   :  { %v2941_v43 = vpop.eup %2940  ;;  %2942 = vrcp.f32 %v2101_v22  ;;  %v2113_v1 = vand.u32 2147483648, %v2101_v22  ;;  %vm2107_vm5 = vweird.f32 %v2101_v22 }
 0x8d0   :  { %v2083_v27 = vmul.f32 %v2941_v43, %v2081_v11  ;;  %vm2088_vm0 = vweird.f32 %v2941_v43 }
 0x8d1   :  { %vm2089_vm2 = vmor %vm2087_vm1, %vm2088_vm0  ;;  %v2114_v11 = vor.u32 1.1754944e-38, %v2113_v1 }
 0x8d2   :  { %v2084_v21 = vsub.f32 1.0, %v2083_v27  ;;  %v2111_v27 = vand.u32 2147483647, %v2101_v22 }
 0x8d4   :  { %v2085_v56 = vmul.f32 %v2941_v43, %v2084_v21  ;;  %vm2112_vm7 = vcmp.eq.f32.partialorder %v2111_v27, 8.507059e+37 }
 0x8d5   :  { %v2943_v33 = vpop.eup %2942 }
 0x8d6   :  { %v2103_v6 = vmul.f32 %v2943_v33, %v2101_v22  ;;  %v2086_v12 = vadd.f32 %v2941_v43, %v2085_v56  ;;  %vm2108_vm4 = vweird.f32 %v2943_v33  ;;  %v5040_v22 = vld [vmem:[#allocation15 + $0x160] sm:$0xff] }
 0x8d7   :  { %vm2109_vm6 = vmor %vm2107_vm5, %vm2108_vm4 }
 0x8d8   :  { %v2104_v39 = vsub.f32 1.0, %v2103_v6  ;;  %v2090_v8 = vsel %vm2089_vm2, %v2941_v43, %v2086_v12 }
 0x8d9   :  { %v2095_v35 = vsel %vm2092_vm3, %v2094_v54, %v2090_v8 }
 0x8da   :  { %v2105_v62 = vmul.f32 %v2943_v33, %v2104_v39  ;;  %v2117_v58 = vmul.f32 %v2095_v35, %v2075_v30  ;;  %v5050_v39 = vld [vmem:[#allocation15 + $0x130] sm:$0xff] }
 0x8dc   :  { %v2106_v21 = vadd.f32 %v2943_v33, %v2105_v62  ;;  %v2118_v56 = vadd.f32 %v2117_v58, %v1585_v47 }
 0x8de   :  { %v2110_v34 = vsel %vm2109_vm6, %v2943_v33, %v2106_v21  ;;  %2944 = vtanh.f32 %v2118_v56  ;;  %v5045_v33 = vld [vmem:[#allocation15 + $0x148] sm:$0xff] }
 0x8df   :  { %v2115_v19 = vsel %vm2112_vm7, %v2114_v11, %v2110_v34 }
 0x8e0   :  { %v2120_v43 = vsub.f32 1.0, %v2115_v19  ;;  %v2122_v12 = vmul.f32 %v2115_v19, %v4935_v28  ;;  %v5423_v19 = vld [vmem:[#allocation36_spill] sm:$0xff] }
 0x8e4   :  { %v2945_v52 = vpop.eup %2944 }
 0x8e5   :  { %v2121_v6 = vmul.f32 %v2945_v52, %v2120_v43  ;;  %v1588_v43 = vadd.f32 %v5423_v19, %v4750_v61 }
 0x8e7   :  { %v5032_v54 = vadd.f32 %v2122_v12, %v2121_v6 }
 0x8e9   :  { %2144 = vmatmul.f32.vlgmr.msrb.gmra.mxu0 %v5032_v54  ;;  %2164 = vmatmul.f32.vlgmr.msra.gmra.mxu1 %v5032_v54 }
 0x8ea   :  { %2184 = vmatmul.f32.vlgmr.msrb.gmra.mxu2 %v5032_v54  ;;  %2390 = vmatpush.msrb.mxu0 %v4940_v36 }
 0x8eb   :  { %2461 = vmatpush.msra.mxu1 %v4846_v29  ;;  %2481 = vmatpush.msrb.mxu2 %v4944_v25  ;;  %v5055_v29 = vld [vmem:[#allocation15 + $0x118] sm:$0xff]  ;;  %v5421_v25 = vld [vmem:[#allocation55_spill] sm:$0xff] }
 0x8ec   :  { %2391 = vmatpush.msrb.mxu0 %v5040_v22 }
 0x8ed   :  { %2462 = vmatpush.msra.mxu1 %v4851_v44  ;;  %2482 = vmatpush.msrb.mxu2 %v4949_v26  ;;  %v5060_v44 = vld [vmem:[#allocation15 + $0x100] sm:$0xff]  ;;  %v1506_v26 = vadd.f32 %v5421_v25, %v5415_v32 }
 0x8ee   :  { %2392 = vmatpush.msrb.mxu0 %v5045_v33 }
 0x8ef   :  { %2463 = vmatpush.msra.mxu1 %v4856_v53  ;;  %2483 = vmatpush.msrb.mxu2 %v4954_v55  ;;  %v5065_v53 = vld [vmem:[#allocation15 + $0xe8] sm:$0xff]  ;;  %v5422_v55 = vld [vmem:[#allocation47_spill] sm:$0xff] }
 0x8f0   :  { %2393 = vmatpush.msrb.mxu0 %v5050_v39 }
 0x8f1   :  { %2464 = vmatpush.msra.mxu1 %v4861_v17  ;;  %2484 = vmatpush.msrb.mxu2 %v4959_v15  ;;  %v5070_v17 = vld [vmem:[#allocation15 + $0xd0] sm:$0xff]  ;;  %v1547_v15 = vadd.f32 %v5422_v55, %v5413_v46 }
 0x8f2   :  { %2394 = vmatpush.msrb.mxu0 %v5055_v29 }
 0x8f3   :  { %2465 = vmatpush.msra.mxu1 %v4866_v40  ;;  %2485 = vmatpush.msrb.mxu2 %v4964_v60  ;;  %v5075_v40 = vld [vmem:[#allocation15 + $0xb8] sm:$0xff] }
 0x8f4   :  { %2395 = vmatpush.msrb.mxu0 %v5060_v44 }
 0x8f5   :  { %2466 = vmatpush.msra.mxu1 %v4871_v0  ;;  %2486 = vmatpush.msrb.mxu2 %v4969_v38  ;;  %v5080_v0 = vld [vmem:[#allocation15 + $0xa0] sm:$0xff] }
 0x8f6   :  { %2396 = vmatpush.msrb.mxu0 %v5065_v53 }
 0x8f7   :  { %2467 = vmatpush.msra.mxu1 %v4876_v2  ;;  %2487 = vmatpush.msrb.mxu2 %v4974_v7  ;;  %v5085_v2 = vld [vmem:[#allocation15 + $0x88] sm:$0xff] }
 0x8f8   :  { %2397 = vmatpush.msrb.mxu0 %v5070_v17 }
 0x8f9   :  { %2468 = vmatpush.msra.mxu1 %v4881_v59  ;;  %2488 = vmatpush.msrb.mxu2 %v4979_v18  ;;  %v5090_v59 = vld [vmem:[#allocation15 + $0x70] sm:$0xff] }
 0x8fa   :  { %2398 = vmatpush.msrb.mxu0 %v5075_v40 }
 0x8fb   :  { %2469 = vmatpush.msra.mxu1 %v4886_v63  ;;  %2489 = vmatpush.msrb.mxu2 %v4984_v4  ;;  %v5095_v63 = vld [vmem:[#allocation15 + $0x58] sm:$0xff] }
 0x8fc   :  { %2399 = vmatpush.msrb.mxu0 %v5080_v0 }
 0x8fd   :  { %2470 = vmatpush.msra.mxu1 %v4891_v5  ;;  %2490 = vmatpush.msrb.mxu2 %v4989_v48  ;;  %v5100_v5 = vld [vmem:[#allocation15 + $0x40] sm:$0xff] }
 0x8fe   :  { %2400 = vmatpush.msrb.mxu0 %v5085_v2 }
 0x8ff   :  { %2471 = vmatpush.msra.mxu1 %v4896_v9  ;;  %2491 = vmatpush.msrb.mxu2 %v4994_v37  ;;  %v5105_v9 = vld [vmem:[#allocation15 + $0x28] sm:$0xff] }
 0x900   :  { %2401 = vmatpush.msrb.mxu0 %v5090_v59 }
 0x901   :  { %2472 = vmatpush.msra.mxu1 %v4901_v20  ;;  %2492 = vmatpush.msrb.mxu2 %v4999_v10  ;;  %v5110_v20 = vld [vmem:[#allocation15 + $0x10] sm:$0xff] }
 0x902   :  { %2402 = vmatpush.msrb.mxu0 %v5095_v63 }
 0x903   :  { %2473 = vmatpush.msra.mxu1 %v4906_v3  ;;  %2493 = vmatpush.msrb.mxu2 %v5004_v50 }
 0x904   :  { %2403 = vmatpush.msrb.mxu0 %v5100_v5 }
 0x905   :  { %2474 = vmatpush.msra.mxu1 %v4911_v49  ;;  %2494 = vmatpush.msrb.mxu2 %v5009_v31 }
 0x906   :  { %2404 = vmatpush.msrb.mxu0 %v5105_v9 }
 0x907   :  { %2475 = vmatpush.msra.mxu1 %v4916_v42  ;;  %2495 = vmatpush.msrb.mxu2 %v5014_v13 }
 0x908   :  { %2405 = vmatpush.msrb.mxu0 %v5110_v20 }
 0x909   :  { %2476 = vmatpush.msra.mxu1 %v4921_v14  ;;  %2496 = vmatpush.msrb.mxu2 %v5019_v41 }
 0x966   :  { %v2145_v3 = vpop.f32.mrf.mxu0  ;;  %v2165_v49 = vpop.f32.mrf.mxu1 }
 0x967   :  { %v2146_v42 = vadd.f32 %v2145_v3, %v5417_v16  ;;  %v2166_v60 = vadd.f32 %v2165_v49, %v5414_v51 }
 0x969   :  { %v2188_v38 = vadd.f32 %v2146_v42, %v1506_v26  ;;  %v2208_v7 = vadd.f32 %v2166_v60, %v1547_v15 }
 0x96b   :  { %v2780_v18 = vmul.f32 -1.442695, %v2188_v38  ;;  %v2781_v4 = vmul.f32 -1.442695, %v2208_v7  ;;  %v2589_v7 = vld [vmem:[#allocation16 + $0x50] sm:$0xff] }
 0x96d   :  { %2946 = vpow2.f32 %v2780_v18  ;;  %v2185_v1 = vpop.f32.mrf.mxu2 }
 0x96e   :  { %2948 = vpow2.f32 %v2781_v4  ;;  %v2186_v21 = vadd.f32 %v2185_v1, %v4748_v23  ;;  %v2588_v4 = vld [vmem:[#allocation16 + $0x48] sm:$0xff] }
 0x973   :  { %v2947_v14 = vpop.eup %2946 }
 0x974   :  { %v2949_v48 = vpop.eup %2948  ;;  %v2192_v37 = vadd.f32 1.0, %v2947_v14 }
 0x975   :  { %v2212_v10 = vadd.f32 1.0, %v2949_v48  ;;  %v2587_v48 = vld [vmem:[#allocation16 + $0x40] sm:$0xff] }
 0x976   :  { %2950 = vrcp.f32 %v2192_v37  ;;  %v2204_v45 = vand.u32 2147483648, %v2192_v37  ;;  %v2202_v35 = vand.u32 2147483647, %v2192_v37  ;;  %vm2198_vm9 = vweird.f32 %v2192_v37 }
 0x977   :  { %2952 = vrcp.f32 %v2212_v10  ;;  %v2224_v52 = vand.u32 2147483648, %v2212_v10  ;;  %vm2218_vm13 = vweird.f32 %v2212_v10  ;;  %v2222_v12 = vand.u32 2147483647, %v2212_v10 }
 0x978   :  { %v2205_v27 = vor.u32 1.1754944e-38, %v2204_v45  ;;  %vm2203_vm11 = vcmp.eq.f32.partialorder %v2202_v35, 8.507059e+37  ;;  %v2582_v45 = vld [vmem:[#allocation16 + $0x18] sm:$0xff] }
 0x979   :  { %v2225_v25 = vor.u32 1.1754944e-38, %v2224_v52  ;;  %vm2223_vm15 = vcmp.eq.f32.partialorder %v2222_v12, 8.507059e+37 }
 0x97c   :  { %v2951_v50 = vpop.eup %2950 }
 0x97d   :  { %v2953_v31 = vpop.eup %2952  ;;  %v2194_v13 = vmul.f32 %v2951_v50, %v2192_v37  ;;  %vm2199_vm8 = vweird.f32 %v2951_v50 }
 0x97e   :  { %v2214_v41 = vmul.f32 %v2953_v31, %v2212_v10  ;;  %vm2200_vm10 = vmor %vm2198_vm9, %vm2199_vm8  ;;  %vm2219_vm12 = vweird.f32 %v2953_v31  ;;  %v2586_v10 = vld [vmem:[#allocation16 + $0x38] sm:$0xff] }
 0x97f   :  { %v2195_v30 = vsub.f32 1.0, %v2194_v13  ;;  %vm2220_vm14 = vmor %vm2218_vm13, %vm2219_vm12  ;;  %v2584_v13 = vld [vmem:[#allocation16 + $0x28] sm:$0xff] }
 0x980   :  { %v2215_v8 = vsub.f32 1.0, %v2214_v41 }
 0x981   :  { %v2196_v47 = vmul.f32 %v2951_v50, %v2195_v30  ;;  %v2583_v30 = vld [vmem:[#allocation16 + $0x20] sm:$0xff] }
 0x982   :  { %v2216_v62 = vmul.f32 %v2953_v31, %v2215_v8 }
 0x983   :  { %v2197_v58 = vadd.f32 %v2951_v50, %v2196_v47  ;;  %v2581_v47 = vld [vmem:[#allocation16 + $0x10] sm:$0xff] }
 0x984   :  { %v2217_v34 = vadd.f32 %v2953_v31, %v2216_v62  ;;  %v2580_v62 = vld [vmem:[#allocation16 + $0x8] sm:$0xff] }
 0x985   :  { %v2201_v56 = vsel %vm2200_vm10, %v2951_v50, %v2197_v58  ;;  %v2585_v50 = vld [vmem:[#allocation16 + $0x30] sm:$0xff] }
 0x986   :  { %v2206_v11 = vsel %vm2203_vm11, %v2205_v27, %v2201_v56  ;;  %v2221_v49 = vsel %vm2220_vm14, %v2953_v31, %v2217_v34  ;;  %v2579_v27 = vld [vmem:[#allocation16] sm:$0xff] }
 0x987   :  { %v2228_v6 = vmul.f32 %v2206_v11, %v2186_v21  ;;  %v2226_v26 = vsel %vm2223_vm15, %v2225_v25, %v2221_v49 }
 0x988   :  { %v2231_v55 = vsub.f32 1.0, %v2226_v26  ;;  %v2233_v60 = vmul.f32 %v2226_v26, %v5032_v54 }
 0x989   :  { %v2229_v3 = vadd.f32 %v2228_v6, %v1588_v43 }
 0x98b   :  { %2954 = vtanh.f32 %v2229_v3 }
 0x991   :  { %v2955_v15 = vpop.eup %2954 }
 0x992   :  { %v2232_v42 = vmul.f32 %v2955_v15, %v2231_v55  ;;  %v5426_v55 = vld [vmem:[#allocation56_spill] sm:$0xff] }
 0x993   :  { %v1591_v15 = vadd.f32 %v5426_v55, %v4750_v61 }
 0x994   :  { %v5125_v38 = vadd.f32 %v2233_v60, %v2232_v42 }
 0x996   :  { %2255 = vmatmul.f32.vlgmr.msrb.gmra.mxu3 %v5125_v38  ;;  %2275 = vmatmul.f32.vlgmr.msra.gmra.mxu0 %v5125_v38 }
 0x997   :  { %2295 = vmatmul.f32.vlgmr.msrb.gmra.mxu1 %v5125_v38  ;;  %2501 = vmatpush.msrb.mxu3 %v4940_v36 }
 0x999   :  { %2502 = vmatpush.msrb.mxu3 %v5040_v22  ;;  %v5424_v22 = vld [vmem:[#allocation58_spill] sm:$0xff] }
 0x99b   :  { %2503 = vmatpush.msrb.mxu3 %v5045_v33  ;;  %v1550_v33 = vadd.f32 %v5424_v22, %v5413_v46 }
 0x99d   :  { %2504 = vmatpush.msrb.mxu3 %v5050_v39 }
 0x99f   :  { %2505 = vmatpush.msrb.mxu3 %v5055_v29  ;;  %v2594_v29 = vld [vmem:[#allocation16 + $0x78] sm:$0xff] }
 0x9a0   :  { %2599 = vmatpush.msra.mxu0 %v2594_v29 }
 0x9a1   :  { %2506 = vmatpush.msrb.mxu3 %v5060_v44 }
 0x9a3   :  { %2507 = vmatpush.msrb.mxu3 %v5065_v53  ;;  %v2593_v53 = vld [vmem:[#allocation16 + $0x70] sm:$0xff] }
 0x9a4   :  { %2600 = vmatpush.msra.mxu0 %v2593_v53 }
 0x9a5   :  { %2508 = vmatpush.msrb.mxu3 %v5070_v17 }
 0x9a7   :  { %2509 = vmatpush.msrb.mxu3 %v5075_v40  ;;  %v2592_v40 = vld [vmem:[#allocation16 + $0x68] sm:$0xff] }
 0x9a8   :  { %2601 = vmatpush.msra.mxu0 %v2592_v40 }
 0x9a9   :  { %2510 = vmatpush.msrb.mxu3 %v5080_v0 }
 0x9ab   :  { %2511 = vmatpush.msrb.mxu3 %v5085_v2  ;;  %v5425_v2 = vld [vmem:[#allocation43_spill] sm:$0xff] }
 0x9ad   :  { %2512 = vmatpush.msrb.mxu3 %v5090_v59  ;;  %v1509_v59 = vadd.f32 %v5425_v2, %v5415_v32 }
 0x9af   :  { %2513 = vmatpush.msrb.mxu3 %v5095_v63 }
 0x9b1   :  { %2514 = vmatpush.msrb.mxu3 %v5100_v5  ;;  %v2591_v5 = vld [vmem:[#allocation16 + $0x60] sm:$0xff] }
 0x9b2   :  { %2602 = vmatpush.msra.mxu0 %v2591_v5  ;;  %v5170_v5 = vld [vmem:[%s5231_s10] ss:$0 sm:$0xff]  ;;  %s3402_s10 = smov [#allocation20]  }
 0x9b3   :  { %2515 = vmatpush.msrb.mxu3 %v5105_v9  ;;  %v2590_v9 = vld [vmem:[#allocation16 + $0x58] sm:$0xff]  ;;  %s2683_s25 = sshll.u32 %s3402_s10, 4  ;;  %s2684_s25 = int_to_ptr.vmem [resolvable:$true] %s2683_s25 }
 0x9b4   :  { %2603 = vmatpush.msra.mxu0 %v2590_v9 }
 0x9b5   :  { %2516 = vmatpush.msrb.mxu3 %v5110_v20 }
 0x9b6   :  { %2604 = vmatpush.msra.mxu0 %v2589_v7 }
 0x9b8   :  { %2605 = vmatpush.msra.mxu0 %v2588_v4 }
 0x9ba   :  { %2606 = vmatpush.msra.mxu0 %v2587_v48 }
 0x9bc   :  { %2607 = vmatpush.msra.mxu0 %v2586_v10 }
 0x9be   :  { %2608 = vmatpush.msra.mxu0 %v2585_v50 }
 0x9c0   :  { %2609 = vmatpush.msra.mxu0 %v2584_v13 }
 0x9c2   :  { %2610 = vmatpush.msra.mxu0 %v2583_v30 }
 0x9c4   :  { %2611 = vmatpush.msra.mxu0 %v2582_v45 }
 0x9c6   :  { %2612 = vmatpush.msra.mxu0 %v2581_v47 }
 0x9c8   :  { %2613 = vmatpush.msra.mxu0 %v2580_v62 }
 0x9ca   :  { %2614 = vmatpush.msra.mxu0 %v2579_v27 }
 0xa13   :  { %v2276_v36 = vpop.f32.mrf.mxu0 }
 0xa14   :  { %v2277_v39 = vadd.f32 %v2276_v36, %v5414_v51  ;;  %v2296_v52 = vpop.f32.mrf.mxu1 }
 0xa15   :  { %v2297_v3 = vadd.f32 %v2296_v52, %v4748_v23 }
 0xa16   :  { %v2319_v44 = vadd.f32 %v2277_v39, %v1550_v33 }
 0xa18   :  { %v2783_v17 = vmul.f32 -1.442695, %v2319_v44 }
 0xa19   :  { %v2256_v0 = vpop.f32.mrf.mxu3 }
 0xa1a   :  { %2956 = vpow2.f32 %v2783_v17  ;;  %v2257_v63 = vadd.f32 %v2256_v0, %v5417_v16 }
 0xa1c   :  { %v2299_v20 = vadd.f32 %v2257_v63, %v1509_v59 }
 0xa1e   :  { %v2782_v18 = vmul.f32 -1.442695, %v2299_v20 }
 0xa20   :  { %v2957_v14 = vpop.eup %2956  ;;  %2958 = vpow2.f32 %v2782_v18 }
 0xa21   :  { %v2323_v37 = vadd.f32 1.0, %v2957_v14 }
 0xa23   :  { %2960 = vrcp.f32 %v2323_v37  ;;  %v2335_v42 = vand.u32 2147483648, %v2323_v37  ;;  %vm2329_vm5 = vweird.f32 %v2323_v37  ;;  %v2333_v36 = vand.u32 2147483647, %v2323_v37 }
 0xa25   :  { %v2336_v39 = vor.u32 1.1754944e-38, %v2335_v42  ;;  %vm2334_vm7 = vcmp.eq.f32.partialorder %v2333_v36, 8.507059e+37 }
 0xa26   :  { %v2959_v31 = vpop.eup %2958 }
 0xa27   :  { %v2303_v41 = vadd.f32 1.0, %v2959_v31 }
 0xa29   :  { %2962 = vrcp.f32 %v2303_v41  ;;  %v2961_v8 = vpop.eup %2960  ;;  %v2315_v11 = vand.u32 2147483648, %v2303_v41  ;;  %v2313_v19 = vand.u32 2147483647, %v2303_v41  ;;  %vm2309_vm1 = vweird.f32 %v2303_v41 }
 0xa2a   :  { %v2325_v35 = vmul.f32 %v2961_v8, %v2323_v37  ;;  %vm2330_vm4 = vweird.f32 %v2961_v8 }
 0xa2b   :  { %v2316_v12 = vor.u32 1.1754944e-38, %v2315_v11  ;;  %vm2314_vm3 = vcmp.eq.f32.partialorder %v2313_v19, 8.507059e+37  ;;  %vm2331_vm6 = vmor %vm2329_vm5, %vm2330_vm4 }
 0xa2c   :  { %v2326_v21 = vsub.f32 1.0, %v2325_v35 }
 0xa2e   :  { %v2327_v43 = vmul.f32 %v2961_v8, %v2326_v21 }
 0xa2f   :  { %v2963_v1 = vpop.eup %2962 }
 0xa30   :  { %v2305_v58 = vmul.f32 %v2963_v1, %v2303_v41  ;;  %vm2310_vm0 = vweird.f32 %v2963_v1  ;;  %v2328_v26 = vadd.f32 %v2961_v8, %v2327_v43 }
 0xa31   :  { %vm2311_vm2 = vmor %vm2309_vm1, %vm2310_vm0 }
 0xa32   :  { %v2306_v56 = vsub.f32 1.0, %v2305_v58  ;;  %v2332_v33 = vsel %vm2331_vm6, %v2961_v8, %v2328_v26 }
 0xa33   :  { %v2337_v29 = vsel %vm2334_vm7, %v2336_v39, %v2332_v33 }
 0xa34   :  { %v2307_v34 = vmul.f32 %v2963_v1, %v2306_v56  ;;  %v2342_v44 = vsub.f32 1.0, %v2337_v29  ;;  %v2344_v40 = vmul.f32 %v2337_v29, %v5125_v38 }
 0xa36   :  { %v2308_v6 = vadd.f32 %v2963_v1, %v2307_v34 }
 0xa38   :  { %v2312_v49 = vsel %vm2311_vm2, %v2963_v1, %v2308_v6 }
 0xa39   :  { %v2317_v25 = vsel %vm2314_vm3, %v2316_v12, %v2312_v49 }
 0xa3a   :  { %v2339_v60 = vmul.f32 %v2317_v25, %v2297_v3  ;;  %v5429_v25 = vld [vmem:[#allocation46_spill] sm:$0xff] }
 0xa3b   :  { %v1594_v26 = vadd.f32 %v5429_v25, %v4750_v61 }
 0xa3c   :  { %v2340_v22 = vadd.f32 %v2339_v60, %v1591_v15 }
 0xa3e   :  { %2964 = vtanh.f32 %v2340_v22 }
 0xa44   :  { %v2965_v53 = vpop.eup %2964 }
 0xa45   :  { %v2343_v17 = vmul.f32 %v2965_v53, %v2342_v44 }
 0xa47   :  { %v5156_v0 = vadd.f32 %v2344_v40, %v2343_v17 }
 0xa49   :  { %2366 = vmatmul.f32.vlgmr.msra.gmra.mxu2 %v5156_v0  ;;  %2386 = vmatmul.f32.vlgmr.msra.gmra.mxu3 %v5156_v0 }
 0xa4a   :  { %2406 = vmatmul.f32.vlgmr.msrb.gmra.mxu0 %v5156_v0 }
 0xa52   :  { %2615 = vmatmul.f32.vlgmr.msra.gmra.mxu0 %v4755_v24  ;;  %v5427_v24 = vld [vmem:[#allocation54_spill] sm:$0xff] }
 0xa53   :  { %v1512_v9 = vadd.f32 %v5427_v24, %v5415_v32 }
 0xa5a   :  { %2618 = vmatmul.f32.gmra.mxu0 %v4840_v57  ;;  %v5428_v57 = vld [vmem:[#allocation30_spill] sm:$0xff] }
 0xa62   :  { %2621 = vmatmul.f32.gmra.mxu0 %v4935_v28  ;;  %v1553_v28 = vadd.f32 %v5428_v57, %v5413_v46 }
 0xa6a   :  { %2624 = vmatmul.f32.gmra.mxu0 %v5032_v54 }
 0xa72   :  { %2627 = vmatmul.f32.gmra.mxu0 %v5125_v38 }
 0xa7a   :  { %2630 = vmatmul.f32.gmra.mxu0 %v5156_v0 }
 0xac7   :  { %v2407_v2 = vpop.f32.mrf.mxu0 }
 0xac8   :  { %v2408_v6 = vadd.f32 %v2407_v2, %v4748_v23 }
 0xacc   :  { %v2367_v59 = vpop.f32.mrf.mxu2  ;;  %v2387_v63 = vpop.f32.mrf.mxu3 }
 0xacd   :  { %v2368_v54 = vadd.f32 %v2367_v59, %v5417_v16  ;;  %v2388_v38 = vadd.f32 %v2387_v63, %v5414_v51 }
 0xacf   :  { %v2410_v20 = vadd.f32 %v2368_v54, %v1512_v9  ;;  %v2430_v7 = vadd.f32 %v2388_v38, %v1553_v28  ;;  %v2616_v18 = vpop.f32.mrf.mxu0  ;;  %v5430_v9 = vld [vmem:[#allocation57_spill] sm:$0xff] }
 0xad0   :  { %v2617_v4 = vadd.f32 %v5170_v5, %v2616_v18  ;;  %v1515_v57 = vadd.f32 %v5430_v9, %v5415_v32  ;;  %v5431_v18 = vld [vmem:[#allocation50_spill] sm:$0xff] }
 0xad1   :  { %v2784_v14 = vmul.f32 -1.442695, %v2410_v20  ;;  %v2785_v48 = vmul.f32 -1.442695, %v2430_v7 }
 0xad2   :  { %2640 = vst [vmem:[#allocation20] sm:$0xff] %v2617_v4  ;;  %v1556_v4 = vadd.f32 %v5431_v18, %v5413_v46 }
 0xad3   :  { %2966 = vpow2.f32 %v2784_v14 }
 0xad4   :  { %2968 = vpow2.f32 %v2785_v48 }
 0xad7   :  { %v2619_v37 = vpop.f32.mrf.mxu0 }
 0xad8   :  { %v2620_v10 = vadd.f32 %v5170_v5, %v2619_v37 }
 0xad9   :  { %v2967_v50 = vpop.eup %2966 }
 0xada   :  { %v2969_v31 = vpop.eup %2968  ;;  %v2414_v13 = vadd.f32 1.0, %v2967_v50  ;;  %2641 = vst [vmem:[#allocation20 + $0x8] sm:$0xff] %v2620_v10 }
 0xadb   :  { %v2434_v41 = vadd.f32 1.0, %v2969_v31 }
 0xadc   :  { %2970 = vrcp.f32 %v2414_v13  ;;  %v2426_v58 = vand.u32 2147483648, %v2414_v13  ;;  %v2424_v56 = vand.u32 2147483647, %v2414_v13  ;;  %vm2420_vm9 = vweird.f32 %v2414_v13 }
 0xadd   :  { %2972 = vrcp.f32 %v2434_v41  ;;  %v2446_v15 = vand.u32 2147483648, %v2434_v41  ;;  %vm2440_vm13 = vweird.f32 %v2434_v41  ;;  %v2444_v42 = vand.u32 2147483647, %v2434_v41 }
 0xade   :  { %v2427_v52 = vor.u32 1.1754944e-38, %v2426_v58  ;;  %vm2425_vm11 = vcmp.eq.f32.partialorder %v2424_v56, 8.507059e+37 }
 0xadf   :  { %v2622_v30 = vpop.f32.mrf.mxu0  ;;  %v2447_v39 = vor.u32 1.1754944e-38, %v2446_v15  ;;  %vm2445_vm15 = vcmp.eq.f32.partialorder %v2444_v42, 8.507059e+37 }
 0xae0   :  { %v2623_v8 = vadd.f32 %v5170_v5, %v2622_v30 }
 0xae2   :  { %v2971_v45 = vpop.eup %2970  ;;  %2642 = vst [vmem:[#allocation20 + $0x10] sm:$0xff] %v2623_v8 }
 0xae3   :  { %v2973_v47 = vpop.eup %2972  ;;  %v2416_v35 = vmul.f32 %v2971_v45, %v2414_v13  ;;  %vm2421_vm8 = vweird.f32 %v2971_v45 }
 0xae4   :  { %v2436_v62 = vmul.f32 %v2973_v47, %v2434_v41  ;;  %vm2422_vm10 = vmor %vm2420_vm9, %vm2421_vm8  ;;  %vm2441_vm12 = vweird.f32 %v2973_v47 }
 0xae5   :  { %v2417_v1 = vsub.f32 1.0, %v2416_v35  ;;  %vm2442_vm14 = vmor %vm2440_vm13, %vm2441_vm12 }
 0xae6   :  { %v2437_v27 = vsub.f32 1.0, %v2436_v62 }
 0xae7   :  { %v2418_v21 = vmul.f32 %v2971_v45, %v2417_v1  ;;  %v2625_v11 = vpop.f32.mrf.mxu0 }
 0xae8   :  { %v2438_v34 = vmul.f32 %v2973_v47, %v2437_v27  ;;  %v2626_v19 = vadd.f32 %v5170_v5, %v2625_v11 }
 0xae9   :  { %v2419_v43 = vadd.f32 %v2971_v45, %v2418_v21  ;;  %v5432_v21 = vld [vmem:[#allocation48_spill] sm:$0xff] }
 0xaea   :  { %2643 = vst [vmem:[#allocation20 + $0x18] sm:$0xff] %v2626_v19  ;;  %v2439_v49 = vadd.f32 %v2973_v47, %v2438_v34  ;;  %v1597_v56 = vadd.f32 %v5432_v21, %v4750_v61 }
 0xaeb   :  { %v2423_v12 = vsel %vm2422_vm10, %v2971_v45, %v2419_v43 }
 0xaec   :  { %v2428_v3 = vsel %vm2425_vm11, %v2427_v52, %v2423_v12  ;;  %v2443_v33 = vsel %vm2442_vm14, %v2973_v47, %v2439_v49 }
 0xaed   :  { %v2450_v55 = vmul.f32 %v2428_v3, %v2408_v6  ;;  %v2448_v29 = vsel %vm2445_vm15, %v2447_v39, %v2443_v33 }
 0xaee   :  { %v2453_v44 = vsub.f32 1.0, %v2448_v29  ;;  %v2455_v59 = vmul.f32 %v2448_v29, %v5156_v0 }
 0xaef   :  { %v2628_v60 = vpop.f32.mrf.mxu0  ;;  %v2451_v36 = vadd.f32 %v2450_v55, %v1594_v26 }
 0xaf0   :  { %v2629_v22 = vadd.f32 %v5170_v5, %v2628_v60 }
 0xaf1   :  { %2974 = vtanh.f32 %v2451_v36 }
 0xaf2   :  { %2644 = vst [vmem:[#allocation20 + $0x20] sm:$0xff] %v2629_v22 }
 0xaf7   :  { %v2975_v53 = vpop.eup %2974  ;;  %v2631_v17 = vpop.f32.mrf.mxu0 }
 0xaf8   :  { %v2632_v40 = vadd.f32 %v5170_v5, %v2631_v17  ;;  %v2454_v2 = vmul.f32 %v2975_v53, %v2453_v44 }
 0xafa   :  { %2645 = vst [vmem:[#allocation20 + $0x28] sm:$0xff] %v2632_v40  ;;  %v5188_v63 = vadd.f32 %v2455_v59, %v2454_v2 }
 0xafc   :  { %2477 = vmatmul.f32.vlgmr.msra.gmra.mxu1 %v5188_v63  ;;  %2497 = vmatmul.f32.vlgmr.msrb.gmra.mxu2 %v5188_v63 }
 0xafd   :  { %2517 = vmatmul.f32.vlgmr.msrb.gmra.mxu3 %v5188_v63  ;;  %2633 = vmatmul.f32.gmra.mxu0 %v5188_v63 }
 0xb79   :  { %v2478_v24 = vpop.f32.mrf.mxu1 }
 0xb7a   :  { %v2479_v28 = vadd.f32 %v2478_v24, %v5417_v16  ;;  %v2634_v54 = vpop.f32.mrf.mxu0 }
 0xb7b   :  { %v2635_v0 = vadd.f32 %v5170_v5, %v2634_v54 }
 0xb7c   :  { %v2521_v38 = vadd.f32 %v2479_v28, %v1515_v57 }
 0xb7d   :  { %2646 = vst [vmem:[#allocation20 + $0x30] sm:$0xff] %v2635_v0 }
 0xb7e   :  { %v2786_v20 = vmul.f32 -1.442695, %v2521_v38 }
 0xb7f   :  { %v2498_v7 = vpop.f32.mrf.mxu2 }
 0xb80   :  { %2976 = vpow2.f32 %v2786_v20  ;;  %v2499_v14 = vadd.f32 %v2498_v7, %v5414_v51  ;;  %v2518_v47 = vpop.f32.mrf.mxu3 }
 0xb81   :  { %v2519_v1 = vadd.f32 %v2518_v47, %v4748_v23 }
 0xb82   :  { %v2541_v48 = vadd.f32 %v2499_v14, %v1556_v4 }
 0xb84   :  { %v2787_v37 = vmul.f32 -1.442695, %v2541_v48 }
 0xb86   :  { %v2977_v10 = vpop.eup %2976  ;;  %2978 = vpow2.f32 %v2787_v37 }
 0xb87   :  { %v2525_v32 = vadd.f32 1.0, %v2977_v10 }
 0xb89   :  { %2980 = vrcp.f32 %v2525_v32  ;;  %v2537_v30 = vand.u32 2147483648, %v2525_v32  ;;  %v2535_v45 = vand.u32 2147483647, %v2525_v32  ;;  %vm2531_vm1 = vweird.f32 %v2525_v32 }
 0xb8b   :  { %v2538_v62 = vor.u32 1.1754944e-38, %v2537_v30  ;;  %vm2536_vm3 = vcmp.eq.f32.partialorder %v2535_v45, 8.507059e+37 }
 0xb8c   :  { %v2979_v16 = vpop.eup %2978 }
 0xb8d   :  { %v2545_v50 = vadd.f32 1.0, %v2979_v16 }
 0xb8f   :  { %v2981_v31 = vpop.eup %2980  ;;  %2982 = vrcp.f32 %v2545_v50  ;;  %v2557_v43 = vand.u32 2147483648, %v2545_v50  ;;  %v2555_v52 = vand.u32 2147483647, %v2545_v50  ;;  %vm2551_vm5 = vweird.f32 %v2545_v50 }
 0xb90   :  { %v2527_v13 = vmul.f32 %v2981_v31, %v2525_v32  ;;  %vm2532_vm0 = vweird.f32 %v2981_v31 }
 0xb91   :  { %vm2533_vm2 = vmor %vm2531_vm1, %vm2532_vm0  ;;  %v2558_v49 = vor.u32 1.1754944e-38, %v2557_v43  ;;  %vm2556_vm7 = vcmp.eq.f32.partialorder %v2555_v52, 8.507059e+37 }
 0xb92   :  { %v2528_v41 = vsub.f32 1.0, %v2527_v13 }
 0xb94   :  { %v2529_v8 = vmul.f32 %v2981_v31, %v2528_v41 }
 0xb95   :  { %v2983_v46 = vpop.eup %2982 }
 0xb96   :  { %v2547_v35 = vmul.f32 %v2983_v46, %v2545_v50  ;;  %v2530_v51 = vadd.f32 %v2981_v31, %v2529_v8  ;;  %vm2552_vm4 = vweird.f32 %v2983_v46 }
 0xb97   :  { %vm2553_vm6 = vmor %vm2551_vm5, %vm2552_vm4 }
 0xb98   :  { %v2534_v58 = vsel %vm2533_vm2, %v2981_v31, %v2530_v51  ;;  %v2548_v27 = vsub.f32 1.0, %v2547_v35 }
 0xb99   :  { %v2539_v11 = vsel %vm2536_vm3, %v2538_v62, %v2534_v58 }
 0xb9a   :  { %v2561_v34 = vmul.f32 %v2539_v11, %v2519_v1  ;;  %v2549_v19 = vmul.f32 %v2983_v46, %v2548_v27 }
 0xb9c   :  { %v2562_v6 = vadd.f32 %v2561_v34, %v1597_v56  ;;  %v2550_v12 = vadd.f32 %v2983_v46, %v2549_v19 }
 0xb9e   :  { %2984 = vtanh.f32 %v2562_v6  ;;  %v2554_v3 = vsel %vm2553_vm6, %v2983_v46, %v2550_v12 }
 0xb9f   :  { %v2559_v23 = vsel %vm2556_vm7, %v2558_v49, %v2554_v3 }
 0xba0   :  { %v2564_v25 = vsub.f32 1.0, %v2559_v23  ;;  %v2566_v61 = vmul.f32 %v2559_v23, %v5188_v63 }
 0xba4   :  { %v2985_v26 = vpop.eup %2984 }
 0xba5   :  { %v2565_v55 = vmul.f32 %v2985_v26, %v2564_v25 }
 0xba7   :  { %v2567_v15 = vadd.f32 %v2566_v61, %v2565_v55 }
 0xba9   :  { %2570 = vst [vmem:[#allocation22 + $0x8] sm:$0xff] %v2567_v15  ;;  %2636 = vmatmul.f32.gmra.mxu0 %v2567_v15 }
 0xc26   :  { %v2637_v42 = vpop.f32.mrf.mxu0 }
 0xc27   :  { %v2638_v60 = vadd.f32 %v5170_v5, %v2637_v42 }
 0xc29   :  { %2647 = vst [vmem:[#allocation20 + $0x38] sm:$0xff] %v2638_v60  ;;  %v2788_v36 = vmul.f32 -1.442695, %v2638_v60 }
 0xc2a   :  { %2691 = dma.vmem_to_hbm [thread:$0]  %s2684_s25, 1024, %s2686_s3, [#allocation21], %s3394_s17, %s3394_s17, %s3395_s6  }
 0xc2b   :  { %2986 = vpow2.f32 %v2788_v36  ;;  %2704 = dma.vmem_to_hbm [thread:$0]  %s2697_s29, 256, %s2699_s30, [#allocation21], %s3394_s17, %s3394_s17, %s3395_s6  }
 0xc31   :  { %v2987_v22 = vpop.eup %2986 }
 0xc32   :  { %v2651_v33 = vadd.f32 1.0, %v2987_v22 }
 0xc34   :  { %2988 = vrcp.f32 %v2651_v33  ;;  %v2663_v44 = vand.u32 2147483648, %v2651_v33  ;;  %v2661_v17 = vand.u32 2147483647, %v2651_v33  ;;  %vm2657_vm9 = vweird.f32 %v2651_v33 }
 0xc36   :  { %v2664_v2 = vor.u32 1.1754944e-38, %v2663_v44  ;;  %vm2662_vm11 = vcmp.eq.f32.partialorder %v2661_v17, 8.507059e+37 }
 0xc3a   :  { %v2989_v39 = vpop.eup %2988 }
 0xc3b   :  { %v2653_v5 = vmul.f32 %v2989_v39, %v2651_v33  ;;  %vm2658_vm8 = vweird.f32 %v2989_v39 }
 0xc3c   :  { %vm2659_vm10 = vmor %vm2657_vm9, %vm2658_vm8 }
 0xc3d   :  { %v2654_v29 = vsub.f32 1.0, %v2653_v5 }
 0xc3f   :  { %v2655_v53 = vmul.f32 %v2989_v39, %v2654_v29 }
 0xc41   :  { %v2656_v40 = vadd.f32 %v2989_v39, %v2655_v53 }
 0xc43   :  { %v2660_v59 = vsel %vm2659_vm10, %v2989_v39, %v2656_v40 }
 0xc44   :  { %v2665_v63 = vsel %vm2662_vm11, %v2664_v2, %v2660_v59 }
 0xc45   :  { %2667 = vst [vmem:[#allocation19] sm:$0xff] %v2665_v63 }
 0xc46   :  { %2678 = dma.vmem_to_hbm [thread:$0]  %s2674_s14, 128, %s2676_s18, [#allocation6]  }
 0xc47   :  { %3384 = dma.done.wait [#allocation6], 128  }
 0xc48   :  { %3385 = vsyncadd [#allocation6], 4294967168 }
 0xc49   :  { %3386 = dma.done.wait [#allocation21], 1280  }
 0xc4a   :  { %3387 = vsyncadd [#allocation21], 4294966016 }
 0xc4b   :  { %2717 = vsyncpa [#allocation5], 1 }
 0xc4c   :  { %2718 = vsyncpa [#allocation8], 1 }
 0xc4d   :  { %2719 = vsyncpa [#allocation11], 1 }
 0xc4e   :  { %2720 = vsyncpa [#allocation14], 1 }
 0xc4f   :  { %2721 = vsyncpa [#allocation17], 1 }
 0xc50   :  { %2722 = vsyncpa [#allocation6], 1 }
 0xc51   :  { %2723 = vsyncpa [#allocation21], 1 }

</bundles_post_ra>
